<compile_context>
chip_gen: v7x
topology: tpu7x:2x2x1
jax: 0.10.0
libtpu: 0.0.40
codegen_flags: <defaults>
</compile_context>

<pallas_src>
import functools
import math

import jax
import jax.numpy as jnp
import numpy as np
from jax.experimental import pallas as pl
from jax.experimental.pallas import tpu as pltpu

# ---- small, module-consistent config -----------------------------------------
HIDDEN = 32
NUM_HEADS = 2
HEAD_DIM = HIDDEN // NUM_HEADS
MLP_RATIO = 4.0
MLP_HIDDEN = int(HIDDEN * MLP_RATIO)
# The reference module hard-codes 4096 image patches; scaled down for the demo
# so both sequence lengths equal 128 and fit a single VMEM-resident tile.
NUM_IMAGE_PATCHES = 112
LN_EPS = 1e-6
RMS_EPS = 1e-6


# --------------------------- fused block kernel --------------------------------
def _block_kernel(x_ref, shift_ref, scale1p_ref, gate_ref, p0_ref, p1_ref,
                  w1_ref, b1_ref, qs_ref, ks_ref, w2_ref, b2_ref, out_ref,
                  *, H, M, nh, D, sm_scale):
    """One (batch, application) element: the whole SingleStreamBlock on a full
    sequence, entirely in VMEM."""
    x = x_ref[0]                                     # (L, H) f32
    shift = shift_ref[0]                             # (1, H)
    scale1p = scale1p_ref[0]                         # (1, H) == 1 + scale
    gate = gate_ref[0]                               # (1, H)

    # pre_norm: LayerNorm (no affine, eps=1e-6) + adaLN modulation
    mu = jnp.mean(x, axis=-1, keepdims=True)
    var = jnp.mean((x - mu) ** 2, axis=-1, keepdims=True)
    x_mod = scale1p * ((x - mu) * jax.lax.rsqrt(var + LN_EPS)) + shift

    # linear1: single bf16 MXU matmul over fused [q|k|v|mlp], f32 accumulation
    y = jnp.dot(x_mod.astype(jnp.bfloat16), w1_ref[...],
                preferred_element_type=jnp.float32) + b1_ref[...]

    p0 = p0_ref[0]                                   # (L, D) rope cos-like factor
    p1 = p1_ref[0]                                   # (L, D) rope sin-like factor
    qs = qs_ref[...]                                 # (1, D)
    ks = ks_ref[...]                                 # (1, D)
    half = D // 2

    def _rot_half(z):                                # de-interleaved layout: swap halves
        return jnp.concatenate([z[:, half:], z[:, :half]], axis=-1)

    attn_heads = []
    for h in range(nh):                              # nh is static & tiny
        qh = y[:, h * D:(h + 1) * D]
        kh = y[:, H + h * D:H + (h + 1) * D]
        vh = y[:, 2 * H + h * D:2 * H + (h + 1) * D]
        # QKNorm: RMSNorm over head_dim with learned scale (permutation-safe)
        qh = qh * jax.lax.rsqrt(jnp.mean(qh * qh, axis=-1, keepdims=True) + RMS_EPS) * qs
        kh = kh * jax.lax.rsqrt(jnp.mean(kh * kh, axis=-1, keepdims=True) + RMS_EPS) * ks
        # rotate-half RoPE (W1 columns pre-de-interleaved in the wrapper)
        qh = p0 * qh + p1 * _rot_half(qh)
        kh = p0 * kh + p1 * _rot_half(kh)
        # full-sequence attention for this head (no kv loop: K/V already in VMEM)
        s = jax.lax.dot_general(qh.astype(jnp.bfloat16), kh.astype(jnp.bfloat16),
                                (((1,), (1,)), ((), ())),
                                preferred_element_type=jnp.float32) * sm_scale
        m = jnp.max(s, axis=-1, keepdims=True)
        p = jnp.exp(s - m)
        l = jnp.sum(p, axis=-1, keepdims=True)
        p = (p * pl.reciprocal(l, approx=True)).astype(jnp.bfloat16)
        attn_heads.append(jnp.dot(p, vh.astype(jnp.bfloat16),
                                  preferred_element_type=jnp.float32))

    attn = jnp.concatenate(attn_heads, axis=-1)      # (L, H) f32
    gm = jax.nn.gelu(y[:, 3 * H:], approximate=True)  # (L, M) GELU-tanh

    # ONE fused linear2 matmul over [attn | gelu(mlp)] + bias + gated residual
    fused = jnp.concatenate([attn, gm], axis=-1).astype(jnp.bfloat16)
    out = jnp.dot(fused, w2_ref[...], preferred_element_type=jnp.float32) + b2_ref[...]
    out_ref[0] = x + gate * out


# ------------------------------- wrappers -------------------------------------
def _pe_to_p(pe, L, D):
    """Flux RoPE tensor (1,1,L,D/2,2,2) -> de-interleaved (L, D) factors so that
    roped = p0 * z + p1 * rotate_half(z) for z in [even dims | odd dims] layout."""
    pe = pe.reshape(L, D // 2, 2, 2)
    a, b = pe[:, :, 0, 0], pe[:, :, 0, 1]
    c, d = pe[:, :, 1, 0], pe[:, :, 1, 1]
    p0 = jnp.concatenate([a, d], axis=-1)
    p1 = jnp.concatenate([b, c], axis=-1)
    return p0, p1


def prepare_params(params):
    """One-time prep: de-interleave linear1's q/k columns (rotate-half RoPE
    layout), permute the QK-norm scales to match, cast matmul weights to bf16."""
    H, M, D, nh = HIDDEN, MLP_HIDDEN, HEAD_DIM, NUM_HEADS
    perm = np.concatenate([np.arange(0, D, 2), np.arange(1, D, 2)])
    col_perm = np.arange(3 * H + M)
    for h in range(nh):
        col_perm[h * D:(h + 1) * D] = h * D + perm               # q columns
        col_perm[H + h * D:H + (h + 1) * D] = H + h * D + perm   # k columns
    return dict(
        wm=params['wm'], bm=params['bm'],
        w1=params['w1'][:, col_perm].astype(jnp.bfloat16),
        b1=params['b1'][:, col_perm],
        w2=params['w2'].astype(jnp.bfloat16),
        b2=params['b2'],
        qs=params['qs'][:, perm],
        ks_=params['ks_'][:, perm],
    )


def single_stream_block_apply(x, shift, scale1p, gate, p0, p1, prep):
    """x: (N, L, H); shift/scale1p/gate: (N, 1, H); p0/p1: (N, L, D).
    One fused pallas_call; grid = (N,) so each grid step owns a full sequence."""
    N, L, H = x.shape
    D, M, nh = HEAD_DIM, MLP_HIDDEN, NUM_HEADS
    # TODO(synk): a q/kv-tiled flash-attention variant would be needed for the
    # full-size 4096-patch sequence; at the demo L=128 the whole (L,L) score
    # tile and all intermediates fit VMEM comfortably.
    return pl.pallas_call(
        functools.partial(_block_kernel, H=H, M=M, nh=nh, D=D,
                          sm_scale=1.0 / math.sqrt(D)),
        out_shape=jax.ShapeDtypeStruct((N, L, H), jnp.float32),
        grid=(N,),
        in_specs=[
            pl.BlockSpec((1, L, H), lambda b: (b, 0, 0)),        # x (residual)
            pl.BlockSpec((1, 1, H), lambda b: (b, 0, 0)),        # shift
            pl.BlockSpec((1, 1, H), lambda b: (b, 0, 0)),        # 1 + scale
            pl.BlockSpec((1, 1, H), lambda b: (b, 0, 0)),        # gate
            pl.BlockSpec((1, L, D), lambda b: (b, 0, 0)),        # rope p0
            pl.BlockSpec((1, L, D), lambda b: (b, 0, 0)),        # rope p1
            pl.BlockSpec((H, 3 * H + M), lambda b: (0, 0)),      # w1 (VMEM-resident)
            pl.BlockSpec((1, 3 * H + M), lambda b: (0, 0)),      # b1
            pl.BlockSpec((1, D), lambda b: (0, 0)),              # query norm scale
            pl.BlockSpec((1, D), lambda b: (0, 0)),              # key norm scale
            pl.BlockSpec((H + M, H), lambda b: (0, 0)),          # w2 (VMEM-resident)
            pl.BlockSpec((1, H), lambda b: (0, 0)),              # b2
        ],
        out_specs=pl.BlockSpec((1, L, H), lambda b: (b, 0, 0)),
        compiler_params=pltpu.CompilerParams(
            dimension_semantics=("parallel",)),   # batch axis shards over v7x's 2 TCs
    )(x, shift, scale1p, gate, p0, p1,
      prep['w1'], prep['b1'], prep['qs'], prep['ks_'], prep['w2'], prep['b2'])


def modified_single_stream_block(x, concepts, vec, pe, concept_pe, prep):
    """Forward pass of ModifiedSingleStreamBlock. Returns (x_out, concepts_out)."""
    B, L1, H = x.shape
    C = concepts.shape[1]
    D = HEAD_DIM

    img = x[:, -NUM_IMAGE_PATCHES:]
    ic = jnp.concatenate([concepts, img], axis=1)
    L2 = ic.shape[1]

    # Modulation hoisted out of the kernel: tiny (B,H)x(H,3H) matmul; (1+scale)
    # precomputed once here instead of per tile in the kernel.
    mod = jax.nn.silu(vec) @ prep['wm'] + prep['bm']
    shift, scale, gate = (t[:, None, :] for t in jnp.split(mod, 3, axis=-1))
    scale1p = 1.0 + scale

    p0x, p1x = _pe_to_p(pe, L1, D)
    p0c, p1c = _pe_to_p(concept_pe, L2, D)

    if L1 == L2:
        # Batch both block applications into ONE pallas_call (grid = 2B): halves
        # the launch count and doubles grid parallelism.
        xb = jnp.concatenate([x, ic], axis=0)
        p0b = jnp.concatenate([jnp.broadcast_to(p0x[None], (B, L1, D)),
                               jnp.broadcast_to(p0c[None], (B, L2, D))], axis=0)
        p1b = jnp.concatenate([jnp.broadcast_to(p1x[None], (B, L1, D)),
                               jnp.broadcast_to(p1c[None], (B, L2, D))], axis=0)
        two = lambda t: jnp.concatenate([t, t], axis=0)
        out = single_stream_block_apply(xb, two(shift), two(scale1p), two(gate),
                                        p0b, p1b, prep)
        out_x, out_ic = out[:B], out[B:]
    else:
        out_x = single_stream_block_apply(
            x, shift, scale1p, gate,
            jnp.broadcast_to(p0x[None], (B, L1, D)),
            jnp.broadcast_to(p1x[None], (B, L1, D)), prep)
        out_ic = single_stream_block_apply(
            ic, shift, scale1p, gate,
            jnp.broadcast_to(p0c[None], (B, L2, D)),
            jnp.broadcast_to(p1c[None], (B, L2, D)), prep)

    # TODO(synk): cache_vectors (.detach().cpu() host-side caching of attention
    # slices) has no kernel-side equivalent; the attention output could be
    # exposed as an extra pallas_call output if ever needed.
    return out_x, out_ic[:, :C]


# ----------------------------- pure-JAX reference ------------------------------
def _ref_block(x, vec, pe, params):
    """Reference mirroring the kernel's bf16-operand / f32-accumulate precision."""
    H, D, nh = HIDDEN, HEAD_DIM, NUM_HEADS
    B, L, _ = x.shape
    bf16 = jnp.bfloat16
    mod = jax.nn.silu(vec) @ params['wm'] + params['bm']
    shift, scale, gate = (t[:, None, :] for t in jnp.split(mod, 3, axis=-1))
    mu = x.mean(-1, keepdims=True)
    var = ((x - mu) ** 2).mean(-1, keepdims=True)
    xm = (1 + scale) * ((x - mu) * jax.lax.rsqrt(var + LN_EPS)) + shift
    y = jnp.dot(xm.astype(bf16), params['w1'].astype(bf16),
                preferred_element_type=jnp.float32) + params['b1']
    qkv, mlp = y[..., :3 * H], y[..., 3 * H:]
    qkv = qkv.reshape(B, L, 3, nh, D).transpose(2, 0, 3, 1, 4)   # K B H L D
    q, k, v = qkv[0], qkv[1], qkv[2]

    def rms(z, sc):
        return z * jax.lax.rsqrt((z * z).mean(-1, keepdims=True) + RMS_EPS) * sc

    q, k = rms(q, params['qs'][0]), rms(k, params['ks_'][0])
    pe_ = pe.reshape(L, D // 2, 2, 2)

    def rope(z):
        z2 = z.reshape(B, nh, L, D // 2, 2)
        e, o = z2[..., 0], z2[..., 1]
        oute = pe_[:, :, 0, 0] * e + pe_[:, :, 0, 1] * o
        outo = pe_[:, :, 1, 0] * e + pe_[:, :, 1, 1] * o
        return jnp.stack([oute, outo], axis=-1).reshape(B, nh, L, D)

    q, k, v = rope(q).astype(bf16), rope(k).astype(bf16), v.astype(bf16)
    s = jnp.einsum('bhqd,bhkd->bhqk', q, k,
                   preferred_element_type=jnp.float32) / math.sqrt(D)
    p = jax.nn.softmax(s, axis=-1)
    attn = jnp.einsum('bhqk,bhkd->bhqd', p.astype(bf16), v,
                      preferred_element_type=jnp.float32)
    attn = attn.transpose(0, 2, 1, 3).reshape(B, L, nh * D)
    gm = jax.nn.gelu(mlp, approximate=True)
    fused = jnp.concatenate([attn, gm], axis=-1).astype(bf16)
    out = jnp.dot(fused, params['w2'].astype(bf16),
                  preferred_element_type=jnp.float32) + params['b2']
    return x + gate * out


# ---------------------------------- params -------------------------------------
def init_params(key):
    H, M, D = HIDDEN, MLP_HIDDEN, HEAD_DIM
    ks = jax.random.split(key, 6)
    return dict(
        wm=jax.random.normal(ks[0], (H, 3 * H), jnp.float32) / math.sqrt(H),
        bm=jax.random.normal(ks[1], (1, 3 * H), jnp.float32) * 0.1,
        w1=jax.random.normal(ks[2], (H, 3 * H + M), jnp.float32) / math.sqrt(H),
        b1=jax.random.normal(ks[3], (1, 3 * H + M), jnp.float32) * 0.1,
        w2=jax.random.normal(ks[4], (H + M, H), jnp.float32) / math.sqrt(H + M),
        b2=jax.random.normal(ks[5], (1, H), jnp.float32) * 0.1,
        qs=jnp.linspace(0.5, 1.5, D, dtype=jnp.float32).reshape(1, D),
        ks_=jnp.linspace(1.5, 0.5, D, dtype=jnp.float32).reshape(1, D),
    )


def make_pe(L):
    """Deterministic flux-style RoPE tensor (1, 1, L, head_dim/2, 2, 2)."""
    D2 = HEAD_DIM // 2
    pos = jnp.arange(L, dtype=jnp.float32)[:, None]
    freqs = 1.0 / (10000.0 ** (jnp.arange(D2, dtype=jnp.float32) / D2))[None, :]
    ang = pos * freqs
    cos, sin = jnp.cos(ang), jnp.sin(ang)
    pe = jnp.stack([jnp.stack([cos, -sin], -1), jnp.stack([sin, cos], -1)], -2)
    return pe.reshape(1, 1, L, D2, 2, 2)


# ----------------------------------- main --------------------------------------
if __name__ == "__main__":
    key = jax.random.PRNGKey(0)
    k_par, k_x, k_c, k_v = jax.random.split(key, 4)
    params = init_params(k_par)
    prep = prepare_params(params)

    B = 2
    L_TXT = 16
    C = 16                              # number of concept tokens
    L1 = L_TXT + NUM_IMAGE_PATCHES      # 128: full x sequence
    L2 = C + NUM_IMAGE_PATCHES          # 128: concepts + image sequence

    x = jax.random.normal(k_x, (B, L1, HIDDEN), jnp.float32)
    concepts = jax.random.normal(k_c, (B, C, HIDDEN), jnp.float32)
    vec = jax.random.normal(k_v, (B, HIDDEN), jnp.float32)
    pe = make_pe(L1)
    concept_pe = make_pe(L2)

    fwd = jax.jit(modified_single_stream_block)
    out_x, out_c = fwd(x, concepts, vec, pe, concept_pe, prep)
    out_x = jax.block_until_ready(out_x)
    out_c = jax.block_until_ready(out_c)

    # correctness check against a bf16-precision-matched pure-JAX reference
    ref_x = _ref_block(x, vec, pe, params)
    ref_c = _ref_block(jnp.concatenate([concepts, x[:, -NUM_IMAGE_PATCHES:]], axis=1),
                       vec, concept_pe, params)[:, :C]
    np.testing.assert_allclose(np.asarray(out_x), np.asarray(ref_x), rtol=2e-2, atol=2e-2)
    np.testing.assert_allclose(np.asarray(out_c), np.asarray(ref_c), rtol=2e-2, atol=2e-2)

    print("KERNEL_OK")
</pallas_src>

<mosaic_0001>
module attributes {stable_mosaic.version = 11 : i64} {
  func.func @_block_kernel(%arg0: i32, %arg1: memref<1x128x32xf32, #tpu.memory_space<vmem>>, %arg2: memref<1x1x32xf32, #tpu.memory_space<vmem>>, %arg3: memref<1x1x32xf32, #tpu.memory_space<vmem>>, %arg4: memref<1x1x32xf32, #tpu.memory_space<vmem>>, %arg5: memref<1x128x16xf32, #tpu.memory_space<vmem>>, %arg6: memref<1x128x16xf32, #tpu.memory_space<vmem>>, %arg7: memref<32x224xbf16, #tpu.memory_space<vmem>>, %arg8: memref<1x224xf32, #tpu.memory_space<vmem>>, %arg9: memref<1x16xf32, #tpu.memory_space<vmem>>, %arg10: memref<1x16xf32, #tpu.memory_space<vmem>>, %arg11: memref<160x32xbf16, #tpu.memory_space<vmem>>, %arg12: memref<1x32xf32, #tpu.memory_space<vmem>>, %arg13: memref<1x128x32xf32, #tpu.memory_space<vmem>>) attributes {dimension_semantics = [#tpu.dimension_semantics<parallel>], iteration_bounds = array<i64: 4>, scalar_prefetch = 0 : i64, scratch_operands = 0 : i64, tpu.core_type = #tpu.core_type<tc>, window_params = [{transform_indices = @transform_0, window_bounds = array<i64: 1, 128, 32>}, {transform_indices = @transform_1, window_bounds = array<i64: 1, 1, 32>}, {transform_indices = @transform_2, window_bounds = array<i64: 1, 1, 32>}, {transform_indices = @transform_3, window_bounds = array<i64: 1, 1, 32>}, {transform_indices = @transform_4, window_bounds = array<i64: 1, 128, 16>}, {transform_indices = @transform_5, window_bounds = array<i64: 1, 128, 16>}, {pipeline_mode = #tpu.pipeline_mode<synchronous>, transform_indices = @transform_6, window_bounds = array<i64: 32, 224>}, {pipeline_mode = #tpu.pipeline_mode<synchronous>, transform_indices = @transform_7, window_bounds = array<i64: 1, 224>}, {pipeline_mode = #tpu.pipeline_mode<synchronous>, transform_indices = @transform_8, window_bounds = array<i64: 1, 16>}, {pipeline_mode = #tpu.pipeline_mode<synchronous>, transform_indices = @transform_9, window_bounds = array<i64: 1, 16>}, {pipeline_mode = #tpu.pipeline_mode<synchronous>, transform_indices = @transform_10, window_bounds = array<i64: 160, 32>}, {pipeline_mode = #tpu.pipeline_mode<synchronous>, transform_indices = @transform_11, window_bounds = array<i64: 1, 32>}, {transform_indices = @transform_12, window_bounds = array<i64: 1, 128, 32>}]} {
    %c0 = arith.constant 0 : index
    %c0_0 = arith.constant 0 : index
    %c0_1 = arith.constant 0 : index
    %0 = vector.load %arg1[%c0, %c0_0, %c0_1] : memref<1x128x32xf32, #tpu.memory_space<vmem>>, vector<1x128x32xf32>
    %1 = vector.shape_cast %0 : vector<1x128x32xf32> to vector<128x32xf32>
    %c0_2 = arith.constant 0 : index
    %c0_3 = arith.constant 0 : index
    %c0_4 = arith.constant 0 : index
    %2 = vector.load %arg2[%c0_2, %c0_3, %c0_4] : memref<1x1x32xf32, #tpu.memory_space<vmem>>, vector<1x1x32xf32>
    %3 = vector.shape_cast %2 : vector<1x1x32xf32> to vector<1x32xf32>
    %c0_5 = arith.constant 0 : index
    %c0_6 = arith.constant 0 : index
    %c0_7 = arith.constant 0 : index
    %4 = vector.load %arg3[%c0_5, %c0_6, %c0_7] : memref<1x1x32xf32, #tpu.memory_space<vmem>>, vector<1x1x32xf32>
    %5 = vector.shape_cast %4 : vector<1x1x32xf32> to vector<1x32xf32>
    %c0_8 = arith.constant 0 : index
    %c0_9 = arith.constant 0 : index
    %c0_10 = arith.constant 0 : index
    %6 = vector.load %arg4[%c0_8, %c0_9, %c0_10] : memref<1x1x32xf32, #tpu.memory_space<vmem>>, vector<1x1x32xf32>
    %7 = vector.shape_cast %6 : vector<1x1x32xf32> to vector<1x32xf32>
    %cst = arith.constant dense<0.000000e+00> : vector<128xf32>
    %8 = vector.multi_reduction <add>, %1, %cst [1] : vector<128x32xf32> to vector<128xf32>
    %9 = vector.shape_cast %8 : vector<128xf32> to vector<128x1xf32>
    %cst_11 = arith.constant 3.200000e+01 : f32
    %10 = vector.broadcast %cst_11 : f32 to vector<128x1xf32>
    %11 = arith.divf %9, %10 : vector<128x1xf32>
    %12 = vector.broadcast %11 : vector<128x1xf32> to vector<128x32xf32>
    %13 = arith.subf %1, %12 : vector<128x32xf32>
    %14 = arith.mulf %13, %13 : vector<128x32xf32>
    %cst_12 = arith.constant dense<0.000000e+00> : vector<128xf32>
    %15 = vector.multi_reduction <add>, %14, %cst_12 [1] : vector<128x32xf32> to vector<128xf32>
    %16 = vector.shape_cast %15 : vector<128xf32> to vector<128x1xf32>
    %cst_13 = arith.constant 3.200000e+01 : f32
    %17 = vector.broadcast %cst_13 : f32 to vector<128x1xf32>
    %18 = arith.divf %16, %17 : vector<128x1xf32>
    %19 = vector.broadcast %11 : vector<128x1xf32> to vector<128x32xf32>
    %20 = arith.subf %1, %19 : vector<128x32xf32>
    %cst_14 = arith.constant 9.99999997E-7 : f32
    %21 = vector.broadcast %cst_14 : f32 to vector<128x1xf32>
    %22 = arith.addf %18, %21 : vector<128x1xf32>
    %23 = math.rsqrt %22 : vector<128x1xf32>
    %24 = vector.broadcast %23 : vector<128x1xf32> to vector<128x32xf32>
    %25 = arith.mulf %20, %24 : vector<128x32xf32>
    %26 = vector.broadcast %5 : vector<1x32xf32> to vector<128x32xf32>
    %27 = arith.mulf %26, %25 : vector<128x32xf32>
    %28 = vector.broadcast %3 : vector<1x32xf32> to vector<128x32xf32>
    %29 = arith.addf %27, %28 : vector<128x32xf32>
    %30 = arith.truncf %29 : vector<128x32xf32> to vector<128x32xbf16>
    %c0_15 = arith.constant 0 : index
    %c0_16 = arith.constant 0 : index
    %31 = vector.load %arg7[%c0_15, %c0_16] : memref<32x224xbf16, #tpu.memory_space<vmem>>, vector<32x224xbf16>
    %cst_17 = arith.constant dense<0.000000e+00> : vector<128x224xf32>
    %32 = tpu.matmul %30, %31, %cst_17 {dimension_numbers = #tpu.dot_dimension_numbers<[1], [0], [0], [1], [0, 0, 1, 1], [], []>} : vector<128x32xbf16>, vector<32x224xbf16>, vector<128x224xf32> -> vector<128x224xf32>
    %c0_18 = arith.constant 0 : index
    %c0_19 = arith.constant 0 : index
    %33 = vector.load %arg8[%c0_18, %c0_19] : memref<1x224xf32, #tpu.memory_space<vmem>>, vector<1x224xf32>
    %34 = vector.broadcast %33 : vector<1x224xf32> to vector<128x224xf32>
    %35 = arith.addf %32, %34 : vector<128x224xf32>
    %c0_20 = arith.constant 0 : index
    %c0_21 = arith.constant 0 : index
    %c0_22 = arith.constant 0 : index
    %36 = vector.load %arg5[%c0_20, %c0_21, %c0_22] : memref<1x128x16xf32, #tpu.memory_space<vmem>>, vector<1x128x16xf32>
    %37 = vector.shape_cast %36 : vector<1x128x16xf32> to vector<128x16xf32>
    %c0_23 = arith.constant 0 : index
    %c0_24 = arith.constant 0 : index
    %c0_25 = arith.constant 0 : index
    %38 = vector.load %arg6[%c0_23, %c0_24, %c0_25] : memref<1x128x16xf32, #tpu.memory_space<vmem>>, vector<1x128x16xf32>
    %39 = vector.shape_cast %38 : vector<1x128x16xf32> to vector<128x16xf32>
    %c0_26 = arith.constant 0 : index
    %c0_27 = arith.constant 0 : index
    %40 = vector.load %arg9[%c0_26, %c0_27] : memref<1x16xf32, #tpu.memory_space<vmem>>, vector<1x16xf32>
    %c0_28 = arith.constant 0 : index
    %c0_29 = arith.constant 0 : index
    %41 = vector.load %arg10[%c0_28, %c0_29] : memref<1x16xf32, #tpu.memory_space<vmem>>, vector<1x16xf32>
    %42 = vector.extract_strided_slice %35 {offsets = [0, 0], sizes = [128, 16], strides = [1, 1]} : vector<128x224xf32> to vector<128x16xf32>
    %43 = vector.extract_strided_slice %35 {offsets = [0, 32], sizes = [128, 16], strides = [1, 1]} : vector<128x224xf32> to vector<128x16xf32>
    %44 = vector.extract_strided_slice %35 {offsets = [0, 64], sizes = [128, 16], strides = [1, 1]} : vector<128x224xf32> to vector<128x16xf32>
    %45 = arith.mulf %42, %42 : vector<128x16xf32>
    %cst_30 = arith.constant dense<0.000000e+00> : vector<128xf32>
    %46 = vector.multi_reduction <add>, %45, %cst_30 [1] : vector<128x16xf32> to vector<128xf32>
    %47 = vector.shape_cast %46 : vector<128xf32> to vector<128x1xf32>
    %cst_31 = arith.constant 1.600000e+01 : f32
    %48 = vector.broadcast %cst_31 : f32 to vector<128x1xf32>
    %49 = arith.divf %47, %48 : vector<128x1xf32>
    %cst_32 = arith.constant 9.99999997E-7 : f32
    %50 = vector.broadcast %cst_32 : f32 to vector<128x1xf32>
    %51 = arith.addf %49, %50 : vector<128x1xf32>
    %52 = math.rsqrt %51 : vector<128x1xf32>
    %53 = vector.broadcast %52 : vector<128x1xf32> to vector<128x16xf32>
    %54 = arith.mulf %42, %53 : vector<128x16xf32>
    %55 = vector.broadcast %40 : vector<1x16xf32> to vector<128x16xf32>
    %56 = arith.mulf %54, %55 : vector<128x16xf32>
    %57 = arith.mulf %43, %43 : vector<128x16xf32>
    %cst_33 = arith.constant dense<0.000000e+00> : vector<128xf32>
    %58 = vector.multi_reduction <add>, %57, %cst_33 [1] : vector<128x16xf32> to vector<128xf32>
    %59 = vector.shape_cast %58 : vector<128xf32> to vector<128x1xf32>
    %cst_34 = arith.constant 1.600000e+01 : f32
    %60 = vector.broadcast %cst_34 : f32 to vector<128x1xf32>
    %61 = arith.divf %59, %60 : vector<128x1xf32>
    %cst_35 = arith.constant 9.99999997E-7 : f32
    %62 = vector.broadcast %cst_35 : f32 to vector<128x1xf32>
    %63 = arith.addf %61, %62 : vector<128x1xf32>
    %64 = math.rsqrt %63 : vector<128x1xf32>
    %65 = vector.broadcast %64 : vector<128x1xf32> to vector<128x16xf32>
    %66 = arith.mulf %43, %65 : vector<128x16xf32>
    %67 = vector.broadcast %41 : vector<1x16xf32> to vector<128x16xf32>
    %68 = arith.mulf %66, %67 : vector<128x16xf32>
    %69 = arith.mulf %37, %56 : vector<128x16xf32>
    %70 = vector.extract_strided_slice %56 {offsets = [0, 8], sizes = [128, 8], strides = [1, 1]} : vector<128x16xf32> to vector<128x8xf32>
    %71 = vector.extract_strided_slice %56 {offsets = [0, 0], sizes = [128, 8], strides = [1, 1]} : vector<128x16xf32> to vector<128x8xf32>
    %72 = tpu.concatenate %70, %71 in 1 : vector<128x8xf32>, vector<128x8xf32> -> vector<128x16xf32>
    %73 = arith.mulf %39, %72 : vector<128x16xf32>
    %74 = arith.addf %69, %73 : vector<128x16xf32>
    %75 = arith.mulf %37, %68 : vector<128x16xf32>
    %76 = vector.extract_strided_slice %68 {offsets = [0, 8], sizes = [128, 8], strides = [1, 1]} : vector<128x16xf32> to vector<128x8xf32>
    %77 = vector.extract_strided_slice %68 {offsets = [0, 0], sizes = [128, 8], strides = [1, 1]} : vector<128x16xf32> to vector<128x8xf32>
    %78 = tpu.concatenate %76, %77 in 1 : vector<128x8xf32>, vector<128x8xf32> -> vector<128x16xf32>
    %79 = arith.mulf %39, %78 : vector<128x16xf32>
    %80 = arith.addf %75, %79 : vector<128x16xf32>
    %81 = arith.truncf %74 : vector<128x16xf32> to vector<128x16xbf16>
    %82 = arith.truncf %80 : vector<128x16xf32> to vector<128x16xbf16>
    %cst_36 = arith.constant dense<0.000000e+00> : vector<128x128xf32>
    %83 = tpu.matmul %81, %82, %cst_36 {dimension_numbers = #tpu.dot_dimension_numbers<[1], [1], [0], [0], [0, 0, 1, 0], [], []>} : vector<128x16xbf16>, vector<128x16xbf16>, vector<128x128xf32> -> vector<128x128xf32>
    %cst_37 = arith.constant 2.500000e-01 : f32
    %84 = vector.broadcast %cst_37 : f32 to vector<128x128xf32>
    %85 = arith.mulf %83, %84 : vector<128x128xf32>
    %cst_38 = arith.constant dense<0xFF800000> : vector<128xf32>
    %86 = vector.multi_reduction <maximumf>, %85, %cst_38 [1] : vector<128x128xf32> to vector<128xf32>
    %87 = vector.shape_cast %86 : vector<128xf32> to vector<128x1xf32>
    %88 = vector.broadcast %87 : vector<128x1xf32> to vector<128x128xf32>
    %89 = arith.subf %85, %88 : vector<128x128xf32>
    %90 = math.exp %89 : vector<128x128xf32>
    %cst_39 = arith.constant dense<0.000000e+00> : vector<128xf32>
    %91 = vector.multi_reduction <add>, %90, %cst_39 [1] : vector<128x128xf32> to vector<128xf32>
    %92 = vector.shape_cast %91 : vector<128xf32> to vector<128x1xf32>
    %93 = tpu.reciprocal %92 {approx = true} : vector<128x1xf32> -> vector<128x1xf32>
    %94 = vector.broadcast %93 : vector<128x1xf32> to vector<128x128xf32>
    %95 = arith.mulf %90, %94 : vector<128x128xf32>
    %96 = arith.truncf %95 : vector<128x128xf32> to vector<128x128xbf16>
    %97 = arith.truncf %44 : vector<128x16xf32> to vector<128x16xbf16>
    %cst_40 = arith.constant dense<0.000000e+00> : vector<128x16xf32>
    %98 = tpu.matmul %96, %97, %cst_40 {dimension_numbers = #tpu.dot_dimension_numbers<[1], [0], [0], [1], [0, 0, 1, 1], [], []>} : vector<128x128xbf16>, vector<128x16xbf16>, vector<128x16xf32> -> vector<128x16xf32>
    %99 = vector.extract_strided_slice %35 {offsets = [0, 16], sizes = [128, 16], strides = [1, 1]} : vector<128x224xf32> to vector<128x16xf32>
    %100 = vector.extract_strided_slice %35 {offsets = [0, 48], sizes = [128, 16], strides = [1, 1]} : vector<128x224xf32> to vector<128x16xf32>
    %101 = vector.extract_strided_slice %35 {offsets = [0, 80], sizes = [128, 16], strides = [1, 1]} : vector<128x224xf32> to vector<128x16xf32>
    %102 = arith.mulf %99, %99 : vector<128x16xf32>
    %cst_41 = arith.constant dense<0.000000e+00> : vector<128xf32>
    %103 = vector.multi_reduction <add>, %102, %cst_41 [1] : vector<128x16xf32> to vector<128xf32>
    %104 = vector.shape_cast %103 : vector<128xf32> to vector<128x1xf32>
    %cst_42 = arith.constant 1.600000e+01 : f32
    %105 = vector.broadcast %cst_42 : f32 to vector<128x1xf32>
    %106 = arith.divf %104, %105 : vector<128x1xf32>
    %cst_43 = arith.constant 9.99999997E-7 : f32
    %107 = vector.broadcast %cst_43 : f32 to vector<128x1xf32>
    %108 = arith.addf %106, %107 : vector<128x1xf32>
    %109 = math.rsqrt %108 : vector<128x1xf32>
    %110 = vector.broadcast %109 : vector<128x1xf32> to vector<128x16xf32>
    %111 = arith.mulf %99, %110 : vector<128x16xf32>
    %112 = vector.broadcast %40 : vector<1x16xf32> to vector<128x16xf32>
    %113 = arith.mulf %111, %112 : vector<128x16xf32>
    %114 = arith.mulf %100, %100 : vector<128x16xf32>
    %cst_44 = arith.constant dense<0.000000e+00> : vector<128xf32>
    %115 = vector.multi_reduction <add>, %114, %cst_44 [1] : vector<128x16xf32> to vector<128xf32>
    %116 = vector.shape_cast %115 : vector<128xf32> to vector<128x1xf32>
    %cst_45 = arith.constant 1.600000e+01 : f32
    %117 = vector.broadcast %cst_45 : f32 to vector<128x1xf32>
    %118 = arith.divf %116, %117 : vector<128x1xf32>
    %cst_46 = arith.constant 9.99999997E-7 : f32
    %119 = vector.broadcast %cst_46 : f32 to vector<128x1xf32>
    %120 = arith.addf %118, %119 : vector<128x1xf32>
    %121 = math.rsqrt %120 : vector<128x1xf32>
    %122 = vector.broadcast %121 : vector<128x1xf32> to vector<128x16xf32>
    %123 = arith.mulf %100, %122 : vector<128x16xf32>
    %124 = vector.broadcast %41 : vector<1x16xf32> to vector<128x16xf32>
    %125 = arith.mulf %123, %124 : vector<128x16xf32>
    %126 = arith.mulf %37, %113 : vector<128x16xf32>
    %127 = vector.extract_strided_slice %113 {offsets = [0, 8], sizes = [128, 8], strides = [1, 1]} : vector<128x16xf32> to vector<128x8xf32>
    %128 = vector.extract_strided_slice %113 {offsets = [0, 0], sizes = [128, 8], strides = [1, 1]} : vector<128x16xf32> to vector<128x8xf32>
    %129 = tpu.concatenate %127, %128 in 1 : vector<128x8xf32>, vector<128x8xf32> -> vector<128x16xf32>
    %130 = arith.mulf %39, %129 : vector<128x16xf32>
    %131 = arith.addf %126, %130 : vector<128x16xf32>
    %132 = arith.mulf %37, %125 : vector<128x16xf32>
    %133 = vector.extract_strided_slice %125 {offsets = [0, 8], sizes = [128, 8], strides = [1, 1]} : vector<128x16xf32> to vector<128x8xf32>
    %134 = vector.extract_strided_slice %125 {offsets = [0, 0], sizes = [128, 8], strides = [1, 1]} : vector<128x16xf32> to vector<128x8xf32>
    %135 = tpu.concatenate %133, %134 in 1 : vector<128x8xf32>, vector<128x8xf32> -> vector<128x16xf32>
    %136 = arith.mulf %39, %135 : vector<128x16xf32>
    %137 = arith.addf %132, %136 : vector<128x16xf32>
    %138 = arith.truncf %131 : vector<128x16xf32> to vector<128x16xbf16>
    %139 = arith.truncf %137 : vector<128x16xf32> to vector<128x16xbf16>
    %cst_47 = arith.constant dense<0.000000e+00> : vector<128x128xf32>
    %140 = tpu.matmul %138, %139, %cst_47 {dimension_numbers = #tpu.dot_dimension_numbers<[1], [1], [0], [0], [0, 0, 1, 0], [], []>} : vector<128x16xbf16>, vector<128x16xbf16>, vector<128x128xf32> -> vector<128x128xf32>
    %cst_48 = arith.constant 2.500000e-01 : f32
    %141 = vector.broadcast %cst_48 : f32 to vector<128x128xf32>
    %142 = arith.mulf %140, %141 : vector<128x128xf32>
    %cst_49 = arith.constant dense<0xFF800000> : vector<128xf32>
    %143 = vector.multi_reduction <maximumf>, %142, %cst_49 [1] : vector<128x128xf32> to vector<128xf32>
    %144 = vector.shape_cast %143 : vector<128xf32> to vector<128x1xf32>
    %145 = vector.broadcast %144 : vector<128x1xf32> to vector<128x128xf32>
    %146 = arith.subf %142, %145 : vector<128x128xf32>
    %147 = math.exp %146 : vector<128x128xf32>
    %cst_50 = arith.constant dense<0.000000e+00> : vector<128xf32>
    %148 = vector.multi_reduction <add>, %147, %cst_50 [1] : vector<128x128xf32> to vector<128xf32>
    %149 = vector.shape_cast %148 : vector<128xf32> to vector<128x1xf32>
    %150 = tpu.reciprocal %149 {approx = true} : vector<128x1xf32> -> vector<128x1xf32>
    %151 = vector.broadcast %150 : vector<128x1xf32> to vector<128x128xf32>
    %152 = arith.mulf %147, %151 : vector<128x128xf32>
    %153 = arith.truncf %152 : vector<128x128xf32> to vector<128x128xbf16>
    %154 = arith.truncf %101 : vector<128x16xf32> to vector<128x16xbf16>
    %cst_51 = arith.constant dense<0.000000e+00> : vector<128x16xf32>
    %155 = tpu.matmul %153, %154, %cst_51 {dimension_numbers = #tpu.dot_dimension_numbers<[1], [0], [0], [1], [0, 0, 1, 1], [], []>} : vector<128x128xbf16>, vector<128x16xbf16>, vector<128x16xf32> -> vector<128x16xf32>
    %156 = tpu.concatenate %98, %155 in 1 : vector<128x16xf32>, vector<128x16xf32> -> vector<128x32xf32>
    %157 = vector.extract_strided_slice %35 {offsets = [0, 96], sizes = [128, 128], strides = [1, 1]} : vector<128x224xf32> to vector<128x128xf32>
    %158 = arith.mulf %157, %157 : vector<128x128xf32>
    %159 = arith.mulf %157, %158 : vector<128x128xf32>
    %cst_52 = arith.constant 4.471500e-02 : f32
    %160 = vector.broadcast %cst_52 : f32 to vector<128x128xf32>
    %161 = arith.mulf %160, %159 : vector<128x128xf32>
    %162 = arith.addf %157, %161 : vector<128x128xf32>
    %cst_53 = arith.constant 0.797884583 : f32
    %163 = vector.broadcast %cst_53 : f32 to vector<128x128xf32>
    %164 = arith.mulf %163, %162 : vector<128x128xf32>
    %165 = math.tanh %164 : vector<128x128xf32>
    %cst_54 = arith.constant 1.000000e+00 : f32
    %166 = vector.broadcast %cst_54 : f32 to vector<128x128xf32>
    %167 = arith.addf %166, %165 : vector<128x128xf32>
    %cst_55 = arith.constant 5.000000e-01 : f32
    %168 = vector.broadcast %cst_55 : f32 to vector<128x128xf32>
    %169 = arith.mulf %168, %167 : vector<128x128xf32>
    %170 = arith.mulf %157, %169 : vector<128x128xf32>
    %171 = tpu.concatenate %156, %170 in 1 : vector<128x32xf32>, vector<128x128xf32> -> vector<128x160xf32>
    %172 = arith.truncf %171 : vector<128x160xf32> to vector<128x160xbf16>
    %c0_56 = arith.constant 0 : index
    %c0_57 = arith.constant 0 : index
    %173 = vector.load %arg11[%c0_56, %c0_57] : memref<160x32xbf16, #tpu.memory_space<vmem>>, vector<160x32xbf16>
    %cst_58 = arith.constant dense<0.000000e+00> : vector<128x32xf32>
    %174 = tpu.matmul %172, %173, %cst_58 {dimension_numbers = #tpu.dot_dimension_numbers<[1], [0], [0], [1], [0, 0, 1, 1], [], []>} : vector<128x160xbf16>, vector<160x32xbf16>, vector<128x32xf32> -> vector<128x32xf32>
    %c0_59 = arith.constant 0 : index
    %c0_60 = arith.constant 0 : index
    %175 = vector.load %arg12[%c0_59, %c0_60] : memref<1x32xf32, #tpu.memory_space<vmem>>, vector<1x32xf32>
    %176 = vector.broadcast %175 : vector<1x32xf32> to vector<128x32xf32>
    %177 = arith.addf %174, %176 : vector<128x32xf32>
    %178 = vector.broadcast %7 : vector<1x32xf32> to vector<128x32xf32>
    %179 = arith.mulf %178, %177 : vector<128x32xf32>
    %180 = arith.addf %1, %179 : vector<128x32xf32>
    %c0_61 = arith.constant 0 : index
    %c0_62 = arith.constant 0 : index
    %c0_63 = arith.constant 0 : index
    %181 = vector.load %arg13[%c0_61, %c0_62, %c0_63] : memref<1x128x32xf32, #tpu.memory_space<vmem>>, vector<1x128x32xf32>
    %182 = vector.shape_cast %181 : vector<1x128x32xf32> to vector<128x32xf32>
    %183 = vector.shape_cast %180 : vector<128x32xf32> to vector<1x128x32xf32>
    tpu.vector_store %arg13[%c0_61, %c0_62, %c0_63], %183 {strides = array<i32>} : memref<1x128x32xf32, #tpu.memory_space<vmem>>, vector<1x128x32xf32>,
    return
  }
  func.func @transform_0(%arg0: i32) -> (i32, i32, i32) {
    %c0_i32 = arith.constant 0 : i32
    %c0_i32_0 = arith.constant 0 : i32
    %c0_i32_1 = arith.constant 0 : i32
    return %arg0, %c0_i32, %c0_i32_0 : i32, i32, i32
  }
  func.func @transform_1(%arg0: i32) -> (i32, i32, i32) {
    %c0_i32 = arith.constant 0 : i32
    %c0_i32_0 = arith.constant 0 : i32
    %c0_i32_1 = arith.constant 0 : i32
    return %arg0, %c0_i32, %c0_i32_0 : i32, i32, i32
  }
  func.func @transform_2(%arg0: i32) -> (i32, i32, i32) {
    %c0_i32 = arith.constant 0 : i32
    %c0_i32_0 = arith.constant 0 : i32
    %c0_i32_1 = arith.constant 0 : i32
    return %arg0, %c0_i32, %c0_i32_0 : i32, i32, i32
  }
  func.func @transform_3(%arg0: i32) -> (i32, i32, i32) {
    %c0_i32 = arith.constant 0 : i32
    %c0_i32_0 = arith.constant 0 : i32
    %c0_i32_1 = arith.constant 0 : i32
    return %arg0, %c0_i32, %c0_i32_0 : i32, i32, i32
  }
  func.func @transform_4(%arg0: i32) -> (i32, i32, i32) {
    %c0_i32 = arith.constant 0 : i32
    %c0_i32_0 = arith.constant 0 : i32
    %c0_i32_1 = arith.constant 0 : i32
    return %arg0, %c0_i32, %c0_i32_0 : i32, i32, i32
  }
  func.func @transform_5(%arg0: i32) -> (i32, i32, i32) {
    %c0_i32 = arith.constant 0 : i32
    %c0_i32_0 = arith.constant 0 : i32
    %c0_i32_1 = arith.constant 0 : i32
    return %arg0, %c0_i32, %c0_i32_0 : i32, i32, i32
  }
  func.func @transform_6(%arg0: i32) -> (i32, i32) {
    %c0_i32 = arith.constant 0 : i32
    %c0_i32_0 = arith.constant 0 : i32
    %c0_i32_1 = arith.constant 0 : i32
    return %c0_i32, %c0_i32_0 : i32, i32
  }
  func.func @transform_7(%arg0: i32) -> (i32, i32) {
    %c0_i32 = arith.constant 0 : i32
    %c0_i32_0 = arith.constant 0 : i32
    %c0_i32_1 = arith.constant 0 : i32
    return %c0_i32, %c0_i32_0 : i32, i32
  }
  func.func @transform_8(%arg0: i32) -> (i32, i32) {
    %c0_i32 = arith.constant 0 : i32
    %c0_i32_0 = arith.constant 0 : i32
    %c0_i32_1 = arith.constant 0 : i32
    return %c0_i32, %c0_i32_0 : i32, i32
  }
  func.func @transform_9(%arg0: i32) -> (i32, i32) {
    %c0_i32 = arith.constant 0 : i32
    %c0_i32_0 = arith.constant 0 : i32
    %c0_i32_1 = arith.constant 0 : i32
    return %c0_i32, %c0_i32_0 : i32, i32
  }
  func.func @transform_10(%arg0: i32) -> (i32, i32) {
    %c0_i32 = arith.constant 0 : i32
    %c0_i32_0 = arith.constant 0 : i32
    %c0_i32_1 = arith.constant 0 : i32
    return %c0_i32, %c0_i32_0 : i32, i32
  }
  func.func @transform_11(%arg0: i32) -> (i32, i32) {
    %c0_i32 = arith.constant 0 : i32
    %c0_i32_0 = arith.constant 0 : i32
    %c0_i32_1 = arith.constant 0 : i32
    return %c0_i32, %c0_i32_0 : i32, i32
  }
  func.func @transform_12(%arg0: i32) -> (i32, i32, i32) {
    %c0_i32 = arith.constant 0 : i32
    %c0_i32_0 = arith.constant 0 : i32
    %c0_i32_1 = arith.constant 0 : i32
    return %arg0, %c0_i32, %c0_i32_0 : i32, i32, i32
  }
}

</mosaic_0001>

<bundles_post_ra>
// kernel: modified_single_stream_block.1
= control target key start
LH: loop header
LB: loop body
LE: loop exit
PB: predicated region body
PF: predicated region fallthrough
CT: control target
= control target key end

     0   :  { %s5279_s21 = smov 0   ;;  %s7746_s0 = inlined_call_operand.vmem [shape: f32[4,128,32], index: 0, kind: input, shape index: {}]   ;;  %s7747_s1 = inlined_call_operand.vmem [shape: f32[4,1,32], index: 1, kind: input, shape index: {}]   ;;  %s7748_s2 = inlined_call_operand.vmem [shape: f32[4,1,32], index: 2, kind: input, shape index: {}]   ;;  %s7749_s3 = inlined_call_operand.vmem [shape: f32[4,1,32], index: 3, kind: input, shape index: {}]   ;;  %s7750_s4 = inlined_call_operand.vmem [shape: f32[4,128,16], index: 4, kind: input, shape index: {}]   ;;  %s7751_s5 = inlined_call_operand.vmem [shape: f32[4,128,16], index: 5, kind: input, shape index: {}]   ;;  %s7752_s6 = inlined_call_operand.vmem [shape: bf16[32,224], index: 6, kind: input, shape index: {}]   ;;  %s7753_s7 = inlined_call_operand.vmem [shape: f32[1,224], index: 7, kind: input, shape index: {}]   ;;  %s7754_s8 = inlined_call_operand.vmem [shape: f32[1,16], index: 8, kind: input, shape index: {}]   ;;  %s7755_s9 = inlined_call_operand.vmem [shape: f32[1,16], index: 9, kind: input, shape index: {}]   ;;  %s7756_s10 = inlined_call_operand.vmem [shape: bf16[160,32], index: 10, kind: input, shape index: {}]   ;;  %s7757_s11 = inlined_call_operand.vmem [shape: f32[1,32], index: 11, kind: input, shape index: {}]   ;;  %s7758_s12 = inlined_call_operand.vmem [shape: f32[4,128,32], index: 12, kind: output, shape index: {}]  }
   0x1 LB: > { %s4357_s22 = sadd.s32 4294967295, %s5199_s21   ;;  %p4361_p0 = scmp.ge.s32.totalorder %s5199_s21, 1  ;;  %s5199_s21 = sphi %s5279_s21, %s22_s21  }
   0x2   : > { %p406_p1 = scmp.lt.s32.totalorder %s5199_s21, 5 }
   0x4   : > { %p407_p2 = pnand %p4361_p0, %p406_p1 }
   0x6   : > { %410 = sbr.rel (%p407_p2) target bundleno = 3148 (0xc4c), region = 68 }
   0xd   : > { %p467_p3 = scmp.lt.s32.totalorder %s4357_s22, 3  ;;  %vm516_vm0 = vcmask 261120   ;;  %v4385_v32 = vld [vmem:[%s7755_s9] ss:$0 sm:$0xff]  ;;  %s5201_s29 = smov 48   ;;  %vm1001_vm1 = vcmask 130048  }
   0xe   : > { %s5202_s30 = smov 32   ;;  %s5204_s16 = smov 112   ;;  %vm1465_vm2 = vcmask 64512   ;;  %vm3908_vm3 = vcmask 523264  }
   0xf   : > { %s8024_s22 = smov (!%p467_p3, %s4357_s22), 3  ;;  %s5205_s17 = smov 96  }
  0x10   : > { %s5290_s23 = sshll.u32 %s8024_s22, 7  ;;  %s477_s27 = scalar_lea.vmem %s7748_s2, %s8024_s22 }
  0x11   : > { %s5296_s26 = scalar_lea.vmem %s7746_s0, %s5290_s23  ;;  %s474_s13 = scalar_lea.vmem %s7747_s1, %s8024_s22 }
  0x12   : > { %v497_v0 = vld [vmem:[%s5296_s26] sm:$0xff]  ;;  %v499_v1 = vld [vmem:[%s5296_s26 + $0x10] sm:$0xff]  ;;  %v5301_v2 = vld [vmem:[%s5296_s26 + $0x8] sm:$0xff]  ;;  %s5206_s18 = smov 80   ;;  %s5207_s19 = smov 104  }
  0x13   : > { %v517_v3 = vsel %vm516_vm0, %v497_v0, 0.0  ;;  %v523_v4 = vsel %vm516_vm0, %v499_v1, 0.0  ;;  %v500_v5 = vld [vmem:[%s5296_s26 + $0x18] sm:$0xff]  ;;  %v5307_v6 = vld [vmem:[%s5296_s26 + $0x20] sm:$0xff]  ;;  %v520_v7 = vsel %vm516_vm0, %v5301_v2, 0.0  ;;  %v5313_v9 = vld [vmem:[%s5296_s26 + $0x28] sm:$0xff]  ;;  %s480_s15 = scalar_lea.vmem %s7749_s3, %s8024_s22  ;;  %s7664_s22 = scalar_lea.vmem %s7758_s12, %s5290_s23 }
  0x14   : > { %518 = vadd.xlane.f32.xlu0 %v517_v3  ;;  %524 = vadd.xlane.f32.xlu1 %v523_v4  ;;  %v526_v8 = vsel %vm516_vm0, %v500_v5, 0.0  ;;  %v529_v10 = vsel %vm516_vm0, %v5307_v6, 0.0  ;;  %v532_v11 = vsel %vm516_vm0, %v5313_v9, 0.0  ;;  %v5320_v12 = vld [vmem:[%s5296_s26 + $0x30] sm:$0xff]  ;;  %v5323_v13 = vld [vmem:[%s5296_s26 + $0x38] sm:$0xff]  ;;  %v5330_v16 = vld [vmem:[%s5296_s26 + $0x40] sm:$0xff] }
  0x15   : > { %v535_v14 = vsel %vm516_vm0, %v5320_v12, 0.0  ;;  %v538_v15 = vsel %vm516_vm0, %v5323_v13, 0.0  ;;  %v5333_v17 = vld [vmem:[%s5296_s26 + $0x48] sm:$0xff]  ;;  %v541_v18 = vsel %vm516_vm0, %v5330_v16, 0.0  ;;  %v5340_v20 = vld [vmem:[%s5296_s26 + $0x50] sm:$0xff]  ;;  %v5343_v21 = vld [vmem:[%s5296_s26 + $0x58] sm:$0xff] }
  0x16   : > { %v544_v19 = vsel %vm516_vm0, %v5333_v17, 0.0  ;;  %v547_v22 = vsel %vm516_vm0, %v5340_v20, 0.0  ;;  %v550_v23 = vsel %vm516_vm0, %v5343_v21, 0.0  ;;  %v5350_v24 = vld [vmem:[%s5296_s26 + $0x60] sm:$0xff]  ;;  %v5353_v25 = vld [vmem:[%s5296_s26 + $0x68] sm:$0xff]  ;;  %v5360_v28 = vld [vmem:[%s5296_s26 + $0x70] sm:$0xff] }
  0x17   : > { %v553_v26 = vsel %vm516_vm0, %v5350_v24, 0.0  ;;  %v556_v27 = vsel %vm516_vm0, %v5353_v25, 0.0  ;;  %v5363_v29 = vld [vmem:[%s5296_s26 + $0x78] sm:$0xff]  ;;  %v559_v30 = vsel %vm516_vm0, %v5360_v28, 0.0  ;;  %s5208_s20 = smov 88   ;;  %s5209_s24 = smov 120  }
  0x18   : > { %521 = vadd.xlane.f32.xlu0 %v520_v7  ;;  %527 = vadd.xlane.f32.xlu1 %v526_v8  ;;  %v562_v31 = vsel %vm516_vm0, %v5363_v29, 0.0  ;;  %s5210_s25 = smov 8   ;;  %s5211_s28 = smov 72  }
  0x1c   : > { %530 = vadd.xlane.f32.xlu0 %v529_v10  ;;  %533 = vadd.xlane.f32.xlu1 %v532_v11 }
  0x20   : > { %536 = vadd.xlane.f32.xlu0 %v535_v14  ;;  %539 = vadd.xlane.f32.xlu1 %v538_v15 }
  0x24   : > { %542 = vadd.xlane.f32.xlu0 %v541_v18  ;;  %545 = vadd.xlane.f32.xlu1 %v544_v19 }
  0x28   : > { %548 = vadd.xlane.f32.xlu0 %v547_v22  ;;  %551 = vadd.xlane.f32.xlu1 %v550_v23 }
  0x2c   : > { %554 = vadd.xlane.f32.xlu0 %v553_v26  ;;  %557 = vadd.xlane.f32.xlu1 %v556_v27 }
  0x30   : > { %560 = vadd.xlane.f32.xlu0 %v559_v30  ;;  %563 = vadd.xlane.f32.xlu1 %v562_v31 }
  0x41   : > { %2543 = vrot.lane.b32.xlu1 %v4385_v32, %s5201_s29 }
  0x46   : > { %1318 = vrot.lane.b32.xlu0 %v4385_v32, %s5202_s30 }
  0xa1   : > { %v519_v33 = vpop.xlane.xlu0 %518  ;;  %v525_v34 = vpop.xlane.xlu1 %524 }
  0xa2   : > { %v566_v35 = vmul.f32 0.03125, %v519_v33  ;;  %v568_v36 = vmul.f32 0.03125, %v525_v34 }
  0xa4   : > { %v5373_v37 = vsub.f32 %v497_v0, %v566_v35  ;;  %v5375_v38 = vsub.f32 %v499_v1, %v568_v36 }
  0xa5   : > { %v522_v39 = vpop.xlane.xlu0 %521  ;;  %v528_v40 = vpop.xlane.xlu1 %527 }
  0xa6   : > { %v567_v41 = vmul.f32 0.03125, %v522_v39  ;;  %v569_v42 = vmul.f32 0.03125, %v528_v40  ;;  %v598_v43 = vmul.f32 %v5373_v37, %v5373_v37  ;;  %v600_v44 = vmul.f32 %v5375_v38, %v5375_v38 }
  0xa8   : > { %v5382_v45 = vsub.f32 %v5301_v2, %v567_v41  ;;  %v5384_v46 = vsub.f32 %v500_v5, %v569_v42  ;;  %v614_v47 = vsel %vm516_vm0, %v598_v43, 0.0  ;;  %v620_v50 = vsel %vm516_vm0, %v600_v44, 0.0 }
  0xa9   : > { %615 = vadd.xlane.f32.xlu0 %v614_v47  ;;  %v531_v48 = vpop.xlane.xlu0 %530  ;;  %v534_v49 = vpop.xlane.xlu1 %533 }
  0xaa   : > { %v570_v51 = vmul.f32 0.03125, %v531_v48  ;;  %v571_v52 = vmul.f32 0.03125, %v534_v49  ;;  %v599_v53 = vmul.f32 %v5382_v45, %v5382_v45  ;;  %v601_v54 = vmul.f32 %v5384_v46, %v5384_v46 }
  0xac   : > { %v5393_v55 = vsub.f32 %v5307_v6, %v570_v51  ;;  %v5396_v56 = vsub.f32 %v5313_v9, %v571_v52  ;;  %v617_v57 = vsel %vm516_vm0, %v599_v53, 0.0  ;;  %v623_v60 = vsel %vm516_vm0, %v601_v54, 0.0  ;;  %v4779_v54 = vld [vmem:[%s7752_s6] ss:$8 sps:$4 sm:$0xff]  }
  0xad   : > { %621 = vadd.xlane.f32.xlu0 %v620_v50  ;;  %618 = vadd.xlane.f32.xlu1 %v617_v57  ;;  %v537_v58 = vpop.xlane.xlu0 %536  ;;  %v540_v59 = vpop.xlane.xlu1 %539  ;;  %v4780_v57 = vld [vmem:[%s7752_s6 + $0x14] ss:$8 sps:$4 sm:$0xff]  }
  0xae   : > { %v572_v61 = vmul.f32 0.03125, %v537_v58  ;;  %v573_v62 = vmul.f32 0.03125, %v540_v59  ;;  %v602_v63 = vmul.f32 %v5393_v55, %v5393_v55  ;;  %v603_v0 = vmul.f32 %v5396_v56, %v5396_v56  ;;  %v4782_v58 = vld [vmem:[%s7752_s6 + $0x10] ss:$8 sps:$4 sm:$0xff]  }
  0xaf   : > { %v7759_v59 = vmov 0  }
  0xb0   : > { %v5405_v1 = vsub.f32 %v5320_v12, %v572_v61  ;;  %v5408_v2 = vsub.f32 %v5323_v13, %v573_v62  ;;  %v626_v3 = vsel %vm516_vm0, %v602_v63, 0.0  ;;  %v629_v6 = vsel %vm516_vm0, %v603_v0, 0.0  ;;  %870 = vmatprep.mubr.bf16.mxu1 %v7759_v59 }
  0xb1   : > { %624 = vadd.xlane.f32.xlu1 %v623_v60  ;;  %627 = vadd.xlane.f32.xlu0 %v626_v3  ;;  %v543_v4 = vpop.xlane.xlu0 %542  ;;  %v546_v5 = vpop.xlane.xlu1 %545 }
  0xb2   : > { %v574_v7 = vmul.f32 0.03125, %v543_v4  ;;  %v575_v8 = vmul.f32 0.03125, %v546_v5  ;;  %v604_v9 = vmul.f32 %v5405_v1, %v5405_v1  ;;  %v605_v10 = vmul.f32 %v5408_v2, %v5408_v2 }
  0xb4   : > { %v5417_v11 = vsub.f32 %v5330_v16, %v574_v7  ;;  %v5420_v12 = vsub.f32 %v5333_v17, %v575_v8  ;;  %v632_v13 = vsel %vm516_vm0, %v604_v9, 0.0  ;;  %v635_v18 = vsel %vm516_vm0, %v605_v10, 0.0 }
  0xb5   : > { %630 = vadd.xlane.f32.xlu1 %v629_v6  ;;  %633 = vadd.xlane.f32.xlu0 %v632_v13  ;;  %v549_v14 = vpop.xlane.xlu0 %548  ;;  %v552_v15 = vpop.xlane.xlu1 %551 }
  0xb6   : > { %v576_v19 = vmul.f32 0.03125, %v549_v14  ;;  %v577_v22 = vmul.f32 0.03125, %v552_v15  ;;  %v606_v23 = vmul.f32 %v5417_v11, %v5417_v11  ;;  %v607_v16 = vmul.f32 %v5420_v12, %v5420_v12 }
  0xb8   : > { %v5429_v26 = vsub.f32 %v5340_v20, %v576_v19  ;;  %v5432_v17 = vsub.f32 %v5343_v21, %v577_v22  ;;  %v638_v27 = vsel %vm516_vm0, %v606_v23, 0.0  ;;  %v641_v32 = vsel %vm516_vm0, %v607_v16, 0.0 }
  0xb9   : > { %636 = vadd.xlane.f32.xlu1 %v635_v18  ;;  %639 = vadd.xlane.f32.xlu0 %v638_v27  ;;  %v555_v30 = vpop.xlane.xlu0 %554  ;;  %v558_v31 = vpop.xlane.xlu1 %557 }
  0xba   : > { %v578_v33 = vmul.f32 0.03125, %v555_v30  ;;  %v579_v34 = vmul.f32 0.03125, %v558_v31  ;;  %v608_v35 = vmul.f32 %v5429_v26, %v5429_v26  ;;  %v609_v20 = vmul.f32 %v5432_v17, %v5432_v17 }
  0xbc   : > { %v5441_v36 = vsub.f32 %v5350_v24, %v578_v33  ;;  %v5444_v21 = vsub.f32 %v5353_v25, %v579_v34  ;;  %v644_v39 = vsel %vm516_vm0, %v608_v35, 0.0  ;;  %v647_v42 = vsel %vm516_vm0, %v609_v20, 0.0  ;;  %v5488_v33 = vld [vmem:[%s477_s27] ss:$0 sm:$0xff]  ;;  %s6024_s27 = scalar_lea.vmem %s7751_s5, %s5290_s23 }
  0xbd   : > { %642 = vadd.xlane.f32.xlu1 %v641_v32  ;;  %645 = vadd.xlane.f32.xlu0 %v644_v39  ;;  %v561_v40 = vpop.xlane.xlu0 %560  ;;  %v564_v41 = vpop.xlane.xlu1 %563 }
  0xbe   : > { %v580_v43 = vmul.f32 0.03125, %v561_v40  ;;  %v581_v44 = vmul.f32 0.03125, %v564_v41  ;;  %v610_v47 = vmul.f32 %v5441_v36, %v5441_v36  ;;  %v611_v24 = vmul.f32 %v5444_v21, %v5444_v21 }
  0xc0   : > { %v5453_v48 = vsub.f32 %v5360_v28, %v580_v43  ;;  %v5456_v25 = vsub.f32 %v5363_v29, %v581_v44  ;;  %v650_v49 = vsel %vm516_vm0, %v610_v47, 0.0  ;;  %v653_v50 = vsel %vm516_vm0, %v611_v24, 0.0  ;;  %v4777_v29 = vld [vmem:[%s7752_s6 + $0x4] ss:$8 sps:$4 sm:$0xff]  }
  0xc1   : > { %648 = vadd.xlane.f32.xlu1 %v647_v42  ;;  %651 = vadd.xlane.f32.xlu0 %v650_v49  ;;  %v5479_v60 = vpop.permute.xlu0 %1318  ;;  %v5481_v61 = vpop.permute.xlu1 %2543  ;;  %v5496_v42 = vld [vmem:[%s474_s13] ss:$0 sm:$0xff]  ;;  %s6038_s13 = scalar_lea.vmem %s7750_s4, %s5290_s23 }
  0xc2   : > { %v612_v51 = vmul.f32 %v5453_v48, %v5453_v48  ;;  %v613_v52 = vmul.f32 %v5456_v25, %v5456_v25  ;;  %838 = vmatprep.subr.bf16.mxu1 %v4777_v29 }
  0xc3   : > { %839 = vmatpush1.bf16.msra.mxu1 %v4779_v54 }
  0xc4   : > { %v656_v53 = vsel %vm516_vm0, %v612_v51, 0.0  ;;  %v659_v28 = vsel %vm516_vm0, %v613_v52, 0.0  ;;  %840 = vmatprep.subr.bf16.mxu1 %v4780_v57 }
  0xc5   : > { %654 = vadd.xlane.f32.xlu1 %v653_v50  ;;  %657 = vadd.xlane.f32.xlu0 %v656_v53 }
  0xc7   : > { %841 = vmatpush1.bf16.msra.mxu1 %v4782_v58 }
  0xc9   : > { %660 = vadd.xlane.f32.xlu1 %v659_v28 }
 0x136   : > { %v616_v62 = vpop.xlane.xlu0 %615 }
 0x137   : > { %v662_v63 = vmul.f32 0.03125, %v616_v62 }
 0x139   : > { %v678_v0 = vadd.f32 1e-06, %v662_v63 }
 0x13a   : > { %v619_v3 = vpop.xlane.xlu1 %618  ;;  %v622_v4 = vpop.xlane.xlu0 %621 }
 0x13b   : > { %4793 = vrsqrt.f32 %v678_v0  ;;  %v663_v5 = vmul.f32 0.03125, %v619_v3  ;;  %v664_v6 = vmul.f32 0.03125, %v622_v4 }
 0x13d   : > { %v679_v7 = vadd.f32 1e-06, %v663_v5  ;;  %v680_v8 = vadd.f32 1e-06, %v664_v6 }
 0x13e   : > { %v625_v9 = vpop.xlane.xlu1 %624  ;;  %v628_v10 = vpop.xlane.xlu0 %627 }
 0x13f   : > { %4795 = vrsqrt.f32 %v679_v7  ;;  %v665_v13 = vmul.f32 0.03125, %v625_v9  ;;  %v666_v15 = vmul.f32 0.03125, %v628_v10 }
 0x140   : > { %4797 = vrsqrt.f32 %v680_v8 }
 0x141   : > { %v681_v14 = vadd.f32 1e-06, %v665_v13  ;;  %v682_v23 = vadd.f32 1e-06, %v666_v15 }
 0x142   : > { %v631_v18 = vpop.xlane.xlu1 %630  ;;  %v634_v27 = vpop.xlane.xlu0 %633 }
 0x143   : > { %4799 = vrsqrt.f32 %v681_v14  ;;  %v667_v19 = vmul.f32 0.03125, %v631_v18  ;;  %v668_v35 = vmul.f32 0.03125, %v634_v27 }
 0x145   : > { %v4794_v22 = vpop.eup %4793  ;;  %v683_v16 = vadd.f32 1e-06, %v667_v19  ;;  %v684_v47 = vadd.f32 1e-06, %v668_v35 }
 0x146   : > { %v637_v30 = vpop.xlane.xlu1 %636  ;;  %v710_v31 = vmul.f32 %v4794_v22, %v5373_v37  ;;  %v640_v24 = vpop.xlane.xlu0 %639 }
 0x147   : > { %4801 = vrsqrt.f32 %v683_v16  ;;  %v669_v32 = vmul.f32 0.03125, %v637_v30  ;;  %v670_v54 = vmul.f32 0.03125, %v640_v24 }
 0x148   : > { %4803 = vrsqrt.f32 %v682_v23  ;;  %v732_v39 = vmul.f32 %v5488_v33, %v710_v31 }
 0x149   : > { %v4796_v34 = vpop.eup %4795  ;;  %v685_v41 = vadd.f32 1e-06, %v669_v32  ;;  %v686_v0 = vadd.f32 1e-06, %v670_v54 }
 0x14a   : > { %v711_v20 = vmul.f32 %v4796_v34, %v5382_v45  ;;  %v4798_v40 = vpop.eup %4797  ;;  %v643_v37 = vpop.xlane.xlu1 %642  ;;  %v754_v49 = vadd.f32 %v5496_v42, %v732_v39 }
 0x14b   : > { %v712_v51 = vmul.f32 %v4798_v40, %v5375_v38  ;;  %4805 = vrsqrt.f32 %v685_v41  ;;  %v671_v52 = vmul.f32 0.03125, %v643_v37  ;;  %v646_v3 = vpop.xlane.xlu0 %645 }
 0x14c   : > { %v733_v43 = vmul.f32 %v5488_v33, %v711_v20  ;;  %4807 = vrsqrt.f32 %v684_v47  ;;  %v672_v10 = vmul.f32 0.03125, %v646_v3 }
 0x14d   : > { %v4800_v44 = vpop.eup %4799  ;;  %v734_v57 = vmul.f32 %v5488_v33, %v712_v51  ;;  %v687_v62 = vadd.f32 1e-06, %v671_v52 }
 0x14e   : > { %v755_v50 = vadd.f32 %v5496_v42, %v733_v43  ;;  %v713_v45 = vmul.f32 %v4800_v44, %v5384_v46  ;;  %v649_v63 = vpop.xlane.xlu1 %648  ;;  %v688_v19 = vadd.f32 1e-06, %v672_v10 }
 0x14f   : > { %v756_v4 = vadd.f32 %v5496_v42, %v734_v57  ;;  %4809 = vrsqrt.f32 %v687_v62  ;;  %v673_v6 = vmul.f32 0.03125, %v649_v63  ;;  %v652_v22 = vpop.xlane.xlu0 %651 }
 0x150   : > { %v770_v53 = vpack.c.bf16 %v755_v50, %v754_v49  ;;  %v735_v28 = vmul.f32 %v5488_v33, %v713_v45  ;;  %4811 = vrsqrt.f32 %v686_v0  ;;  %v674_v34 = vmul.f32 0.03125, %v652_v22 }
 0x151   : > { %v4802_v29 = vpop.eup %4801 }
 0x152   : > { %4376 = vmatmul.mubr.msk.bf16.vlgmr.msra.gmra.mrb[0].mxu1 %vm516_vm0, %v770_v53  ;;  %v4804_v58 = vpop.eup %4803  ;;  %v757_v38 = vadd.f32 %v5496_v42, %v735_v28  ;;  %v715_v46 = vmul.f32 %v4802_v29, %v5396_v56  ;;  %v689_v56 = vadd.f32 1e-06, %v673_v6  ;;  %v655_v15 = vpop.xlane.xlu1 %654  ;;  %v690_v41 = vadd.f32 1e-06, %v674_v34 }
 0x153   : > { %880 = vmatprep.mubr.bf16.mxu1 %v7759_v59  ;;  %v714_v5 = vmul.f32 %v4804_v58, %v5393_v55  ;;  %v675_v27 = vmul.f32 0.03125, %v655_v15  ;;  %v658_v37 = vpop.xlane.xlu0 %657 }
 0x154   : > { %v771_v7 = vpack.c.bf16 %v757_v38, %v756_v4  ;;  %v737_v8 = vmul.f32 %v5488_v33, %v715_v46  ;;  %4813 = vrsqrt.f32 %v689_v56  ;;  %v676_v51 = vmul.f32 0.03125, %v658_v37 }
 0x155   : > { %v4806_v9 = vpop.eup %4805  ;;  %v736_v13 = vmul.f32 %v5488_v33, %v714_v5  ;;  %4815 = vrsqrt.f32 %v688_v19 }
 0x156   : > { %v4808_v14 = vpop.eup %4807  ;;  %v759_v18 = vadd.f32 %v5496_v42, %v737_v8  ;;  %v717_v55 = vmul.f32 %v4806_v9, %v5408_v2  ;;  %v691_v2 = vadd.f32 1e-06, %v675_v27  ;;  %v661_v39 = vpop.xlane.xlu1 %660  ;;  %v692_v28 = vadd.f32 1e-06, %v676_v51 }
 0x157   : > { %v758_v23 = vadd.f32 %v5496_v42, %v736_v13  ;;  %v716_v16 = vmul.f32 %v4808_v14, %v5405_v1  ;;  %v677_v47 = vmul.f32 0.03125, %v661_v39 }
 0x158   : > { %v739_v31 = vmul.f32 %v5488_v33, %v717_v55  ;;  %4817 = vrsqrt.f32 %v691_v2 }
 0x159   : > { %v772_v30 = vpack.c.bf16 %v759_v18, %v758_v23  ;;  %v4810_v32 = vpop.eup %4809  ;;  %v738_v35 = vmul.f32 %v5488_v33, %v716_v16  ;;  %4819 = vrsqrt.f32 %v690_v41 }
 0x15a   : > { %4377 = vmatmul.mubr.msk.bf16.gmra.mrb[4].mxu1 %vm516_vm0, %v771_v7  ;;  %v4812_v20 = vpop.eup %4811  ;;  %v761_v40 = vadd.f32 %v5496_v42, %v739_v31  ;;  %v719_v1 = vmul.f32 %v4810_v32, %v5420_v12  ;;  %v693_v12 = vadd.f32 1e-06, %v677_v47 }
 0x15b   : > { %890 = vmatprep.mubr.bf16.mxu1 %v7759_v59  ;;  %v760_v43 = vadd.f32 %v5496_v42, %v738_v35  ;;  %v718_v44 = vmul.f32 %v4812_v20, %v5417_v11 }
 0x15c   : > { %v741_v49 = vmul.f32 %v5488_v33, %v719_v1  ;;  %4821 = vrsqrt.f32 %v693_v12 }
 0x15d   : > { %v773_v24 = vpack.c.bf16 %v761_v40, %v760_v43  ;;  %v740_v45 = vmul.f32 %v5488_v33, %v718_v44  ;;  %4823 = vrsqrt.f32 %v692_v28 }
 0x15e   : > { %v4814_v50 = vpop.eup %4813  ;;  %v763_v53 = vadd.f32 %v5496_v42, %v741_v49 }
 0x15f   : > { %v4816_v52 = vpop.eup %4815  ;;  %v721_v11 = vmul.f32 %v4814_v50, %v5432_v17  ;;  %v762_v29 = vadd.f32 %v5496_v42, %v740_v45 }
 0x160   : > { %v720_v54 = vmul.f32 %v4816_v52, %v5429_v26 }
 0x161   : > { %v774_v57 = vpack.c.bf16 %v763_v53, %v762_v29  ;;  %v743_v58 = vmul.f32 %v5488_v33, %v721_v11 }
 0x162   : > { %4378 = vmatmul.mubr.msk.bf16.gmra.mrb[8].mxu1 %vm516_vm0, %v772_v30  ;;  %v4818_v62 = vpop.eup %4817  ;;  %v742_v63 = vmul.f32 %v5488_v33, %v720_v54 }
 0x163   : > { %900 = vmatprep.mubr.bf16.mxu1 %v7759_v59  ;;  %v4820_v38 = vpop.eup %4819  ;;  %v765_v17 = vadd.f32 %v5496_v42, %v743_v58  ;;  %v723_v46 = vmul.f32 %v4818_v62, %v5444_v21 }
 0x164   : > { %v764_v0 = vadd.f32 %v5496_v42, %v742_v63  ;;  %v722_v26 = vmul.f32 %v4820_v38, %v5441_v36 }
 0x165   : > { %v745_v4 = vmul.f32 %v5488_v33, %v723_v46 }
 0x166   : > { %v775_v3 = vpack.c.bf16 %v765_v17, %v764_v0  ;;  %v4822_v5 = vpop.eup %4821  ;;  %v744_v6 = vmul.f32 %v5488_v33, %v722_v26 }
 0x167   : > { %v4824_v7 = vpop.eup %4823  ;;  %v767_v8 = vadd.f32 %v5496_v42, %v745_v4  ;;  %v725_v9 = vmul.f32 %v4822_v5, %v5456_v25  ;;  %v784_v25 = vlaneseq }
 0x168   : > { %v766_v21 = vadd.f32 %v5496_v42, %v744_v6  ;;  %v724_v10 = vmul.f32 %v4824_v7, %v5453_v48  ;;  %v782_v48 = vld [vmem:[%s7753_s7] sm:$0x3] }
 0x169   : > { %v747_v13 = vmul.f32 %v5488_v33, %v725_v9  ;;  %v785_v55 = vshrl.u32 %v784_v25, 7 }
 0x16a   : > { %4379 = vmatmul.mubr.msk.bf16.gmra.mrb[12].mxu1 %vm516_vm0, %v773_v24  ;;  %v776_v36 = vpack.c.bf16 %v767_v8, %v766_v21  ;;  %v746_v14 = vmul.f32 %v5488_v33, %v724_v10 }
 0x16b   : > { %910 = vmatprep.mubr.bf16.mxu1 %v7759_v59  ;;  %v769_v56 = vadd.f32 %v5496_v42, %v747_v13  ;;  %v786_v19 = vsub.s32 0, %v785_v55  ;;  %v790_v22 = vsub.s32 1, %v785_v55 }
 0x16c   : > { %v768_v15 = vadd.f32 %v5496_v42, %v746_v14 }
 0x16d   : > { %v5561_v23 = vrot.slane %v782_v48, %v786_v19  ;;  %v5563_v33 = vrot.slane %v782_v48, %v790_v22 }
 0x16e   : > { %v777_v18 = vpack.c.bf16 %v769_v56, %v768_v15 }
 0x16f   : > { %7842 = vst [vmem:[#allocation2_spill] sm:$0xff] %v5563_v33 }
 0x172   : > { %4380 = vmatmul.mubr.msk.bf16.gmra.mrb[16].mxu1 %vm516_vm0, %v774_v57 }
 0x173   : > { %920 = vmatprep.mubr.bf16.mxu1 %v7759_v59 }
 0x17a   : > { %4381 = vmatmul.mubr.msk.bf16.gmra.mrb[20].mxu1 %vm516_vm0, %v775_v3 }
 0x17b   : > { %930 = vmatprep.mubr.bf16.mxu1 %v7759_v59 }
 0x182   : > { %4382 = vmatmul.mubr.msk.bf16.gmra.mrb[24].mxu1 %vm516_vm0, %v776_v36 }
 0x183   : > { %940 = vmatprep.mubr.bf16.mxu1 %v7759_v59 }
 0x18a   : > { %4383 = vmatmul.mubr.msk.bf16.gmra.mrb[28].mxu1 %vm516_vm0, %v777_v18 }
 0x225   : > { %v872_v16 = vpop.f32.mrb[0].mxu1 }
 0x226   : > { %v5566_v27 = vadd.f32 %v872_v16, %v5561_v23  ;;  %v874_v42 = vpop.f32.mrb[1].mxu1 }
 0x227   : > { %v5569_v30 = vadd.f32 %v874_v42, %v5563_v33  ;;  %v876_v31 = vpop.f32.mrb[2].mxu1 }
 0x228   : > { %7843 = vst [vmem:[#allocation3_spill] sm:$0xff] %v5566_v27  ;;  %v5572_v32 = vadd.f32 %v876_v31, %v5561_v23  ;;  %v878_v34 = vpop.f32.mrb[3].mxu1  ;;  %v5576_v35 = vmul.f32 %v5566_v27, %v5566_v27 }
 0x229   : > { %v3540_v20 = vmul.f32 %v5569_v30, %v5569_v30  ;;  %v5581_v2 = vadd.f32 %v878_v34, %v5563_v33 }
 0x22a   : > { %7844 = vst [vmem:[#allocation4_spill] sm:$0xff] %v5572_v32  ;;  %2204 = vrot.lane.b32.xlu1 %v5576_v35, %s5204_s16  ;;  %1153 = vrot.lane.b32.xlu0 %v5576_v35, %s5205_s17  ;;  %v3556_v39 = vmul.f32 %v5576_v35, %v5566_v27  ;;  %v5594_v41 = vmul.f32 %v5572_v32, %v5572_v32 }
 0x22b   : > { %v3557_v40 = vmul.f32 %v3540_v20, %v5569_v30  ;;  %v3541_v1 = vmul.f32 %v5581_v2, %v5581_v2 }
 0x22c   : > { %v3588_v37 = vmul.f32 0.044715, %v3556_v39  ;;  %v3558_v11 = vmul.f32 %v5594_v41, %v5572_v32 }
 0x22d   : > { %v3589_v43 = vmul.f32 0.044715, %v3557_v40  ;;  %v882_v44 = vpop.f32.mrb[4].mxu1  ;;  %v3559_v47 = vmul.f32 %v3541_v1, %v5581_v2 }
 0x22e   : > { %2383 = vrot.lane.b32.xlu0 %v5576_v35, %s5206_s18  ;;  %v884_v24 = vpop.f32.mrb[5].mxu1  ;;  %v3620_v49 = vadd.f32 %v3588_v37, %v5566_v27  ;;  %v3590_v54 = vmul.f32 0.044715, %v3558_v11  ;;  %v5624_v26 = vadd.f32 %v882_v44, %v5561_v23 }
 0x22f   : > { %v3621_v50 = vadd.f32 %v3589_v43, %v5569_v30  ;;  %v5602_v51 = vadd.f32 %v884_v24, %v5563_v33  ;;  %v886_v45 = vpop.f32.mrb[6].mxu1  ;;  %v3591_v29 = vmul.f32 0.044715, %v3559_v47 }
 0x230   : > { %v5605_v52 = vadd.f32 %v886_v45, %v5561_v23  ;;  %v5607_v12 = vpop.f32.mrb[7].mxu1  ;;  %v3652_v53 = vmul.f32 0.7978846, %v3620_v49  ;;  %v3622_v0 = vadd.f32 %v3590_v54, %v5572_v32  ;;  %7850 = vst [vmem:[#allocation10_spill] sm:$0xff] %v5624_v26  ;;  %v5633_v21 = vmul.f32 %v5624_v26, %v5624_v26 }
 0x231   : > { %7846 = vst [vmem:[#allocation6_spill] sm:$0xff] %v5607_v12  ;;  %v3653_v28 = vmul.f32 0.7978846, %v3621_v50  ;;  %v3623_v58 = vadd.f32 %v3591_v29, %v5581_v2  ;;  %v3542_v5 = vmul.f32 %v5602_v51, %v5602_v51  ;;  %v1002_v54 = vsel %vm1001_vm1, %v5576_v35, 0.0 }
 0x232   : > { %7845 = vst [vmem:[#allocation5_spill] sm:$0xff] %v5605_v52  ;;  %2206 = vrot.lane.b32.xlu0 %v5594_v41, %s5204_s16  ;;  %4825 = vtanh.f32 %v3652_v53  ;;  %v3654_v7 = vmul.f32 0.7978846, %v3622_v0  ;;  %v3560_v16 = vmul.f32 %v5633_v21, %v5624_v26  ;;  %v1005_v35 = vsel %vm1001_vm1, %v5594_v41, 0.0 }
 0x233   : > { %4827 = vtanh.f32 %v3653_v28  ;;  %v3655_v4 = vmul.f32 0.7978846, %v3623_v58  ;;  %v3561_v56 = vmul.f32 %v3542_v5, %v5602_v51 }
 0x234   : > { %v3592_v39 = vmul.f32 0.044715, %v3560_v16 }
 0x235   : > { %v892_v57 = vpop.f32.mrb[8].mxu1  ;;  %4829 = vtanh.f32 %v3655_v4  ;;  %v3593_v31 = vmul.f32 0.044715, %v3561_v56 }
 0x236   : > { %v5615_v62 = vadd.f32 %v892_v57, %v5561_v23  ;;  %v5617_v63 = vpop.f32.mrb[9].mxu1  ;;  %4831 = vtanh.f32 %v3654_v7  ;;  %v3624_v45 = vadd.f32 %v3592_v39, %v5624_v26 }
 0x237   : > { %7848 = vst [vmem:[#allocation8_spill] sm:$0xff] %v5617_v63  ;;  %v896_v38 = vpop.f32.mrb[10].mxu1  ;;  %v3625_v43 = vadd.f32 %v3593_v31, %v5602_v51 }
 0x238   : > { %7847 = vst [vmem:[#allocation7_spill] sm:$0xff] %v5615_v62  ;;  %v5620_v17 = vadd.f32 %v896_v38, %v5561_v23  ;;  %v898_v46 = vpop.f32.mrb[11].mxu1  ;;  %v3656_v58 = vmul.f32 0.7978846, %v3624_v45 }
 0x239   : > { %v5627_v3 = vadd.f32 %v898_v46, %v5563_v33  ;;  %v3657_v28 = vmul.f32 0.7978846, %v3625_v43 }
 0x23a   : > { %7849 = vst [vmem:[#allocation9_spill] sm:$0xff] %v5620_v17 }
 0x23b   : > { %7851 = vst [vmem:[#allocation11_spill] sm:$0xff] %v5627_v3  ;;  %4833 = vtanh.f32 %v3657_v28 }
 0x23c   : > { %v4826_v6 = vpop.eup %4825  ;;  %4835 = vtanh.f32 %v3656_v58 }
 0x23d   : > { %v4828_v8 = vpop.eup %4827  ;;  %v902_v9 = vpop.f32.mrb[12].mxu1  ;;  %v3716_v10 = vadd.f32 1.0, %v4826_v6 }
 0x23e   : > { %v3717_v36 = vadd.f32 1.0, %v4828_v8  ;;  %v5636_v13 = vadd.f32 %v902_v9, %v5561_v23  ;;  %v904_v14 = vpop.f32.mrb[13].mxu1 }
 0x23f   : > { %v5640_v15 = vadd.f32 %v904_v14, %v5563_v33  ;;  %v906_v18 = vpop.f32.mrb[14].mxu1  ;;  %v3748_v48 = vmul.f32 0.5, %v3716_v10  ;;  %v4830_v47 = vpop.eup %4829 }
 0x240   : > { %7852 = vst [vmem:[#allocation12_spill] sm:$0xff] %v5636_v13  ;;  %v3749_v25 = vmul.f32 0.5, %v3717_v36  ;;  %v5643_v55 = vadd.f32 %v906_v18, %v5561_v23  ;;  %v908_v19 = vpop.f32.mrb[15].mxu1  ;;  %v4832_v53 = vpop.eup %4831  ;;  %v3719_v11 = vadd.f32 1.0, %v4830_v47 }
 0x241   : > { %7853 = vst [vmem:[#allocation13_spill] sm:$0xff] %v5640_v15  ;;  %v5646_v22 = vadd.f32 %v908_v19, %v5563_v33  ;;  %v5654_v34 = vmul.f32 %v3748_v48, %v5566_v27  ;;  %v3718_v57 = vadd.f32 1.0, %v4832_v53 }
 0x242   : > { %7854 = vst [vmem:[#allocation14_spill] sm:$0xff] %v5643_v55  ;;  %v5651_v42 = vmul.f32 %v3749_v25, %v5569_v30  ;;  %v3751_v0 = vmul.f32 0.5, %v3719_v11 }
 0x243   : > { %7855 = vst [vmem:[#allocation15_spill] sm:$0xff] %v5646_v22  ;;  %7857 = vst [vmem:[#allocation17_spill] sm:$0xff] %v5654_v34  ;;  %v3750_v9 = vmul.f32 0.5, %v3718_v57 }
 0x244   : > { %7856 = vst [vmem:[#allocation16_spill] sm:$0xff] %v5651_v42  ;;  %v5689_v10 = vmul.f32 %v3751_v0, %v5581_v2  ;;  %v1008_v0 = vsel %vm1001_vm1, %v5633_v21, 0.0 }
 0x245   : > { %v912_v20 = vpop.f32.mrb[16].mxu1  ;;  %v5692_v14 = vmul.f32 %v3750_v9, %v5572_v32  ;;  %v4834_v31 = vpop.eup %4833 }
 0x246   : > { %v5657_v40 = vadd.f32 %v912_v20, %v5561_v23  ;;  %v914_v1 = vpop.f32.mrb[17].mxu1  ;;  %7866 = vst [vmem:[#allocation26_spill] sm:$0xff] %v5689_v10  ;;  %v4836_v39 = vpop.eup %4835 }
 0x247   : > { %v5663_v44 = vadd.f32 %v914_v1, %v5563_v33  ;;  %v916_v30 = vpop.f32.mrb[18].mxu1  ;;  %7867 = vst [vmem:[#allocation27_spill] sm:$0xff] %v5692_v14  ;;  %v3721_v1 = vadd.f32 1.0, %v4834_v31 }
 0x248   : > { %7858 = vst [vmem:[#allocation18_spill] sm:$0xff] %v5657_v40  ;;  %v5666_v24 = vadd.f32 %v916_v30, %v5561_v23  ;;  %v918_v49 = vpop.f32.mrb[19].mxu1 }
 0x249   : > { %7859 = vst [vmem:[#allocation19_spill] sm:$0xff] %v5663_v44  ;;  %v5669_v50 = vadd.f32 %v918_v49, %v5563_v33  ;;  %v3720_v49 = vadd.f32 1.0, %v4836_v39  ;;  %v3753_v11 = vmul.f32 0.5, %v3721_v1 }
 0x24a   : > { %7860 = vst [vmem:[#allocation20_spill] sm:$0xff] %v5666_v24 }
 0x24b   : > { %7861 = vst [vmem:[#allocation21_spill] sm:$0xff] %v5669_v50  ;;  %v3752_v57 = vmul.f32 0.5, %v3720_v49  ;;  %v5725_v58 = vmul.f32 %v3753_v11, %v5602_v51 }
 0x24d   : > { %v922_v29 = vpop.f32.mrb[20].mxu1  ;;  %7876 = vst [vmem:[#allocation36_spill] sm:$0xff] %v5725_v58 }
 0x24e   : > { %v5675_v38 = vadd.f32 %v922_v29, %v5561_v23  ;;  %1003 = vadd.xlane.f32.xlu1 %v1002_v54  ;;  %v924_v46 = vpop.f32.mrb[21].mxu1 }
 0x24f   : > { %v5678_v4 = vadd.f32 %v924_v46, %v5563_v33  ;;  %v926_v5 = vpop.f32.mrb[22].mxu1  ;;  %v5728_v46 = vmul.f32 %v3752_v57, %v5624_v26 }
 0x250   : > { %7862 = vst [vmem:[#allocation22_spill] sm:$0xff] %v5675_v38  ;;  %v5681_v6 = vadd.f32 %v926_v5, %v5561_v23  ;;  %v928_v7 = vpop.f32.mrb[23].mxu1  ;;  %v5748_v5 = vmul.f32 %v5615_v62, %v5615_v62  ;;  %v5790_v9 = vmul.f32 %v5675_v38, %v5675_v38 }
 0x251   : > { %7863 = vst [vmem:[#allocation23_spill] sm:$0xff] %v5678_v4  ;;  %v5686_v8 = vadd.f32 %v928_v7, %v5563_v33  ;;  %1006 = vadd.xlane.f32.xlu0 %v1005_v35  ;;  %7877 = vst [vmem:[#allocation37_spill] sm:$0xff] %v5728_v46  ;;  %v5758_v7 = vmul.f32 %v5620_v17, %v5620_v17  ;;  %v5778_v35 = vmul.f32 %v5657_v40, %v5657_v40 }
 0x252   : > { %7864 = vst [vmem:[#allocation24_spill] sm:$0xff] %v5681_v6  ;;  %7879 = vst [vmem:[#allocation39_spill] sm:$0xff] %v5748_v5  ;;  %v5834_v31 = vmul.f32 %v5681_v6, %v5681_v6 }
 0x253   : > { %7865 = vst [vmem:[#allocation25_spill] sm:$0xff] %v5686_v8  ;;  %7880 = vst [vmem:[#allocation40_spill] sm:$0xff] %v5758_v7 }
 0x254   : > { %7882 = vst [vmem:[#allocation42_spill] sm:$0xff] %v5778_v35  ;;  %7883 = vst [vmem:[#allocation43_spill] sm:$0xff] %v5790_v9 }
 0x255   : > { %v932_v36 = vpop.f32.mrb[24].mxu1  ;;  %7888 = vst [vmem:[#allocation48_spill] sm:$0xff] %v5834_v31 }
 0x256   : > { %v5695_v56 = vadd.f32 %v932_v36, %v5561_v23  ;;  %v934_v18 = vpop.f32.mrb[25].mxu1  ;;  %v5798_v36 = vmul.f32 %v5643_v55, %v5643_v55 }
 0x257   : > { %v5698_v25 = vadd.f32 %v934_v18, %v5563_v33  ;;  %v936_v19 = vpop.f32.mrb[26].mxu1 }
 0x258   : > { %7868 = vst [vmem:[#allocation28_spill] sm:$0xff] %v5695_v56  ;;  %v5703_v16 = vadd.f32 %v936_v19, %v5561_v23  ;;  %v938_v2 = vpop.f32.mrb[27].mxu1  ;;  %7884 = vst [vmem:[#allocation44_spill] sm:$0xff] %v5798_v36  ;;  %v5806_v18 = vmul.f32 %v5695_v56, %v5695_v56  ;;  %v5818_v19 = vmul.f32 %v5666_v24, %v5666_v24 }
 0x259   : > { %7869 = vst [vmem:[#allocation29_spill] sm:$0xff] %v5698_v25  ;;  %v5706_v20 = vadd.f32 %v938_v2, %v5563_v33 }
 0x25a   : > { %7870 = vst [vmem:[#allocation30_spill] sm:$0xff] %v5703_v16  ;;  %7885 = vst [vmem:[#allocation45_spill] sm:$0xff] %v5806_v18  ;;  %v5842_v39 = vmul.f32 %v5703_v16, %v5703_v16 }
 0x25b   : > { %7871 = vst [vmem:[#allocation31_spill] sm:$0xff] %v5706_v20  ;;  %7886 = vst [vmem:[#allocation46_spill] sm:$0xff] %v5818_v19 }
 0x25c   : > { %7889 = vst [vmem:[#allocation49_spill] sm:$0xff] %v5842_v39 }
 0x25d   : > { %v942_v43 = vpop.f32.mrb[28].mxu1 }
 0x25e   : > { %v5709_v30 = vadd.f32 %v942_v43, %v5561_v23  ;;  %v944_v47 = vpop.f32.mrb[29].mxu1 }
 0x25f   : > { %v5712_v45 = vadd.f32 %v944_v47, %v5563_v33  ;;  %1155 = vrot.lane.b32.xlu1 %v5594_v41, %s5205_s17  ;;  %v946_v53 = vpop.f32.mrb[30].mxu1 }
 0x260   : > { %7872 = vst [vmem:[#allocation32_spill] sm:$0xff] %v5709_v30  ;;  %v5717_v28 = vadd.f32 %v946_v53, %v5561_v23  ;;  %v948_v29 = vpop.f32.mrb[31].mxu1  ;;  %v5822_v2 = vmul.f32 %v5709_v30, %v5709_v30 }
 0x261   : > { %7873 = vst [vmem:[#allocation33_spill] sm:$0xff] %v5712_v45  ;;  %v5720_v54 = vadd.f32 %v948_v29, %v5563_v33 }
 0x262   : > { %7874 = vst [vmem:[#allocation34_spill] sm:$0xff] %v5717_v28  ;;  %7887 = vst [vmem:[#allocation47_spill] sm:$0xff] %v5822_v2  ;;  %v5852_v43 = vmul.f32 %v5717_v28, %v5717_v28 }
 0x263   : > { %7875 = vst [vmem:[#allocation35_spill] sm:$0xff] %v5720_v54  ;;  %2385 = vrot.lane.b32.xlu1 %v5594_v41, %s5206_s18  ;;  %v5740_v41 = vmul.f32 %v5605_v52, %v5605_v52 }
 0x264   : > { %7890 = vst [vmem:[#allocation50_spill] sm:$0xff] %v5852_v43 }
 0x265   : > { %7878 = vst [vmem:[#allocation38_spill] sm:$0xff] %v5740_v41  ;;  %v1011_v51 = vsel %vm1001_vm1, %v5740_v41, 0.0 }
 0x267   : > { %2387 = vrot.lane.b32.xlu0 %v5633_v21, %s5206_s18  ;;  %1157 = vrot.lane.b32.xlu1 %v5633_v21, %s5205_s17 }
 0x26b   : > { %2208 = vrot.lane.b32.xlu1 %v5633_v21, %s5204_s16  ;;  %v5766_v21 = vmul.f32 %v5636_v13, %v5636_v13 }
 0x26d   : > { %7881 = vst [vmem:[#allocation41_spill] sm:$0xff] %v5766_v21 }
 0x286   : > { %1012 = vadd.xlane.f32.xlu0 %v1011_v51 }
 0x28f   : > { %1009 = vadd.xlane.f32.xlu1 %v1008_v0 }
 0x29c   : > { %1161 = vrot.lane.b32.xlu0 %v5748_v5, %s5205_s17  ;;  %v5848_v1 = vpop.permute.xlu1 %2204  ;;  %v1154_v49 = vpop.permute.xlu0 %1153 }
 0x29d   : > { %v1201_v11 = vsel %vm1001_vm1, %v1154_v49, 0.0 }
 0x2a0   : > { %1159 = vrot.lane.b32.xlu1 %v5740_v41, %s5205_s17  ;;  %2391 = vrot.lane.b32.xlu0 %v5748_v5, %s5206_s18  ;;  %v2384_v29 = vpop.permute.xlu0 %2383 }
 0x2a1   : > { %v2431_v51 = vsel %vm1001_vm1, %v2384_v29, 0.0 }
 0x2a4   : > { %2389 = vrot.lane.b32.xlu1 %v5740_v41, %s5206_s18  ;;  %2214 = vrot.lane.b32.xlu0 %v5758_v7, %s5204_s16  ;;  %v5864_v59 = vpop.permute.xlu0 %2206 }
 0x2a8   : > { %2210 = vrot.lane.b32.xlu1 %v5740_v41, %s5204_s16  ;;  %1165 = vrot.lane.b32.xlu0 %v5766_v21, %s5205_s17 }
 0x2ac   : > { %2212 = vrot.lane.b32.xlu1 %v5748_v5, %s5204_s16  ;;  %2395 = vrot.lane.b32.xlu0 %v5766_v21, %s5206_s18 }
 0x2b0   : > { %1163 = vrot.lane.b32.xlu1 %v5758_v7, %s5205_s17  ;;  %1169 = vrot.lane.b32.xlu0 %v5778_v35, %s5205_s17 }
 0x2b4   : > { %2393 = vrot.lane.b32.xlu1 %v5758_v7, %s5206_s18  ;;  %2399 = vrot.lane.b32.xlu0 %v5778_v35, %s5206_s18 }
 0x2b8   : > { %2216 = vrot.lane.b32.xlu1 %v5766_v21, %s5204_s16  ;;  %1173 = vrot.lane.b32.xlu0 %v5790_v9, %s5205_s17 }
 0x2bc   : > { %1167 = vrot.lane.b32.xlu1 %v5798_v36, %s5205_s17  ;;  %2403 = vrot.lane.b32.xlu0 %v5790_v9, %s5206_s18 }
 0x2c0   : > { %2397 = vrot.lane.b32.xlu1 %v5798_v36, %s5206_s18  ;;  %1177 = vrot.lane.b32.xlu0 %v5806_v18, %s5205_s17 }
 0x2c4   : > { %2218 = vrot.lane.b32.xlu1 %v5798_v36, %s5204_s16  ;;  %2407 = vrot.lane.b32.xlu0 %v5806_v18, %s5206_s18 }
 0x2c8   : > { %1171 = vrot.lane.b32.xlu1 %v5818_v19, %s5205_s17  ;;  %1181 = vrot.lane.b32.xlu0 %v5822_v2, %s5205_s17 }
 0x2cc   : > { %2401 = vrot.lane.b32.xlu1 %v5818_v19, %s5206_s18  ;;  %2411 = vrot.lane.b32.xlu0 %v5822_v2, %s5206_s18 }
 0x2d0   : > { %1175 = vrot.lane.b32.xlu1 %v5834_v31, %s5205_s17 }
 0x2d4   : > { %2405 = vrot.lane.b32.xlu1 %v5834_v31, %s5206_s18 }
 0x2d8   : > { %1179 = vrot.lane.b32.xlu1 %v5842_v39, %s5205_s17 }
 0x2db   : > { %v5856_v47 = vpop.xlane.xlu1 %1003 }
 0x2dc   : > { %2409 = vrot.lane.b32.xlu1 %v5842_v39, %s5206_s18 }
 0x2de   : > { %v5866_v37 = vpop.xlane.xlu0 %1006 }
 0x2df   : > { %v1156_v53 = vpop.permute.xlu1 %1155 }
 0x2e0   : > { %1183 = vrot.lane.b32.xlu1 %v5852_v43, %s5205_s17  ;;  %v1204_v45 = vsel %vm1001_vm1, %v1156_v53, 0.0 }
 0x2e2   : > { %v2388_v49 = vpop.permute.xlu0 %2387 }
 0x2e3   : > { %v2386_v57 = vpop.permute.xlu1 %2385 }
 0x2e4   : > { %2413 = vrot.lane.b32.xlu1 %v5852_v43, %s5206_s18  ;;  %v2434_v0 = vsel %vm1001_vm1, %v2386_v57, 0.0 }
 0x2e7   : > { %v1158_v23 = vpop.permute.xlu1 %1157 }
 0x2e8   : > { %v1207_v48 = vsel %vm1001_vm1, %v1158_v23, 0.0 }
 0x2eb   : > { %1202 = vadd.xlane.f32.xlu0 %v1201_v11  ;;  %v2437_v11 = vsel %vm1001_vm1, %v2388_v49, 0.0  ;;  %v5872_v57 = vpop.permute.xlu1 %2208 }
 0x2ef   : > { %2432 = vadd.xlane.f32.xlu0 %v2431_v51 }
 0x2f3   : > { %2435 = vadd.xlane.f32.xlu0 %v2434_v0 }
 0x2f7   : > { %1208 = vadd.xlane.f32.xlu0 %v1207_v48 }
 0x308   : > { %1205 = vadd.xlane.f32.xlu1 %v1204_v45 }
 0x30c   : > { %2438 = vadd.xlane.f32.xlu1 %v2437_v11 }
 0x313   : > { %v5870_v29 = vpop.xlane.xlu0 %1012 }
 0x317   : > { %v1162_v51 = vpop.permute.xlu0 %1161 }
 0x318   : > { %v1213_v4 = vsel %vm1001_vm1, %v1162_v51, 0.0 }
 0x31b   : > { %v2392_v0 = vpop.permute.xlu0 %2391 }
 0x31c   : > { %v5874_v54 = vpop.xlane.xlu1 %1009  ;;  %v2443_v46 = vsel %vm1001_vm1, %v2392_v0, 0.0 }
 0x31f   : > { %v5876_v48 = vpop.permute.xlu0 %2214 }
 0x320   : > { %v1160_v23 = vpop.permute.xlu1 %1159 }
 0x321   : > { %v1210_v20 = vsel %vm1001_vm1, %v1160_v23, 0.0 }
 0x322   : > { %1211 = vadd.xlane.f32.xlu1 %v1210_v20 }
 0x323   : > { %v1166_v53 = vpop.permute.xlu0 %1165 }
 0x324   : > { %v2390_v25 = vpop.permute.xlu1 %2389  ;;  %v1219_v0 = vsel %vm1001_vm1, %v1166_v53, 0.0 }
 0x325   : > { %v2440_v45 = vsel %vm1001_vm1, %v2390_v25, 0.0 }
 0x326   : > { %2441 = vadd.xlane.f32.xlu0 %v2440_v45 }
 0x327   : > { %v2396_v49 = vpop.permute.xlu0 %2395 }
 0x328   : > { %v5880_v11 = vpop.permute.xlu1 %2210  ;;  %v2449_v10 = vsel %vm1001_vm1, %v2396_v49, 0.0 }
 0x32a   : > { %1214 = vadd.xlane.f32.xlu0 %v1213_v4 }
 0x32b   : > { %v1170_v8 = vpop.permute.xlu0 %1169 }
 0x32c   : > { %v5883_v50 = vpop.permute.xlu1 %2212 }
 0x32e   : > { %2444 = vadd.xlane.f32.xlu0 %v2443_v46 }
 0x32f   : > { %v2400_v58 = vpop.permute.xlu0 %2399 }
 0x330   : > { %v1164_v23 = vpop.permute.xlu1 %1163 }
 0x331   : > { %v1216_v20 = vsel %vm1001_vm1, %v1164_v23, 0.0 }
 0x332   : > { %1217 = vadd.xlane.f32.xlu1 %v1216_v20 }
 0x333   : > { %v1174_v14 = vpop.permute.xlu0 %1173 }
 0x334   : > { %v2394_v25 = vpop.permute.xlu1 %2393 }
 0x335   : > { %v2446_v45 = vsel %vm1001_vm1, %v2394_v25, 0.0  ;;  %v1225_v25 = vsel %vm1001_vm1, %v1170_v8, 0.0 }
 0x336   : > { %2447 = vadd.xlane.f32.xlu0 %v2446_v45  ;;  %2450 = vadd.xlane.f32.xlu1 %v2449_v10  ;;  %v1231_v45 = vsel %vm1001_vm1, %v1174_v14, 0.0 }
 0x337   : > { %v5889_v4 = vpop.permute.xlu0 %2403 }
 0x338   : > { %v5891_v51 = vpop.permute.xlu1 %2216 }
 0x33a   : > { %1220 = vadd.xlane.f32.xlu0 %v1219_v0 }
 0x33b   : > { %v1178_v23 = vpop.permute.xlu0 %1177 }
 0x33c   : > { %v1168_v46 = vpop.permute.xlu1 %1167 }
 0x33d   : > { %v1222_v15 = vsel %vm1001_vm1, %v1168_v46, 0.0  ;;  %v1237_v46 = vsel %vm1001_vm1, %v1178_v23, 0.0 }
 0x33e   : > { %1223 = vadd.xlane.f32.xlu1 %v1222_v15 }
 0x33f   : > { %v5897_v10 = vpop.permute.xlu0 %2407 }
 0x340   : > { %v2398_v20 = vpop.permute.xlu1 %2397 }
 0x341   : > { %v2452_v3 = vsel %vm1001_vm1, %v2398_v20, 0.0 }
 0x342   : > { %2453 = vadd.xlane.f32.xlu0 %v2452_v3  ;;  %1226 = vadd.xlane.f32.xlu1 %v1225_v25 }
 0x343   : > { %v1182_v15 = vpop.permute.xlu0 %1181 }
 0x344   : > { %v5899_v49 = vpop.permute.xlu1 %2218  ;;  %v1243_v8 = vsel %vm1001_vm1, %v1182_v15, 0.0  ;;  %v2455_v15 = vsel %vm1001_vm1, %v2400_v58, 0.0 }
 0x346   : > { %1232 = vadd.xlane.f32.xlu1 %v1231_v45 }
 0x348   : > { %v1172_v53 = vpop.permute.xlu1 %1171 }
 0x349   : > { %v1228_v0 = vsel %vm1001_vm1, %v1172_v53, 0.0 }
 0x34a   : > { %1229 = vadd.xlane.f32.xlu0 %v1228_v0  ;;  %1238 = vadd.xlane.f32.xlu1 %v1237_v46 }
 0x34c   : > { %v2402_v20 = vpop.permute.xlu1 %2401 }
 0x34d   : > { %v2458_v44 = vsel %vm1001_vm1, %v2402_v20, 0.0 }
 0x34e   : > { %1244 = vadd.xlane.f32.xlu1 %v1243_v8 }
 0x350   : > { %v1176_v3 = vpop.permute.xlu1 %1175 }
 0x351   : > { %v1234_v25 = vsel %vm1001_vm1, %v1176_v3, 0.0 }
 0x352   : > { %1235 = vadd.xlane.f32.xlu0 %v1234_v25  ;;  %2459 = vadd.xlane.f32.xlu1 %v2458_v44  ;;  %v5918_v44 = vpop.permute.xlu0 %2411 }
 0x354   : > { %v5907_v14 = vpop.permute.xlu1 %2405 }
 0x358   : > { %v1180_v45 = vpop.permute.xlu1 %1179 }
 0x359   : > { %v1240_v53 = vsel %vm1001_vm1, %v1180_v45, 0.0 }
 0x35a   : > { %1241 = vadd.xlane.f32.xlu0 %v1240_v53 }
 0x35c   : > { %v5910_v23 = vpop.permute.xlu1 %2409 }
 0x360   : > { %v1184_v0 = vpop.permute.xlu1 %1183 }
 0x361   : > { %v1246_v46 = vsel %vm1001_vm1, %v1184_v0, 0.0 }
 0x362   : > { %1247 = vadd.xlane.f32.xlu0 %v1246_v46 }
 0x363   : > { %2222 = vrot.lane.b32.xlu1 %v5818_v19, %s5204_s16 }
 0x364   : > { %v5928_v53 = vpop.permute.xlu1 %2413 }
 0x366   : > { %2456 = vadd.xlane.f32.xlu0 %v2455_v15 }
 0x367   : > { %2226 = vrot.lane.b32.xlu1 %v5834_v31, %s5204_s16 }
 0x378   : > { %v1203_v20 = vpop.xlane.xlu0 %1202 }
 0x379   : > { %v1249_v8 = vmul.f32 0.0625, %v1203_v20 }
 0x37b   : > { %v1265_v3 = vadd.f32 1e-06, %v1249_v8 }
 0x37c   : > { %2220 = vrot.lane.b32.xlu0 %v5778_v35, %s5204_s16  ;;  %v5930_v15 = vpop.xlane.xlu0 %2432 }
 0x37d   : > { %4837 = vrsqrt.f32 %v1265_v3  ;;  %v1014_v3 = vsel %vm1001_vm1, %v5748_v5, 0.0 }
 0x380   : > { %2224 = vrot.lane.b32.xlu0 %v5790_v9, %s5204_s16  ;;  %v5932_v8 = vpop.xlane.xlu0 %2435 }
 0x387   : > { %v4838_v25 = vpop.eup %4837 }
 0x388   : > { %v1297_v45 = vmul.f32 %v4838_v25, %v5566_v27  ;;  %v1209_v25 = vpop.xlane.xlu0 %1208 }
 0x389   : > { %v1251_v34 = vmul.f32 0.0625, %v1209_v25 }
 0x38a   : > { %v1321_v58 = vmul.f32 %v5479_v60, %v1297_v45 }
 0x38c   : > { %1642 = vrot.lane.b32.xlu1 %v1321_v58, %s5207_s19 }
 0x390   : > { %1530 = vrot.lane.b32.xlu1 %v1321_v58, %s5205_s17 }
 0x395   : > { %v1206_v0 = vpop.xlane.xlu1 %1205 }
 0x396   : > { %v1250_v46 = vmul.f32 0.0625, %v1206_v0  ;;  %v1267_v0 = vadd.f32 1e-06, %v1251_v34 }
 0x398   : > { %v1266_v20 = vadd.f32 1e-06, %v1250_v46 }
 0x399   : > { %v5939_v41 = vpop.xlane.xlu1 %2438 }
 0x39a   : > { %4839 = vrsqrt.f32 %v1266_v20  ;;  %7891 = vst [vmem:[#allocation51_spill] sm:$0xff] %v5939_v41 }
 0x39b   : > { %4841 = vrsqrt.f32 %v1267_v0 }
 0x39f   : > { %1015 = vadd.xlane.f32.xlu0 %v1014_v3 }
 0x3a4   : > { %v4840_v45 = vpop.eup %4839 }
 0x3a5   : > { %v1298_v22 = vmul.f32 %v4840_v45, %v5572_v32  ;;  %v4842_v3 = vpop.eup %4841 }
 0x3a6   : > { %v1299_v25 = vmul.f32 %v4842_v3, %v5624_v26 }
 0x3a7   : > { %v1322_v42 = vmul.f32 %v5479_v60, %v1298_v22 }
 0x3a8   : > { %v1323_v45 = vmul.f32 %v5479_v60, %v1299_v25  ;;  %v1023_v25 = vsel %vm1001_vm1, %v5798_v36, 0.0 }
 0x3a9   : > { %1596 = vrot.lane.b32.xlu1 %v1322_v42, %s5208_s20 }
 0x3af   : > { %v1212_v46 = vpop.xlane.xlu1 %1211 }
 0x3b0   : > { %v1252_v20 = vmul.f32 0.0625, %v1212_v46 }
 0x3b2   : > { %v1268_v63 = vadd.f32 1e-06, %v1252_v20 }
 0x3b4   : > { %4843 = vrsqrt.f32 %v1268_v63  ;;  %v5954_v63 = vpop.xlane.xlu0 %2441 }
 0x3b5   : > { %1594 = vrot.lane.b32.xlu0 %v1321_v58, %s5208_s20  ;;  %7892 = vst [vmem:[#allocation52_spill] sm:$0xff] %v5954_v63  ;;  %v1020_v58 = vsel %vm1001_vm1, %v5766_v21, 0.0 }
 0x3b8   : > { %v1215_v46 = vpop.xlane.xlu0 %1214 }
 0x3b9   : > { %1644 = vrot.lane.b32.xlu0 %v1322_v42, %s5207_s19  ;;  %v1253_v3 = vmul.f32 0.0625, %v1215_v46 }
 0x3bc   : > { %v5968_v46 = vpop.xlane.xlu0 %2444 }
 0x3bd   : > { %1532 = vrot.lane.b32.xlu0 %v1322_v42, %s5205_s17  ;;  %7894 = vst [vmem:[#allocation54_spill] sm:$0xff] %v5968_v46 }
 0x3be   : > { %v4844_v22 = vpop.eup %4843 }
 0x3bf   : > { %v1300_v34 = vmul.f32 %v4844_v22, %v5605_v52  ;;  %v1218_v42 = vpop.xlane.xlu1 %1217 }
 0x3c0   : > { %v1254_v20 = vmul.f32 0.0625, %v1218_v42 }
 0x3c1   : > { %1598 = vrot.lane.b32.xlu0 %v1323_v45, %s5208_s20  ;;  %v1324_v0 = vmul.f32 %v5479_v60, %v1300_v34  ;;  %v1269_v34 = vadd.f32 1e-06, %v1253_v3 }
 0x3c2   : > { %v1270_v22 = vadd.f32 1e-06, %v1254_v20 }
 0x3c3   : > { %1600 = vrot.lane.b32.xlu1 %v1324_v0, %s5208_s20  ;;  %v5966_v42 = vpop.xlane.xlu1 %2450  ;;  %v5970_v21 = vpop.xlane.xlu0 %2447 }
 0x3c4   : > { %4845 = vrsqrt.f32 %v1270_v22  ;;  %7893 = vst [vmem:[#allocation53_spill] sm:$0xff] %v5966_v42  ;;  %7895 = vst [vmem:[#allocation55_spill] sm:$0xff] %v5970_v21 }
 0x3c5   : > { %1646 = vrot.lane.b32.xlu0 %v1323_v45, %s5207_s19  ;;  %4847 = vrsqrt.f32 %v1269_v34 }
 0x3c7   : > { %1648 = vrot.lane.b32.xlu1 %v1324_v0, %s5207_s19  ;;  %v1221_v22 = vpop.xlane.xlu0 %1220 }
 0x3c8   : > { %v1255_v63 = vmul.f32 0.0625, %v1221_v22  ;;  %v6029_v22 = vld [vmem:[%s6024_s27] sm:$0xff] }
 0x3c9   : > { %1534 = vrot.lane.b32.xlu0 %v1323_v45, %s5205_s17  ;;  %v1017_v45 = vsel %vm1001_vm1, %v5758_v7, 0.0  ;;  %7904 = vst [vmem:[#allocation64_spill] sm:$0xff] %v6029_v22 }
 0x3cb   : > { %1536 = vrot.lane.b32.xlu1 %v1324_v0, %s5205_s17  ;;  %v2461_v0 = vsel %vm1001_vm1, %v5889_v4, 0.0  ;;  %v1224_v20 = vpop.xlane.xlu1 %1223 }
 0x3cc   : > { %v1256_v21 = vmul.f32 0.0625, %v1224_v20  ;;  %v1271_v20 = vadd.f32 1e-06, %v1255_v63  ;;  %v6041_v63 = vld [vmem:[%s6024_s27 + $0x8] sm:$0xff] }
 0x3cd   : > { %7905 = vst [vmem:[#allocation65_spill] sm:$0xff] %v6041_v63 }
 0x3cf   : > { %v5973_v7 = vpop.xlane.xlu1 %1226 }
 0x3e8   : > { %1021 = vadd.xlane.f32.xlu0 %v1020_v58  ;;  %v2464_v58 = vsel %vm1001_vm1, %v5907_v14, 0.0 }
 0x3ec   : > { %1024 = vadd.xlane.f32.xlu0 %v1023_v25  ;;  %v4846_v25 = vpop.eup %4845 }
 0x3ed   : > { %v4848_v3 = vpop.eup %4847 }
 0x3ee   : > { %v1301_v4 = vmul.f32 %v4848_v3, %v5615_v62 }
 0x3ef   : > { %1018 = vadd.xlane.f32.xlu1 %v1017_v45  ;;  %v1302_v45 = vmul.f32 %v4846_v25, %v5620_v17 }
 0x3f0   : > { %2462 = vadd.xlane.f32.xlu0 %v2461_v0  ;;  %v1325_v34 = vmul.f32 %v5479_v60, %v1301_v4  ;;  %v5979_v0 = vpop.xlane.xlu1 %1232 }
 0x3f1   : > { %v1326_v14 = vmul.f32 %v5479_v60, %v1302_v45 }
 0x3f3   : > { %2465 = vadd.xlane.f32.xlu1 %v2464_v58  ;;  %v5981_v58 = vpop.xlane.xlu0 %2453 }
 0x3f4   : > { %7896 = vst [vmem:[#allocation56_spill] sm:$0xff] %v5981_v58  ;;  %v5988_v3 = vpop.xlane.xlu1 %1238 }
 0x3f7   : > { %v5985_v25 = vpop.xlane.xlu0 %1229 }
 0x3f8   : > { %v5994_v4 = vpop.xlane.xlu1 %1244 }
 0x3fb   : > { %v5991_v45 = vpop.xlane.xlu0 %1235 }
 0x3fc   : > { %v6000_v12 = vpop.xlane.xlu1 %2459 }
 0x3fd   : > { %7897 = vst [vmem:[#allocation57_spill] sm:$0xff] %v6000_v12  ;;  %v1032_v12 = vsel %vm1001_vm1, %v5790_v9, 0.0 }
 0x3ff   : > { %v5996_v36 = vpop.xlane.xlu0 %1241 }
 0x400   : > { %v6004_v58 = vpop.permute.xlu1 %2222 }
 0x401   : > { %7899 = vst [vmem:[#allocation59_spill] sm:$0xff] %v6004_v58 }
 0x403   : > { %v5998_v5 = vpop.xlane.xlu0 %1247 }
 0x404   : > { %1604 = vrot.lane.b32.xlu1 %v1326_v14, %s5208_s20  ;;  %v6008_v42 = vpop.permute.xlu1 %2226 }
 0x405   : > { %7901 = vst [vmem:[#allocation61_spill] sm:$0xff] %v6008_v42  ;;  %v1035_v42 = vsel %vm1001_vm1, %v5834_v31, 0.0 }
 0x406   : > { %1602 = vrot.lane.b32.xlu0 %v1325_v34, %s5208_s20 }
 0x407   : > { %v6002_v33 = vpop.xlane.xlu0 %2456 }
 0x408   : > { %1650 = vrot.lane.b32.xlu1 %v1325_v34, %s5207_s19  ;;  %7898 = vst [vmem:[#allocation58_spill] sm:$0xff] %v6002_v33  ;;  %v1643_v62 = vpop.permute.xlu1 %1642 }
 0x40a   : > { %1538 = vrot.lane.b32.xlu0 %v1325_v34, %s5205_s17 }
 0x40b   : > { %v6006_v34 = vpop.permute.xlu0 %2220 }
 0x40c   : > { %1652 = vrot.lane.b32.xlu1 %v1326_v14, %s5207_s19  ;;  %7900 = vst [vmem:[#allocation60_spill] sm:$0xff] %v6006_v34  ;;  %v1531_v33 = vpop.permute.xlu1 %1530 }
 0x40f   : > { %v6010_v17 = vpop.permute.xlu0 %2224 }
 0x410   : > { %1540 = vrot.lane.b32.xlu1 %v1326_v14, %s5205_s17  ;;  %7902 = vst [vmem:[#allocation62_spill] sm:$0xff] %v6010_v17  ;;  %v1026_v14 = vsel %vm1001_vm1, %v5778_v35, 0.0  ;;  %v2467_v35 = vsel %vm1001_vm1, %v5897_v10, 0.0  ;;  %v6048_v10 = vld [vmem:[%s6038_s13] sm:$0xff] }
 0x411   : > { %7906 = vst [vmem:[#allocation66_spill] sm:$0xff] %v6048_v10 }
 0x41b   : > { %v1597_v58 = vpop.permute.xlu1 %1596 }
 0x429   : > { %1027 = vadd.xlane.f32.xlu0 %v1026_v14  ;;  %v1272_v14 = vadd.f32 1e-06, %v1256_v21 }
 0x42b   : > { %4849 = vrsqrt.f32 %v1272_v14 }
 0x42c   : > { %v6014_v46 = vpop.xlane.xlu0 %1015  ;;  %4851 = vrsqrt.f32 %v1271_v20 }
 0x42d   : > { %7903 = vst [vmem:[#allocation63_spill] sm:$0xff] %v6014_v46  ;;  %1033 = vadd.xlane.f32.xlu0 %v1032_v12  ;;  %v1029_v12 = vsel %vm1001_vm1, %v5818_v19, 0.0 }
 0x430   : > { %v1595_v34 = vpop.permute.xlu0 %1594 }
 0x431   : > { %1036 = vadd.xlane.f32.xlu0 %v1035_v42  ;;  %v1690_v9 = vsel %vm1465_vm2, %v1595_v34, %v1643_v62  ;;  %v2470_v34 = vsel %vm1001_vm1, %v5910_v23, 0.0 }
 0x432   : > { %v1706_v62 = vmul.f32 %v1690_v9, %v6029_v22 }
 0x434   : > { %1030 = vadd.xlane.f32.xlu1 %v1029_v12  ;;  %v1645_v31 = vpop.permute.xlu0 %1644  ;;  %v6051_v12 = vld [vmem:[%s6038_s13 + $0x8] sm:$0xff] }
 0x435   : > { %v1601_v21 = vpop.permute.xlu1 %1600  ;;  %2468 = vadd.xlane.f32.xlu0 %v2467_v35  ;;  %v1691_v42 = vsel %vm1465_vm2, %v1597_v58, %v1645_v31  ;;  %7907 = vst [vmem:[#allocation67_spill] sm:$0xff] %v6051_v12  ;;  %v1578_v35 = vmul.f32 %v1531_v33, %v6048_v10  ;;  %v4850_v22 = vpop.eup %4849 }
 0x436   : > { %v1707_v14 = vmul.f32 %v1691_v42, %v6041_v63  ;;  %v4852_v10 = vpop.eup %4851  ;;  %v6059_v42 = vld [vmem:[%s6024_s27 + $0x18] sm:$0xff] }
 0x437   : > { %v1722_v58 = vadd.f32 %v1706_v62, %v1578_v35  ;;  %v6063_v63 = vld [vmem:[%s6038_s13 + $0x18] sm:$0xff]  ;;  %v6066_v62 = vld [vmem:[%s6024_s27 + $0x10] sm:$0xff] }
 0x438   : > { %2471 = vadd.xlane.f32.xlu1 %v2470_v34  ;;  %v1533_v19 = vpop.permute.xlu0 %1532 }
 0x439   : > { %v1579_v31 = vmul.f32 %v1533_v19, %v6051_v12  ;;  %v1649_v9 = vpop.permute.xlu1 %1648 }
 0x43a   : > { %v1693_v19 = vsel %vm1465_vm2, %v1601_v21, %v1649_v9  ;;  %v1303_v21 = vmul.f32 %v4852_v10, %v5636_v13 }
 0x43b   : > { %v1723_v46 = vadd.f32 %v1707_v14, %v1579_v31  ;;  %v1304_v14 = vmul.f32 %v4850_v22, %v5643_v55  ;;  %v6072_v31 = vld [vmem:[%s6038_s13 + $0x10] sm:$0xff] }
 0x43c   : > { %v1599_v23 = vpop.permute.xlu0 %1598 }
 0x43d   : > { %v1746_v20 = vpack.c.bf16 %v1723_v46, %v1722_v58  ;;  %v1537_v17 = vpop.permute.xlu1 %1536  ;;  %v1328_v52 = vmul.f32 %v5479_v60, %v1304_v14 }
 0x43e   : > { %v1581_v46 = vmul.f32 %v1537_v17, %v6063_v63  ;;  %v1327_v17 = vmul.f32 %v5479_v60, %v1303_v21 }
 0x43f   : > { %4620 = vmatprep.subr.msk.bf16.mxu1 %vm1001_vm1, %v1746_v20  ;;  %v1779_v34 = vsel %vm1001_vm1, %v1746_v20, 0  ;;  %v1709_v20 = vmul.f32 %v1693_v19, %v6059_v42 }
 0x440   : > { %4493 = vmatpush3.bf16.xpose.msra.mxu1 %v1779_v34  ;;  %v1647_v33 = vpop.permute.xlu0 %1646 }
 0x441   : > { %v1692_v35 = vsel %vm1465_vm2, %v1599_v23, %v1647_v33  ;;  %v1725_v9 = vadd.f32 %v1709_v20, %v1581_v46  ;;  %v1047_v46 = vsel %vm1001_vm1, %v5852_v43, 0.0  ;;  %v1041_v20 = vsel %vm1001_vm1, %v5842_v39, 0.0 }
 0x442   : > { %v1708_v34 = vmul.f32 %v1692_v35, %v6066_v62  ;;  %v1257_v35 = vmul.f32 0.0625, %v5973_v7 }
 0x444   : > { %v1535_v58 = vpop.permute.xlu0 %1534 }
 0x445   : > { %v1580_v12 = vmul.f32 %v1535_v58, %v6072_v31 }
 0x447   : > { %v1724_v41 = vadd.f32 %v1708_v34, %v1580_v12  ;;  %v1044_v12 = vsel %vm1001_vm1, %v5822_v2, 0.0  ;;  %v1273_v34 = vadd.f32 1e-06, %v1257_v35  ;;  %v972_v35 = vld [vmem:[%s6024_s27 + $0x28] sm:$0xff] }
 0x449   : > { %v1747_v23 = vpack.c.bf16 %v1725_v9, %v1724_v41  ;;  %1608 = vrot.lane.b32.xlu1 %v1328_v52, %s5208_s20  ;;  %v1038_v41 = vsel %vm1001_vm1, %v5806_v18, 0.0  ;;  %v2476_v9 = vsel %vm1001_vm1, %v5928_v53, 0.0 }
 0x44b   : > { %1606 = vrot.lane.b32.xlu0 %v1327_v17, %s5208_s20  ;;  %4621 = vmatprep.subr.msk.bf16.mxu1 %vm1001_vm1, %v1747_v23  ;;  %v1782_v22 = vsel %vm1001_vm1, %v1747_v23, 0 }
 0x44c   : > { %4495 = vmatpush3.bf16.xpose.msra.mxu1 %v1782_v22  ;;  %v971_v22 = vld [vmem:[%s6024_s27 + $0x20] sm:$0xff] }
 0x44d   : > { %1654 = vrot.lane.b32.xlu1 %v1327_v17, %s5207_s19 }
 0x44f   : > { %1542 = vrot.lane.b32.xlu0 %v1327_v17, %s5205_s17 }
 0x451   : > { %1656 = vrot.lane.b32.xlu1 %v1328_v52, %s5207_s19 }
 0x453   : > { %2228 = vrot.lane.b32.xlu0 %v5806_v18, %s5204_s16 }
 0x455   : > { %1544 = vrot.lane.b32.xlu1 %v1328_v52, %s5205_s17  ;;  %v1258_v52 = vmul.f32 0.0625, %v5985_v25  ;;  %v2473_v25 = vsel %vm1001_vm1, %v5918_v44, 0.0 }
 0x457   : > { %2232 = vrot.lane.b32.xlu0 %v5822_v2, %s5204_s16  ;;  %v1274_v14 = vadd.f32 1e-06, %v1258_v52  ;;  %v955_v2 = vld [vmem:[%s6038_s13 + $0x20] sm:$0xff] }
 0x459   : > { %2230 = vrot.lane.b32.xlu1 %v5842_v39, %s5204_s16  ;;  %4853 = vrsqrt.f32 %v1274_v14 }
 0x45a   : > { %4855 = vrsqrt.f32 %v1273_v34 }
 0x45d   : > { %2234 = vrot.lane.b32.xlu1 %v5852_v43, %s5204_s16 }
 0x463   : > { %v4854_v52 = vpop.eup %4853 }
 0x464   : > { %v4856_v14 = vpop.eup %4855  ;;  %v1306_v53 = vmul.f32 %v4854_v52, %v5666_v24 }
 0x465   : > { %v1305_v18 = vmul.f32 %v4856_v14, %v5657_v40  ;;  %v1262_v14 = vmul.f32 0.0625, %v5996_v36 }
 0x475   : > { %v6098_v10 = vpop.xlane.xlu0 %1021 }
 0x476   : > { %1039 = vadd.xlane.f32.xlu0 %v1038_v41 }
 0x479   : > { %v6103_v33 = vpop.xlane.xlu0 %1024 }
 0x47a   : > { %1045 = vadd.xlane.f32.xlu0 %v1044_v12 }
 0x47c   : > { %v6105_v19 = vpop.xlane.xlu1 %1018 }
 0x47d   : > { %v6116_v21 = vpop.xlane.xlu0 %2462 }
 0x47e   : > { %1048 = vadd.xlane.f32.xlu0 %v1047_v46  ;;  %7909 = vst [vmem:[#allocation69_spill] sm:$0xff] %v6116_v21 }
 0x480   : > { %v6110_v58 = vpop.xlane.xlu1 %2465 }
 0x481   : > { %7908 = vst [vmem:[#allocation68_spill] sm:$0xff] %v6110_v58  ;;  %1042 = vadd.xlane.f32.xlu1 %v1041_v20  ;;  %v1603_v23 = vpop.permute.xlu0 %1602  ;;  %v956_v20 = vld [vmem:[%s6038_s13 + $0x28] sm:$0xff] }
 0x482   : > { %2474 = vadd.xlane.f32.xlu0 %v2473_v25 }
 0x484   : > { %v1605_v7 = vpop.permute.xlu1 %1604 }
 0x485   : > { %2477 = vadd.xlane.f32.xlu1 %v2476_v9  ;;  %v1539_v44 = vpop.permute.xlu0 %1538 }
 0x486   : > { %v1582_v34 = vmul.f32 %v1539_v44, %v955_v2 }
 0x488   : > { %v1651_v17 = vpop.permute.xlu1 %1650 }
 0x489   : > { %v1694_v41 = vsel %vm1465_vm2, %v1603_v23, %v1651_v17  ;;  %v1330_v17 = vmul.f32 %v5479_v60, %v1306_v53 }
 0x48a   : > { %v1710_v25 = vmul.f32 %v1694_v41, %v971_v22 }
 0x48c   : > { %v1653_v12 = vpop.permute.xlu1 %1652  ;;  %v1726_v21 = vadd.f32 %v1710_v25, %v1582_v34 }
 0x48d   : > { %v1695_v46 = vsel %vm1465_vm2, %v1605_v7, %v1653_v12  ;;  %v1329_v7 = vmul.f32 %v5479_v60, %v1305_v18  ;;  %v2252_v18 = vsel %vm1001_vm1, %v5848_v1, 0.0  ;;  %v2261_v1 = vsel %vm1001_vm1, %v5880_v11, 0.0 }
 0x48e   : > { %v1711_v9 = vmul.f32 %v1695_v46, %v972_v35 }
 0x490   : > { %v1541_v39 = vpop.permute.xlu1 %1540 }
 0x491   : > { %v1583_v43 = vmul.f32 %v1541_v39, %v956_v20 }
 0x493   : > { %v1727_v23 = vadd.f32 %v1711_v9, %v1583_v43  ;;  %v1260_v43 = vmul.f32 0.0625, %v5991_v45  ;;  %v1278_v9 = vadd.f32 1e-06, %v1262_v14 }
 0x495   : > { %v1748_v58 = vpack.c.bf16 %v1727_v23, %v1726_v21  ;;  %v2258_v21 = vsel %vm1001_vm1, %v5872_v57, 0.0  ;;  %v1276_v41 = vadd.f32 1e-06, %v1260_v43  ;;  %v1261_v57 = vmul.f32 0.0625, %v5988_v3 }
 0x496   : > { %1612 = vrot.lane.b32.xlu1 %v1330_v17, %s5208_s20 }
 0x497   : > { %4622 = vmatprep.subr.msk.bf16.mxu1 %vm1001_vm1, %v1748_v58  ;;  %v1785_v22 = vsel %vm1001_vm1, %v1748_v58, 0  ;;  %v1259_v58 = vmul.f32 0.0625, %v5979_v0  ;;  %4857 = vrsqrt.f32 %v1276_v41  ;;  %v2255_v0 = vsel %vm1001_vm1, %v5864_v59, 0.0  ;;  %v973_v59 = vld [vmem:[%s6024_s27 + $0x30] sm:$0xff] }
 0x498   : > { %1610 = vrot.lane.b32.xlu0 %v1329_v7, %s5208_s20  ;;  %4497 = vmatpush3.bf16.xpose.msra.mxu1 %v1785_v22  ;;  %v1277_v20 = vadd.f32 1e-06, %v1261_v57  ;;  %v974_v22 = vld [vmem:[%s6024_s27 + $0x38] sm:$0xff] }
 0x499   : > { %v1275_v44 = vadd.f32 1e-06, %v1259_v58  ;;  %v957_v58 = vld [vmem:[%s6038_s13 + $0x30] sm:$0xff] }
 0x49a   : > { %1658 = vrot.lane.b32.xlu1 %v1329_v7, %s5207_s19 }
 0x49b   : > { %4859 = vrsqrt.f32 %v1275_v44 }
 0x49c   : > { %1546 = vrot.lane.b32.xlu0 %v1329_v7, %s5205_s17  ;;  %4861 = vrsqrt.f32 %v1277_v20 }
 0x49d   : > { %4863 = vrsqrt.f32 %v1278_v9 }
 0x49e   : > { %1660 = vrot.lane.b32.xlu1 %v1330_v17, %s5207_s19 }
 0x4a1   : > { %v4858_v53 = vpop.eup %4857 }
 0x4a2   : > { %1548 = vrot.lane.b32.xlu1 %v1330_v17, %s5205_s17  ;;  %v1308_v17 = vmul.f32 %v4858_v53, %v5681_v6 }
 0x4a4   : > { %v1332_v44 = vmul.f32 %v5479_v60, %v1308_v17 }
 0x4a5   : > { %v4860_v34 = vpop.eup %4859 }
 0x4a6   : > { %v1307_v36 = vmul.f32 %v4860_v34, %v5675_v38  ;;  %v4862_v14 = vpop.eup %4861 }
 0x4a7   : > { %v1309_v53 = vmul.f32 %v4862_v14, %v5695_v56  ;;  %v4864_v9 = vpop.eup %4863 }
 0x4a8   : > { %v1331_v20 = vmul.f32 %v5479_v60, %v1307_v36  ;;  %v2264_v36 = vsel %vm1001_vm1, %v5883_v50, 0.0  ;;  %v2273_v50 = vsel %vm1001_vm1, %v5899_v49, 0.0 }
 0x4b6   : > { %v6138_v2 = vpop.xlane.xlu0 %1027 }
 0x4ba   : > { %v6142_v39 = vpop.xlane.xlu0 %1033 }
 0x4bb   : > { %2253 = vadd.xlane.f32.xlu0 %v2252_v18 }
 0x4be   : > { %v6148_v12 = vpop.xlane.xlu0 %1036 }
 0x4bf   : > { %2259 = vadd.xlane.f32.xlu0 %v2258_v21  ;;  %v958_v21 = vld [vmem:[%s6038_s13 + $0x38] sm:$0xff] }
 0x4c1   : > { %v6150_v52 = vpop.xlane.xlu1 %1030 }
 0x4c2   : > { %v6159_v45 = vpop.xlane.xlu0 %2468 }
 0x4c3   : > { %2262 = vadd.xlane.f32.xlu0 %v2261_v1 }
 0x4c5   : > { %v6154_v35 = vpop.xlane.xlu1 %2471 }
 0x4c6   : > { %2256 = vadd.xlane.f32.xlu1 %v2255_v0  ;;  %v1607_v11 = vpop.permute.xlu0 %1606 }
 0x4c9   : > { %v1609_v46 = vpop.permute.xlu1 %1608 }
 0x4ca   : > { %v1543_v7 = vpop.permute.xlu0 %1542 }
 0x4cb   : > { %v1584_v1 = vmul.f32 %v1543_v7, %v957_v58  ;;  %v1264_v58 = vmul.f32 0.0625, %v5998_v5 }
 0x4cd   : > { %v1655_v25 = vpop.permute.xlu1 %1654 }
 0x4ce   : > { %v1696_v23 = vsel %vm1465_vm2, %v1607_v11, %v1655_v25  ;;  %v6190_v17 = vpop.permute.xlu0 %2228 }
 0x4cf   : > { %v1712_v43 = vmul.f32 %v1696_v23, %v973_v59  ;;  %v1333_v59 = vmul.f32 %v5479_v60, %v1309_v53  ;;  %v1310_v23 = vmul.f32 %v4864_v9, %v5703_v16  ;;  %v2479_v9 = vmul.f32 0.0625, %v5930_v15 }
 0x4d0   : > { %v2480_v15 = vmul.f32 0.0625, %v5932_v8 }
 0x4d1   : > { %v1657_v3 = vpop.permute.xlu1 %1656  ;;  %v1728_v11 = vadd.f32 %v1712_v43, %v1584_v1  ;;  %v1280_v1 = vadd.f32 1e-06, %v1264_v58  ;;  %v2495_v58 = vadd.f32 1e-06, %v2479_v9 }
 0x4d2   : > { %v1697_v18 = vsel %vm1465_vm2, %v1609_v46, %v1657_v3  ;;  %v1334_v3 = vmul.f32 %v5479_v60, %v1310_v23  ;;  %v6192_v7 = vpop.permute.xlu0 %2232 }
 0x4d3   : > { %v1713_v0 = vmul.f32 %v1697_v18, %v974_v22  ;;  %4865 = vrsqrt.f32 %v1280_v1 }
 0x4d5   : > { %v1545_v41 = vpop.permute.xlu1 %1544 }
 0x4d6   : > { %v1585_v57 = vmul.f32 %v1545_v41, %v958_v21  ;;  %v1263_v41 = vmul.f32 0.0625, %v5994_v4  ;;  %v2267_v4 = vsel %vm1001_vm1, %v5876_v48, 0.0 }
 0x4d7   : > { %1616 = vrot.lane.b32.xlu1 %v1332_v44, %s5208_s20 }
 0x4d8   : > { %v1729_v25 = vadd.f32 %v1713_v0, %v1585_v57 }
 0x4d9   : > { %1614 = vrot.lane.b32.xlu0 %v1331_v20, %s5208_s20  ;;  %v6196_v18 = vpop.permute.xlu1 %2230 }
 0x4da   : > { %v1749_v46 = vpack.c.bf16 %v1729_v25, %v1728_v11 }
 0x4db   : > { %1662 = vrot.lane.b32.xlu1 %v1331_v20, %s5207_s19 }
 0x4dc   : > { %4623 = vmatprep.subr.msk.bf16.mxu1 %vm1001_vm1, %v1749_v46  ;;  %v1788_v34 = vsel %vm1001_vm1, %v1749_v46, 0  ;;  %v1052_v46 = vmul.f32 0.0625, %v5866_v37 }
 0x4dd   : > { %1550 = vrot.lane.b32.xlu0 %v1331_v20, %s5205_s17  ;;  %4499 = vmatpush3.bf16.xpose.msra.mxu1 %v1788_v34  ;;  %v6203_v21 = vpop.permute.xlu1 %2234  ;;  %v1279_v20 = vadd.f32 1e-06, %v1263_v41  ;;  %v4866_v34 = vpop.eup %4865 }
 0x4de   : > { %v1068_v48 = vadd.f32 1e-06, %v1052_v46 }
 0x4df   : > { %1664 = vrot.lane.b32.xlu1 %v1332_v44, %s5207_s19  ;;  %4867 = vrsqrt.f32 %v1279_v20 }
 0x4e1   : > { %1618 = vrot.lane.b32.xlu0 %v1333_v59, %s5208_s20 }
 0x4e3   : > { %1552 = vrot.lane.b32.xlu1 %v1332_v44, %s5205_s17  ;;  %v2270_v44 = vsel %vm1001_vm1, %v5891_v51, 0.0  ;;  %v1051_v51 = vmul.f32 0.0625, %v5856_v47  ;;  %v975_v47 = vld [vmem:[%s6024_s27 + $0x40] sm:$0xff] }
 0x4e5   : > { %1666 = vrot.lane.b32.xlu0 %v1333_v59, %s5207_s19  ;;  %v1067_v25 = vadd.f32 1e-06, %v1051_v51  ;;  %v960_v51 = vld [vmem:[%s6038_s13 + $0x48] sm:$0xff] }
 0x4e7   : > { %1620 = vrot.lane.b32.xlu1 %v1334_v3, %s5208_s20  ;;  %4869 = vrsqrt.f32 %v1067_v25 }
 0x4e8   : > { %4871 = vrsqrt.f32 %v1068_v48 }
 0x4e9   : > { %1554 = vrot.lane.b32.xlu0 %v1333_v59, %s5205_s17  ;;  %v4868_v59 = vpop.eup %4867  ;;  %4873 = vrsqrt.f32 %v2495_v58 }
 0x4ea   : > { %v1311_v1 = vmul.f32 %v4868_v59, %v5709_v30  ;;  %v2496_v59 = vadd.f32 1e-06, %v2480_v15  ;;  %v7916_v30 = vld [vmem:[#allocation59_spill] sm:$0xff] }
 0x4eb   : > { %1668 = vrot.lane.b32.xlu1 %v1334_v3, %s5207_s19 }
 0x4ec   : > { %4875 = vrsqrt.f32 %v2496_v59 }
 0x4ef   : > { %1556 = vrot.lane.b32.xlu1 %v1334_v3, %s5205_s17 }
 0x4f1   : > { %v4870_v9 = vpop.eup %4869 }
 0x4f2   : > { %v4872_v58 = vpop.eup %4871 }
 0x503   : > { %v6194_v22 = vpop.xlane.xlu0 %1039 }
 0x507   : > { %v6200_v43 = vpop.xlane.xlu0 %1045 }
 0x508   : > { %2265 = vadd.xlane.f32.xlu0 %v2264_v36  ;;  %v1312_v36 = vmul.f32 %v4866_v34, %v5717_v28  ;;  %v2291_v28 = vsel %vm1001_vm1, %v6196_v18, 0.0 }
 0x50a   : > { %v1336_v46 = vmul.f32 %v5479_v60, %v1312_v36 }
 0x50b   : > { %v6208_v0 = vpop.xlane.xlu0 %1048 }
 0x50c   : > { %2271 = vadd.xlane.f32.xlu0 %v2270_v44  ;;  %v976_v44 = vld [vmem:[%s6024_s27 + $0x48] sm:$0xff] }
 0x50e   : > { %v6210_v57 = vpop.xlane.xlu1 %1042 }
 0x50f   : > { %v6219_v14 = vpop.xlane.xlu0 %2474 }
 0x510   : > { %2274 = vadd.xlane.f32.xlu0 %v2273_v50  ;;  %v1053_v50 = vmul.f32 0.0625, %v5874_v54 }
 0x512   : > { %v6214_v5 = vpop.xlane.xlu1 %2477  ;;  %v1069_v54 = vadd.f32 1e-06, %v1053_v50 }
 0x513   : > { %2268 = vadd.xlane.f32.xlu1 %v2267_v4  ;;  %v1611_v49 = vpop.permute.xlu0 %1610  ;;  %v959_v4 = vld [vmem:[%s6038_s13 + $0x40] sm:$0xff] }
 0x514   : > { %4877 = vrsqrt.f32 %v1069_v54 }
 0x516   : > { %v1613_v11 = vpop.permute.xlu1 %1612 }
 0x517   : > { %v1547_v41 = vpop.permute.xlu0 %1546 }
 0x51a   : > { %v1659_v53 = vpop.permute.xlu1 %1658 }
 0x51b   : > { %v1698_v23 = vsel %vm1465_vm2, %v1611_v49, %v1659_v53  ;;  %v1586_v49 = vmul.f32 %v1547_v41, %v959_v4 }
 0x51c   : > { %v1714_v20 = vmul.f32 %v1698_v23, %v975_v47  ;;  %v1099_v23 = vmul.f32 %v4870_v9, %v5566_v27 }
 0x51e   : > { %v1661_v3 = vpop.permute.xlu1 %1660  ;;  %v1730_v48 = vadd.f32 %v1714_v20, %v1586_v49 }
 0x51f   : > { %v1699_v37 = vsel %vm1465_vm2, %v1613_v11, %v1661_v3  ;;  %v1335_v11 = vmul.f32 %v5479_v60, %v1311_v1  ;;  %v1054_v3 = vmul.f32 0.0625, %v5870_v29  ;;  %v6245_v60 = vld [vmem:[%s7754_s8] ss:$0 sm:$0xff]  ;;  %v4874_v29 = vpop.eup %4873 }
 0x520   : > { %v1715_v53 = vmul.f32 %v1699_v37, %v976_v44  ;;  %v6250_v41 = vmul.f32 %v6245_v60, %v1099_v23  ;;  %v1100_v37 = vmul.f32 %v4872_v58, %v5572_v32  ;;  %v2527_v1 = vmul.f32 %v4874_v29, %v5566_v27  ;;  %v4876_v20 = vpop.eup %4875  ;;  %v977_v58 = vld [vmem:[%s6024_s27 + $0x50] sm:$0xff] }
 0x521   : > { %v1070_v44 = vadd.f32 1e-06, %v1054_v3  ;;  %v4878_v4 = vpop.eup %4877 }
 0x522   : > { %v1549_v25 = vpop.permute.xlu1 %1548  ;;  %v6260_v15 = vmul.f32 %v6245_v60, %v1100_v37  ;;  %v2546_v50 = vmul.f32 %v5481_v61, %v2527_v1  ;;  %v978_v1 = vld [vmem:[%s6024_s27 + $0x58] sm:$0xff] }
 0x523   : > { %v1587_v34 = vmul.f32 %v1549_v25, %v960_v51  ;;  %4879 = vrsqrt.f32 %v1070_v44  ;;  %v2528_v51 = vmul.f32 %v4876_v20, %v5572_v32  ;;  %v1101_v25 = vmul.f32 %v4878_v4, %v5624_v26  ;;  %v961_v4 = vld [vmem:[%s6038_s13 + $0x50] sm:$0xff]  ;;  %v7915_v32 = vld [vmem:[#allocation51_spill] sm:$0xff] }
 0x524   : > { %1624 = vrot.lane.b32.xlu1 %v1336_v46, %s5208_s20 }
 0x525   : > { %v1731_v8 = vadd.f32 %v1715_v53, %v1587_v34  ;;  %v6274_v53 = vmul.f32 %v6245_v60, %v1101_v25  ;;  %v7910_v34 = vld [vmem:[#allocation5_spill] sm:$0xff] }
 0x526   : > { %1622 = vrot.lane.b32.xlu0 %v1335_v11, %s5208_s20 }
 0x527   : > { %v1750_v47 = vpack.c.bf16 %v1731_v8, %v1730_v48 }
 0x528   : > { %1670 = vrot.lane.b32.xlu1 %v1335_v11, %s5207_s19 }
 0x529   : > { %4624 = vmatprep.subr.msk.bf16.mxu1 %vm1001_vm1, %v1750_v47  ;;  %v1791_v36 = vsel %vm1001_vm1, %v1750_v47, 0 }
 0x52a   : > { %1558 = vrot.lane.b32.xlu0 %v1335_v11, %s5205_s17  ;;  %4501 = vmatpush3.bf16.xpose.msra.mxu1 %v1791_v36 }
 0x52c   : > { %1672 = vrot.lane.b32.xlu1 %v1336_v46, %s5207_s19 }
 0x52d   : > { %v4880_v49 = vpop.eup %4879 }
 0x52e   : > { %1369 = vrot.lane.b32.xlu0 %v6250_v41, %s5209_s24  ;;  %v1102_v11 = vmul.f32 %v4880_v49, %v7910_v34 }
 0x530   : > { %1560 = vrot.lane.b32.xlu1 %v1336_v46, %s5205_s17  ;;  %v2547_v46 = vmul.f32 %v5481_v61, %v2528_v51  ;;  %v6283_v9 = vmul.f32 %v6245_v60, %v1102_v11  ;;  %s5212_s17 = smov 16   ;;  %v962_v51 = vld [vmem:[%s6038_s13 + $0x58] sm:$0xff] }
 0x532   : > { %1417 = vrot.lane.b32.xlu0 %v6250_v41, %s5210_s25 }
 0x534   : > { %1371 = vrot.lane.b32.xlu1 %v6260_v15, %s5209_s24 }
 0x536   : > { %2866 = vrot.lane.b32.xlu0 %v2546_v50, %s5211_s28 }
 0x538   : > { %1419 = vrot.lane.b32.xlu1 %v6260_v15, %s5210_s25 }
 0x53a   : > { %2914 = vrot.lane.b32.xlu0 %v2546_v50, %s5208_s20 }
 0x53c   : > { %2868 = vrot.lane.b32.xlu1 %v2547_v46, %s5211_s28 }
 0x53e   : > { %1373 = vrot.lane.b32.xlu0 %v6274_v53, %s5209_s24 }
 0x540   : > { %2916 = vrot.lane.b32.xlu1 %v2547_v46, %s5208_s20 }
 0x542   : > { %1421 = vrot.lane.b32.xlu0 %v6274_v53, %s5210_s25 }
 0x544   : > { %1375 = vrot.lane.b32.xlu1 %v6283_v9, %s5209_s24 }
 0x546   : > { %2802 = vrot.lane.b32.xlu0 %v2546_v50, %s5206_s18 }
 0x548   : > { %1423 = vrot.lane.b32.xlu1 %v6283_v9, %s5210_s25  ;;  %v6290_v59 = vpop.xlane.xlu0 %2253 }
 0x549   : > { %7911 = vst [vmem:[#allocation70_spill] sm:$0xff] %v6290_v59 }
 0x54a   : > { %2364 = vrot.lane.b32.xlu0 %v6245_v60, %s5212_s17 }
 0x54c   : > { %2804 = vrot.lane.b32.xlu1 %v2547_v46, %s5206_s18  ;;  %v6295_v48 = vpop.xlane.xlu0 %2259 }
 0x54d   : > { %7912 = vst [vmem:[#allocation71_spill] sm:$0xff] %v6295_v48  ;;  %v2481_v48 = vmul.f32 0.0625, %v7915_v32 }
 0x550   : > { %v6297_v8 = vpop.xlane.xlu0 %2262 }
 0x551   : > { %7913 = vst [vmem:[#allocation72_spill] sm:$0xff] %v6297_v8 }
 0x553   : > { %v6299_v54 = vpop.xlane.xlu1 %2256 }
 0x554   : > { %7914 = vst [vmem:[#allocation73_spill] sm:$0xff] %v6299_v54  ;;  %v1615_v47 = vpop.permute.xlu0 %1614 }
 0x557   : > { %v1617_v23 = vpop.permute.xlu1 %1616 }
 0x558   : > { %v1551_v3 = vpop.permute.xlu0 %1550 }
 0x559   : > { %v1588_v46 = vmul.f32 %v1551_v3, %v961_v4  ;;  %v979_v4 = vld [vmem:[%s6024_s27 + $0x60] sm:$0xff] }
 0x55b   : > { %v1663_v36 = vpop.permute.xlu1 %1662 }
 0x55c   : > { %v1700_v29 = vsel %vm1465_vm2, %v1615_v47, %v1663_v36  ;;  %v1619_v44 = vpop.permute.xlu0 %1618 }
 0x55d   : > { %v1716_v50 = vmul.f32 %v1700_v29, %v977_v58  ;;  %v2497_v58 = vadd.f32 1e-06, %v2481_v48  ;;  %v7917_v29 = vld [vmem:[#allocation52_spill] sm:$0xff] }
 0x55f   : > { %v1665_v37 = vpop.permute.xlu1 %1664  ;;  %v1732_v8 = vadd.f32 %v1716_v50, %v1588_v46  ;;  %4881 = vrsqrt.f32 %v2497_v58  ;;  %v964_v46 = vld [vmem:[%s6038_s13 + $0x68] sm:$0xff] }
 0x560   : > { %v1701_v20 = vsel %vm1465_vm2, %v1617_v23, %v1665_v37  ;;  %v1667_v27 = vpop.permute.xlu0 %1666  ;;  %v2279_v23 = vsel %vm1001_vm1, %v7916_v30, 0.0  ;;  %v2482_v37 = vmul.f32 0.0625, %v7917_v29  ;;  %v980_v30 = vld [vmem:[%s6024_s27 + $0x68] sm:$0xff] }
 0x561   : > { %v1717_v49 = vmul.f32 %v1701_v20, %v978_v1  ;;  %v7918_v20 = vld [vmem:[#allocation62_spill] sm:$0xff] }
 0x562   : > { %v2282_v50 = vsel %vm1001_vm1, %v7918_v20, 0.0  ;;  %v7920_v20 = vld [vmem:[#allocation61_spill] sm:$0xff] }
 0x563   : > { %v1553_v25 = vpop.permute.xlu1 %1552 }
 0x564   : > { %v1589_v11 = vmul.f32 %v1553_v25, %v962_v51  ;;  %v1555_v1 = vpop.permute.xlu0 %1554  ;;  %v2498_v25 = vadd.f32 1e-06, %v2482_v37  ;;  %v7922_v37 = vld [vmem:[#allocation54_spill] sm:$0xff] }
 0x566   : > { %v1733_v59 = vadd.f32 %v1717_v49, %v1589_v11  ;;  %v7919_v11 = vld [vmem:[#allocation60_spill] sm:$0xff]  ;;  %4883 = vrsqrt.f32 %v2498_v25 }
 0x567   : > { %v1621_v47 = vpop.permute.xlu1 %1620 }
 0x568   : > { %v1751_v36 = vpack.c.bf16 %v1733_v59, %v1732_v8  ;;  %v1702_v59 = vsel %vm1465_vm2, %v1619_v44, %v1667_v27  ;;  %v963_v8 = vld [vmem:[%s6038_s13 + $0x60] sm:$0xff]  ;;  %v2285_v27 = vsel %vm1001_vm1, %v7920_v20, 0.0 }
 0x569   : > { %2280 = vadd.xlane.f32.xlu0 %v2279_v23  ;;  %v1590_v51 = vmul.f32 %v1555_v1, %v963_v8  ;;  %v1718_v23 = vmul.f32 %v1702_v59, %v979_v4  ;;  %v4882_v4 = vpop.eup %4881 }
 0x56a   : > { %4625 = vmatprep.subr.msk.bf16.mxu1 %vm1001_vm1, %v1751_v36  ;;  %v1794_v3 = vsel %vm1001_vm1, %v1751_v36, 0  ;;  %v2276_v36 = vsel %vm1001_vm1, %v7919_v11, 0.0  ;;  %v7923_v11 = vld [vmem:[#allocation9_spill] sm:$0xff] }
 0x56b   : > { %v1669_v32 = vpop.permute.xlu1 %1668  ;;  %4503 = vmatpush3.bf16.xpose.msra.mxu1 %v1794_v3  ;;  %v1734_v44 = vadd.f32 %v1718_v23, %v1590_v51  ;;  %v7924_v23 = vld [vmem:[#allocation7_spill] sm:$0xff] }
 0x56c   : > { %v1703_v48 = vsel %vm1465_vm2, %v1621_v47, %v1669_v32  ;;  %v7921_v47 = vld [vmem:[#allocation55_spill] sm:$0xff]  ;;  %v2483_v32 = vmul.f32 0.0625, %v7922_v37 }
 0x56d   : > { %2283 = vadd.xlane.f32.xlu0 %v2282_v50  ;;  %v1719_v3 = vmul.f32 %v1703_v48, %v980_v30  ;;  %v2484_v58 = vmul.f32 0.0625, %v7921_v47  ;;  %v2529_v30 = vmul.f32 %v4882_v4, %v5624_v26 }
 0x56e   : > { %v2499_v8 = vadd.f32 1e-06, %v2483_v32 }
 0x56f   : > { %v1557_v49 = vpop.permute.xlu1 %1556  ;;  %v2500_v59 = vadd.f32 1e-06, %v2484_v58  ;;  %v2548_v51 = vmul.f32 %v5481_v61, %v2529_v30 }
 0x570   : > { %v1591_v29 = vmul.f32 %v1557_v49, %v964_v46  ;;  %2277 = vadd.xlane.f32.xlu1 %v2276_v36  ;;  %v4884_v48 = vpop.eup %4883 }
 0x571   : > { %2286 = vadd.xlane.f32.xlu0 %v2285_v27  ;;  %4885 = vrsqrt.f32 %v2500_v59  ;;  %v981_v59 = vld [vmem:[%s6024_s27 + $0x70] sm:$0xff] }
 0x572   : > { %v1735_v54 = vadd.f32 %v1719_v3, %v1591_v29  ;;  %4887 = vrsqrt.f32 %v2499_v8 }
 0x574   : > { %v1752_v1 = vpack.c.bf16 %v1735_v54, %v1734_v44  ;;  %v2530_v54 = vmul.f32 %v4884_v48, %v7910_v34 }
 0x576   : > { %4626 = vmatprep.subr.msk.bf16.mxu1 %vm1001_vm1, %v1752_v1  ;;  %v1797_v50 = vsel %vm1001_vm1, %v1752_v1, 0  ;;  %v2549_v25 = vmul.f32 %v5481_v61, %v2530_v54 }
 0x577   : > { %4505 = vmatpush3.bf16.xpose.msra.mxu1 %v1797_v50 }
 0x57b   : > { %v4886_v46 = vpop.eup %4885 }
 0x57c   : > { %v4888_v49 = vpop.eup %4887  ;;  %v2532_v36 = vmul.f32 %v4886_v46, %v7923_v11  ;;  %v965_v46 = vld [vmem:[%s6038_s13 + $0x70] sm:$0xff] }
 0x57d   : > { %v2531_v3 = vmul.f32 %v4888_v49, %v7924_v23  ;;  %v966_v49 = vld [vmem:[%s6038_s13 + $0x78] sm:$0xff] }
 0x57e   : > { %v2551_v29 = vmul.f32 %v5481_v61, %v2532_v36 }
 0x57f   : > { %v2550_v20 = vmul.f32 %v5481_v61, %v2531_v3 }
 0x581   : > { %2870 = vrot.lane.b32.xlu1 %v2548_v51, %s5211_s28 }
 0x585   : > { %2918 = vrot.lane.b32.xlu1 %v2548_v51, %s5208_s20 }
 0x587   : > { %2872 = vrot.lane.b32.xlu0 %v2549_v25, %s5211_s28 }
 0x589   : > { %2920 = vrot.lane.b32.xlu1 %v2549_v25, %s5208_s20 }
 0x58b   : > { %2808 = vrot.lane.b32.xlu0 %v2549_v25, %s5206_s18 }
 0x58d   : > { %2806 = vrot.lane.b32.xlu1 %v2548_v51, %s5206_s18  ;;  %v982_v51 = vld [vmem:[%s6024_s27 + $0x78] sm:$0xff] }
 0x58f   : > { %2876 = vrot.lane.b32.xlu0 %v2551_v29, %s5211_s28 }
 0x591   : > { %2874 = vrot.lane.b32.xlu1 %v2550_v20, %s5211_s28 }
 0x593   : > { %2924 = vrot.lane.b32.xlu0 %v2551_v29, %s5208_s20 }
 0x595   : > { %2922 = vrot.lane.b32.xlu1 %v2550_v20, %s5208_s20  ;;  %v6347_v27 = vpop.xlane.xlu0 %2265 }
 0x596   : > { %7925 = vst [vmem:[#allocation51_spill] sm:$0xff] %v6347_v27 }
 0x597   : > { %2812 = vrot.lane.b32.xlu0 %v2551_v29, %s5206_s18 }
 0x599   : > { %2810 = vrot.lane.b32.xlu1 %v2550_v20, %s5206_s18  ;;  %v6351_v44 = vpop.xlane.xlu0 %2271 }
 0x59a   : > { %7926 = vst [vmem:[#allocation59_spill] sm:$0xff] %v6351_v44 }
 0x59d   : > { %v6353_v47 = vpop.xlane.xlu0 %2274 }
 0x59e   : > { %7927 = vst [vmem:[#allocation52_spill] sm:$0xff] %v6353_v47  ;;  %v7929_v47 = vld [vmem:[#allocation53_spill] sm:$0xff] }
 0x59f   : > { %v2485_v26 = vmul.f32 0.0625, %v7929_v47  ;;  %v7931_v47 = vld [vmem:[#allocation56_spill] sm:$0xff] }
 0x5a0   : > { %v6355_v58 = vpop.xlane.xlu1 %2268 }
 0x5a1   : > { %7928 = vst [vmem:[#allocation62_spill] sm:$0xff] %v6355_v58  ;;  %v1623_v1 = vpop.permute.xlu0 %1622 }
 0x5a4   : > { %v1625_v37 = vpop.permute.xlu1 %1624 }
 0x5a5   : > { %v1559_v32 = vpop.permute.xlu0 %1558 }
 0x5a6   : > { %v1592_v3 = vmul.f32 %v1559_v32, %v965_v46 }
 0x5a8   : > { %v1671_v50 = vpop.permute.xlu1 %1670 }
 0x5a9   : > { %v1370_v4 = vpop.permute.xlu0 %1369  ;;  %v1704_v8 = vsel %vm1465_vm2, %v1623_v1, %v1671_v50 }
 0x5aa   : > { %v1720_v25 = vmul.f32 %v1704_v8, %v981_v59  ;;  %v2501_v59 = vadd.f32 1e-06, %v2485_v26  ;;  %v7930_v8 = vld [vmem:[#allocation64_spill] sm:$0xff] }
 0x5ac   : > { %v1673_v30 = vpop.permute.xlu1 %1672  ;;  %v1736_v34 = vadd.f32 %v1720_v25, %v1592_v3  ;;  %4889 = vrsqrt.f32 %v2501_v59  ;;  %v7936_v59 = vld [vmem:[#allocation58_spill] sm:$0xff] }
 0x5ad   : > { %v1418_v48 = vpop.permute.xlu0 %1417  ;;  %v1705_v54 = vsel %vm1465_vm2, %v1625_v37, %v1673_v30 }
 0x5ae   : > { %v1721_v29 = vmul.f32 %v1705_v54, %v982_v51  ;;  %v1466_v1 = vsel %vm1465_vm2, %v1370_v4, %v1418_v48  ;;  %v2486_v54 = vmul.f32 0.0625, %v7931_v47  ;;  %v7934_v4 = vld [vmem:[#allocation65_spill] sm:$0xff] }
 0x5af   : > { %v1482_v30 = vmul.f32 %v1466_v1, %v7930_v8 }
 0x5b0   : > { %v1561_v36 = vpop.permute.xlu1 %1560 }
 0x5b1   : > { %v1593_v20 = vmul.f32 %v1561_v36, %v966_v49  ;;  %v2867_v44 = vpop.permute.xlu0 %2866 }
 0x5b3   : > { %v1737_v27 = vadd.f32 %v1721_v29, %v1593_v20  ;;  %v2502_v29 = vadd.f32 1e-06, %v2486_v54 }
 0x5b4   : > { %v1372_v58 = vpop.permute.xlu1 %1371 }
 0x5b5   : > { %v1753_v50 = vpack.c.bf16 %v1737_v27, %v1736_v34  ;;  %v2915_v37 = vpop.permute.xlu0 %2914  ;;  %v2294_v34 = vsel %vm1001_vm1, %v6192_v7, 0.0  ;;  %v7932_v27 = vld [vmem:[#allocation66_spill] sm:$0xff]  ;;  %v2297_v7 = vsel %vm1001_vm1, %v6203_v21, 0.0  ;;  %4891 = vrsqrt.f32 %v2502_v29 }
 0x5b6   : > { %2292 = vadd.xlane.f32.xlu0 %v2291_v28  ;;  %v1337_v18 = vmul.f32 %v6250_v41, %v7932_v27  ;;  %v7933_v28 = vld [vmem:[#allocation67_spill] sm:$0xff] }
 0x5b7   : > { %4627 = vmatprep.subr.msk.bf16.mxu1 %vm1001_vm1, %v1753_v50  ;;  %v1800_v32 = vsel %vm1001_vm1, %v1753_v50, 0  ;;  %v1338_v26 = vmul.f32 %v6260_v15, %v7933_v28  ;;  %v7935_v15 = vld [vmem:[#allocation57_spill] sm:$0xff] }
 0x5b8   : > { %v1420_v51 = vpop.permute.xlu1 %1419  ;;  %4507 = vmatpush3.bf16.xpose.msra.mxu1 %v1800_v32  ;;  %v1498_v46 = vadd.f32 %v1482_v30, %v1337_v18  ;;  %v2488_v1 = vmul.f32 0.0625, %v7935_v15  ;;  %v2487_v32 = vmul.f32 0.0625, %v7936_v59 }
 0x5b9   : > { %v1467_v25 = vsel %vm1465_vm2, %v1372_v58, %v1420_v51  ;;  %v1374_v36 = vpop.permute.xlu0 %1373  ;;  %v2288_v58 = vsel %vm1001_vm1, %v6190_v17, 0.0  ;;  %v4890_v51 = vpop.eup %4889 }
 0x5ba   : > { %v1483_v48 = vmul.f32 %v1467_v25, %v7934_v4  ;;  %2295 = vadd.xlane.f32.xlu0 %v2294_v34  ;;  %v2504_v47 = vadd.f32 1e-06, %v2488_v1  ;;  %v2503_v54 = vadd.f32 1e-06, %v2487_v32  ;;  %v2533_v18 = vmul.f32 %v4890_v51, %v5636_v13 }
 0x5bc   : > { %v1499_v49 = vadd.f32 %v1483_v48, %v1338_v26  ;;  %v2869_v3 = vpop.permute.xlu1 %2868  ;;  %4893 = vrsqrt.f32 %v2504_v47  ;;  %v1340_v26 = vmul.f32 %v6283_v9, %v6063_v63  ;;  %v2552_v63 = vmul.f32 %v5481_v61, %v2533_v18 }
 0x5bd   : > { %2289 = vadd.xlane.f32.xlu1 %v2288_v58  ;;  %v1422_v50 = vpop.permute.xlu0 %1421  ;;  %4895 = vrsqrt.f32 %v2503_v54  ;;  %v1056_v9 = vmul.f32 0.0625, %v6105_v19  ;;  %v1057_v47 = vmul.f32 0.0625, %v6098_v10 }
 0x5be   : > { %v1738_v41 = vpack.c.bf16 %v1499_v49, %v1498_v46  ;;  %2298 = vadd.xlane.f32.xlu0 %v2297_v7  ;;  %v1468_v17 = vsel %vm1465_vm2, %v1374_v36, %v1422_v50  ;;  %v2962_v46 = vsel %vm1465_vm2, %v2867_v44, %v2915_v37  ;;  %v1339_v49 = vmul.f32 %v6274_v53, %v6072_v31 }
 0x5bf   : > { %v1484_v25 = vmul.f32 %v1468_v17, %v6066_v62  ;;  %v4892_v62 = vpop.eup %4891  ;;  %v2978_v44 = vmul.f32 %v2962_v46, %v7930_v8  ;;  %v1072_v50 = vadd.f32 1e-06, %v1056_v9 }
 0x5c0   : > { %v2917_v20 = vpop.permute.xlu1 %2916  ;;  %4508 = vmatprep.mubr.msk.bf16.mxu1 %vm1001_vm1, %v1738_v41 }
 0x5c1   : > { %v2803_v21 = vpop.permute.xlu0 %2802  ;;  %v2963_v36 = vsel %vm1465_vm2, %v2869_v3, %v2917_v20  ;;  %v1500_v7 = vadd.f32 %v1484_v25, %v1339_v49  ;;  %v7937_v3 = vld [vmem:[#allocation63_spill] sm:$0xff]  ;;  %4897 = vrsqrt.f32 %v1072_v50  ;;  %v1061_v50 = vmul.f32 0.0625, %v6142_v39 }
 0x5c2   : > { %v2850_v29 = vmul.f32 %v2803_v21, %v7932_v27  ;;  %v2979_v37 = vmul.f32 %v2963_v36, %v7934_v4  ;;  %v1055_v27 = vmul.f32 0.0625, %v7937_v3  ;;  %v1073_v21 = vadd.f32 1e-06, %v1057_v47 }
 0x5c3   : > { %v2492_v39 = vmul.f32 0.0625, %v6154_v35 }
 0x5c4   : > { %v1376_v30 = vpop.permute.xlu1 %1375  ;;  %v2994_v20 = vadd.f32 %v2978_v44, %v2850_v29  ;;  %v1071_v4 = vadd.f32 1e-06, %v1055_v27  ;;  %v1059_v44 = vmul.f32 0.0625, %v6138_v2  ;;  %v1062_v27 = vmul.f32 0.0625, %v6148_v12 }
 0x5c6   : > { %v4894_v8 = vpop.eup %4893  ;;  %4899 = vrsqrt.f32 %v1071_v4  ;;  %v1077_v4 = vadd.f32 1e-06, %v1061_v50 }
 0x5c7   : > { %v4896_v32 = vpop.eup %4895  ;;  %v2536_v51 = vmul.f32 %v4894_v8, %v5666_v24 }
 0x5c8   : > { %v1424_v34 = vpop.permute.xlu1 %1423  ;;  %v2535_v17 = vmul.f32 %v4896_v32, %v5657_v40 }
 0x5c9   : > { %v1469_v48 = vsel %vm1465_vm2, %v1376_v30, %v1424_v34  ;;  %v1058_v30 = vmul.f32 0.0625, %v6103_v33  ;;  %v2555_v25 = vmul.f32 %v5481_v61, %v2536_v51  ;;  %v7938_v34 = vld [vmem:[#allocation68_spill] sm:$0xff]  ;;  %v2491_v51 = vmul.f32 0.0625, %v6159_v45 }
 0x5ca   : > { %v1485_v58 = vmul.f32 %v1469_v48, %v6059_v42  ;;  %v2534_v42 = vmul.f32 %v4892_v62, %v5643_v55  ;;  %v2554_v33 = vmul.f32 %v5481_v61, %v2535_v17  ;;  %v2490_v18 = vmul.f32 0.0625, %v7938_v34 }
 0x5cb   : > { %v1074_v54 = vadd.f32 1e-06, %v1058_v30  ;;  %v4898_v10 = vpop.eup %4897  ;;  %v2508_v17 = vadd.f32 1e-06, %v2492_v39 }
 0x5cc   : > { %v1501_v41 = vadd.f32 %v1485_v58, %v1340_v26  ;;  %v2805_v15 = vpop.permute.xlu1 %2804  ;;  %v2553_v19 = vmul.f32 %v5481_v61, %v2534_v42  ;;  %v7939_v26 = vld [vmem:[#allocation69_spill] sm:$0xff]  ;;  %v2506_v49 = vadd.f32 1e-06, %v2490_v18  ;;  %v1104_v36 = vmul.f32 %v4898_v10, %v7923_v11 }
 0x5cd   : > { %v2851_v31 = vmul.f32 %v2805_v15, %v7933_v28  ;;  %4901 = vrsqrt.f32 %v1074_v54  ;;  %v2489_v48 = vmul.f32 0.0625, %v7939_v26  ;;  %v1075_v42 = vadd.f32 1e-06, %v1059_v44 }
 0x5ce   : > { %v1739_v53 = vpack.c.bf16 %v1501_v41, %v1500_v7  ;;  %2878 = vrot.lane.b32.xlu1 %v2552_v63, %s5211_s28  ;;  %4903 = vrsqrt.f32 %v1073_v21  ;;  %v6432_v29 = vmul.f32 %v6245_v60, %v1104_v36  ;;  %v2507_v21 = vadd.f32 1e-06, %v2491_v51 }
 0x5cf   : > { %v2995_v1 = vadd.f32 %v2979_v37, %v2851_v31  ;;  %v2505_v58 = vadd.f32 1e-06, %v2489_v48  ;;  %4905 = vrsqrt.f32 %v2506_v49 }
 0x5d0   : > { %4509 = vmatmul.mubr.msk.bf16.vlgmr.msra.gmra.mrb[32].mxu1 %vm1001_vm1, %v1739_v53  ;;  %v4900_v46 = vpop.eup %4899 }
 0x5d1   : > { %v3018_v59 = vpack.c.bf16 %v2995_v1, %v2994_v20  ;;  %v1103_v62 = vmul.f32 %v4900_v46, %v7924_v23  ;;  %4907 = vrsqrt.f32 %v2505_v58  ;;  %v6458_v20 = vpop.permute.xlu0 %2364  ;;  %v1064_v46 = vmul.f32 0.0625, %v6210_v57 }
 0x5d2   : > { %2926 = vrot.lane.b32.xlu1 %v2552_v63, %s5208_s20 }
 0x5d3   : > { %4628 = vmatprep.subr.msk.bf16.mxu1 %vm1001_vm1, %v3018_v59  ;;  %v3051_v28 = vsel %vm1001_vm1, %v3018_v59, 0  ;;  %v6437_v41 = vmul.f32 %v6245_v60, %v1103_v62  ;;  %v1063_v62 = vmul.f32 0.0625, %v6194_v22 }
 0x5d4   : > { %2880 = vrot.lane.b32.xlu0 %v2553_v19, %s5211_s28  ;;  %4557 = vmatpush3.bf16.xpose.msra.mxu1 %v3051_v28 }
 0x5d6   : > { %2928 = vrot.lane.b32.xlu1 %v2553_v19, %s5208_s20 }
 0x5d7   : > { %v4902_v7 = vpop.eup %4901 }
 0x5d8   : > { %2816 = vrot.lane.b32.xlu0 %v2553_v19, %s5206_s18  ;;  %v4904_v15 = vpop.eup %4903  ;;  %v1106_v9 = vmul.f32 %v4902_v7, %v5643_v55  ;;  %v1078_v19 = vadd.f32 1e-06, %v1062_v27 }
 0x5d9   : > { %v1105_v37 = vmul.f32 %v4904_v15, %v5636_v13  ;;  %v1080_v15 = vadd.f32 1e-06, %v1064_v46  ;;  %v2494_v46 = vmul.f32 0.0625, %v6214_v5 }
 0x5da   : > { %2814 = vrot.lane.b32.xlu1 %v2552_v63, %s5206_s18  ;;  %v1060_v63 = vmul.f32 0.0625, %v6150_v52  ;;  %v6450_v53 = vmul.f32 %v6245_v60, %v1106_v9  ;;  %v4906_v52 = vpop.eup %4905 }
 0x5db   : > { %v6455_v3 = vmul.f32 %v6245_v60, %v1105_v37  ;;  %v4908_v2 = vpop.eup %4907  ;;  %v2538_v1 = vmul.f32 %v4906_v52, %v5681_v6  ;;  %v1079_v37 = vadd.f32 1e-06, %v1063_v62  ;;  %v6513_v52 = vld [vmem:[%s6024_s27 + $0x18] sm:$0xff]  ;;  %v2493_v62 = vmul.f32 0.0625, %v6219_v14 }
 0x5dc   : > { %2884 = vrot.lane.b32.xlu0 %v2555_v25, %s5211_s28  ;;  %v1076_v31 = vadd.f32 1e-06, %v1060_v63  ;;  %v2537_v59 = vmul.f32 %v4908_v2, %v5675_v38 }
 0x5dd   : > { %v2557_v8 = vmul.f32 %v5481_v61, %v2538_v1  ;;  %v1066_v1 = vmul.f32 0.0625, %v6208_v0  ;;  %v1065_v0 = vmul.f32 0.0625, %v6200_v43 }
 0x5de   : > { %2882 = vrot.lane.b32.xlu1 %v2554_v33, %s5211_s28  ;;  %4909 = vrsqrt.f32 %v1076_v31  ;;  %v2556_v28 = vmul.f32 %v5481_v61, %v2537_v59  ;;  %v6523_v59 = vld [vmem:[%s6024_s27 + $0x10] sm:$0xff] }
 0x5df   : > { %4911 = vrsqrt.f32 %v1075_v42 }
 0x5e0   : > { %2932 = vrot.lane.b32.xlu0 %v2555_v25, %s5208_s20  ;;  %4913 = vrsqrt.f32 %v1078_v19 }
 0x5e1   : > { %4915 = vrsqrt.f32 %v1077_v4 }
 0x5e2   : > { %2930 = vrot.lane.b32.xlu1 %v2554_v33, %s5208_s20  ;;  %4917 = vrsqrt.f32 %v2508_v17 }
 0x5e3   : > { %4919 = vrsqrt.f32 %v2507_v21  ;;  %v1082_v21 = vadd.f32 1e-06, %v1066_v1 }
 0x5e4   : > { %2820 = vrot.lane.b32.xlu0 %v2555_v25, %s5206_s18  ;;  %4921 = vrsqrt.f32 %v1080_v15 }
 0x5e5   : > { %4923 = vrsqrt.f32 %v1079_v37 }
 0x5e6   : > { %2818 = vrot.lane.b32.xlu1 %v2554_v33, %s5206_s18  ;;  %4925 = vrsqrt.f32 %v1082_v21 }
 0x5e8   : > { %1379 = vrot.lane.b32.xlu0 %v6432_v29, %s5209_s24  ;;  %v4910_v30 = vpop.eup %4909 }
 0x5e9   : > { %v4912_v47 = vpop.eup %4911  ;;  %v1108_v35 = vmul.f32 %v4910_v30, %v5666_v24 }
 0x5ea   : > { %1377 = vrot.lane.b32.xlu1 %v6437_v41, %s5209_s24  ;;  %v1107_v33 = vmul.f32 %v4912_v47, %v5657_v40  ;;  %v4914_v10 = vpop.eup %4913 }
 0x5eb   : > { %v6490_v18 = vmul.f32 %v6245_v60, %v1108_v35  ;;  %v4916_v48 = vpop.eup %4915  ;;  %v1110_v58 = vmul.f32 %v4914_v10, %v5681_v6  ;;  %v1081_v10 = vadd.f32 1e-06, %v1065_v0 }
 0x5ec   : > { %1427 = vrot.lane.b32.xlu0 %v6432_v29, %s5210_s25  ;;  %v6495_v26 = vmul.f32 %v6245_v60, %v1107_v33  ;;  %v1109_v7 = vmul.f32 %v4916_v48, %v5675_v38  ;;  %v4918_v22 = vpop.eup %4917 }
 0x5ed   : > { %v6509_v44 = vmul.f32 %v6245_v60, %v1110_v58  ;;  %v4920_v27 = vpop.eup %4919  ;;  %v2540_v30 = vmul.f32 %v4918_v22, %v5703_v16  ;;  %4927 = vrsqrt.f32 %v1081_v10  ;;  %v2510_v22 = vadd.f32 1e-06, %v2494_v46  ;;  %v7943_v46 = vld [vmem:[#allocation70_spill] sm:$0xff] }
 0x5ee   : > { %1425 = vrot.lane.b32.xlu1 %v6437_v41, %s5210_s25  ;;  %v6519_v2 = vmul.f32 %v6245_v60, %v1109_v7  ;;  %v2539_v35 = vmul.f32 %v4920_v27, %v5695_v56  ;;  %v4922_v58 = vpop.eup %4921  ;;  %v6563_v27 = vld [vmem:[%s6024_s27 + $0x20] sm:$0xff] }
 0x5ef   : > { %4929 = vrsqrt.f32 %v2510_v22 }
 0x5f0   : > { %1383 = vrot.lane.b32.xlu0 %v6450_v53, %s5209_s24  ;;  %v2558_v48 = vmul.f32 %v5481_v61, %v2539_v35 }
 0x5f2   : > { %1381 = vrot.lane.b32.xlu1 %v6455_v3, %s5209_s24 }
 0x5f4   : > { %1431 = vrot.lane.b32.xlu0 %v6450_v53, %s5210_s25 }
 0x5f6   : > { %1429 = vrot.lane.b32.xlu1 %v6455_v3, %s5210_s25  ;;  %v6469_v12 = vpop.xlane.xlu0 %2280 }
 0x5f8   : > { %2888 = vrot.lane.b32.xlu0 %v2557_v8, %s5211_s28 }
 0x5fa   : > { %2886 = vrot.lane.b32.xlu1 %v2556_v28, %s5211_s28  ;;  %v6476_v32 = vpop.xlane.xlu0 %2283 }
 0x5fc   : > { %2936 = vrot.lane.b32.xlu0 %v2557_v8, %s5208_s20 }
 0x5fd   : > { %v6480_v54 = vpop.xlane.xlu1 %2277 }
 0x5fe   : > { %2934 = vrot.lane.b32.xlu1 %v2556_v28, %s5208_s20  ;;  %v6483_v25 = vpop.xlane.xlu0 %2286 }
 0x600   : > { %2824 = vrot.lane.b32.xlu0 %v2557_v8, %s5206_s18  ;;  %v6527_v8 = vld [vmem:[%s6038_s13 + $0x18] sm:$0xff] }
 0x601   : > { %v2871_v34 = vpop.permute.xlu1 %2870 }
 0x602   : > { %2822 = vrot.lane.b32.xlu1 %v2556_v28, %s5206_s18  ;;  %v2873_v45 = vpop.permute.xlu0 %2872  ;;  %v6531_v28 = vld [vmem:[%s6038_s13 + $0x10] sm:$0xff] }
 0x604   : > { %1387 = vrot.lane.b32.xlu0 %v6490_v18, %s5209_s24 }
 0x605   : > { %v2919_v49 = vpop.permute.xlu1 %2918 }
 0x606   : > { %1385 = vrot.lane.b32.xlu1 %v6495_v26, %s5209_s24  ;;  %v2809_v36 = vpop.permute.xlu0 %2808  ;;  %v2964_v31 = vsel %vm1465_vm2, %v2871_v34, %v2919_v49 }
 0x607   : > { %v2980_v19 = vmul.f32 %v6523_v59, %v2964_v31  ;;  %v2853_v4 = vmul.f32 %v6527_v8, %v2809_v36  ;;  %v6559_v31 = vld [vmem:[%s6024_s27 + $0x28] sm:$0xff] }
 0x608   : > { %1435 = vrot.lane.b32.xlu0 %v6490_v18, %s5210_s25 }
 0x609   : > { %v2921_v63 = vpop.permute.xlu1 %2920 }
 0x60a   : > { %v2965_v57 = vsel %vm1465_vm2, %v2873_v45, %v2921_v63  ;;  %1433 = vrot.lane.b32.xlu1 %v6495_v26, %s5210_s25  ;;  %v2877_v9 = vpop.permute.xlu0 %2876  ;;  %v2559_v45 = vmul.f32 %v5481_v61, %v2540_v30  ;;  %v6554_v63 = vld [vmem:[%s6038_s13 + $0x28] sm:$0xff] }
 0x60b   : > { %v2981_v42 = vmul.f32 %v6513_v52, %v2965_v57  ;;  %v4924_v57 = vpop.eup %4923 }
 0x60c   : > { %1391 = vrot.lane.b32.xlu0 %v6509_v44, %s5209_s24  ;;  %v1111_v30 = vmul.f32 %v4924_v57, %v5695_v56 }
 0x60d   : > { %v2807_v50 = vpop.permute.xlu1 %2806  ;;  %v2997_v47 = vadd.f32 %v2981_v42, %v2853_v4 }
 0x60e   : > { %v2852_v39 = vmul.f32 %v6531_v28, %v2807_v50  ;;  %1389 = vrot.lane.b32.xlu1 %v6519_v2, %s5209_s24  ;;  %v2925_v51 = vpop.permute.xlu0 %2924  ;;  %v1112_v50 = vmul.f32 %v4922_v58, %v5703_v16  ;;  %v6583_v35 = vmul.f32 %v6245_v60, %v1111_v30 }
 0x60f   : > { %v2967_v7 = vsel %vm1465_vm2, %v2877_v9, %v2925_v51  ;;  %v6567_v9 = vld [vmem:[%s6038_s13 + $0x20] sm:$0xff] }
 0x610   : > { %v2996_v17 = vadd.f32 %v2980_v19, %v2852_v39  ;;  %1439 = vrot.lane.b32.xlu0 %v6509_v44, %s5210_s25  ;;  %v2983_v42 = vmul.f32 %v6559_v31, %v2967_v7  ;;  %v2509_v19 = vadd.f32 1e-06, %v2493_v62  ;;  %v6576_v51 = vmul.f32 %v6245_v60, %v1112_v50 }
 0x611   : > { %v2875_v33 = vpop.permute.xlu1 %2874 }
 0x612   : > { %v3019_v34 = vpack.c.bf16 %v2997_v47, %v2996_v17  ;;  %1437 = vrot.lane.b32.xlu1 %v6519_v2, %s5210_s25  ;;  %v2813_v49 = vpop.permute.xlu0 %2812  ;;  %v4926_v47 = vpop.eup %4925  ;;  %4931 = vrsqrt.f32 %v2509_v19 }
 0x613   : > { %v2855_v5 = vmul.f32 %v6554_v63, %v2813_v49  ;;  %v4928_v21 = vpop.eup %4927  ;;  %v2300_v49 = vmul.f32 0.0625, %v7943_v46 }
 0x614   : > { %2892 = vrot.lane.b32.xlu0 %v2559_v45, %s5211_s28  ;;  %4629 = vmatprep.subr.msk.bf16.mxu1 %vm1001_vm1, %v3019_v34  ;;  %v3054_v43 = vsel %vm1001_vm1, %v3019_v34, 0  ;;  %v4930_v58 = vpop.eup %4929 }
 0x615   : > { %v2923_v36 = vpop.permute.xlu1 %2922  ;;  %4559 = vmatpush3.bf16.xpose.msra.mxu1 %v3054_v43  ;;  %v2999_v4 = vadd.f32 %v2983_v42, %v2855_v5  ;;  %v7942_v43 = vld [vmem:[#allocation32_spill] sm:$0xff]  ;;  %v2316_v5 = vadd.f32 1e-06, %v2300_v49 }
 0x616   : > { %2890 = vrot.lane.b32.xlu1 %v2558_v48, %s5211_s28  ;;  %v2966_v15 = vsel %vm1465_vm2, %v2875_v33, %v2923_v36  ;;  %v7940_v33 = vld [vmem:[#allocation34_spill] sm:$0xff] }
 0x617   : > { %v2982_v14 = vmul.f32 %v6563_v27, %v2966_v15  ;;  %v1114_v34 = vmul.f32 %v4926_v47, %v7940_v33  ;;  %v2542_v57 = vmul.f32 %v4930_v58, %v7940_v33 }
 0x618   : > { %2940 = vrot.lane.b32.xlu0 %v2559_v45, %s5208_s20 }
 0x619   : > { %v2811_v37 = vpop.permute.xlu1 %2810  ;;  %v6596_v36 = vmul.f32 %v6245_v60, %v1114_v34  ;;  %v7948_v34 = vld [vmem:[#allocation62_spill] sm:$0xff] }
 0x61a   : > { %v2854_v1 = vmul.f32 %v6567_v9, %v2811_v37  ;;  %2938 = vrot.lane.b32.xlu1 %v2558_v48, %s5208_s20  ;;  %v7944_v37 = vld [vmem:[#allocation72_spill] sm:$0xff] }
 0x61b   : > { %v2303_v42 = vmul.f32 0.0625, %v7944_v37  ;;  %v7951_v37 = vld [vmem:[#allocation10_spill] sm:$0xff] }
 0x61c   : > { %v2998_v39 = vadd.f32 %v2982_v14, %v2854_v1  ;;  %2828 = vrot.lane.b32.xlu0 %v2559_v45, %s5206_s18  ;;  %v7941_v45 = vld [vmem:[#allocation73_spill] sm:$0xff]  ;;  %v4932_v15 = vpop.eup %4931  ;;  %v7945_v1 = vld [vmem:[#allocation71_spill] sm:$0xff] }
 0x61d   : > { %v2301_v10 = vmul.f32 0.0625, %v7941_v45  ;;  %v2541_v22 = vmul.f32 %v4932_v15, %v7942_v43  ;;  %v2302_v50 = vmul.f32 0.0625, %v7945_v1  ;;  %v2319_v19 = vadd.f32 1e-06, %v2303_v42 }
 0x61e   : > { %v3020_v0 = vpack.c.bf16 %v2999_v4, %v2998_v39  ;;  %2826 = vrot.lane.b32.xlu1 %v2558_v48, %s5206_s18  ;;  %v1113_v48 = vmul.f32 %v4928_v21, %v7942_v43  ;;  %v2305_v45 = vmul.f32 0.0625, %v7948_v34 }
 0x61f   : > { %v2317_v62 = vadd.f32 1e-06, %v2301_v10  ;;  %v2560_v14 = vmul.f32 %v5481_v61, %v2541_v22  ;;  %v2318_v39 = vadd.f32 1e-06, %v2302_v50 }
 0x620   : > { %1395 = vrot.lane.b32.xlu0 %v6576_v51, %s5209_s24  ;;  %4630 = vmatprep.subr.msk.bf16.mxu1 %vm1001_vm1, %v3020_v0  ;;  %v3057_v17 = vsel %vm1001_vm1, %v3020_v0, 0  ;;  %v6601_v7 = vmul.f32 %v6245_v60, %v1113_v48  ;;  %v2561_v60 = vmul.f32 %v5481_v61, %v2542_v57  ;;  %v7946_v0 = vld [vmem:[#allocation4_spill] sm:$0xff]  ;;  %v7949_v48 = vld [vmem:[#allocation51_spill] sm:$0xff]  ;;  %v2321_v49 = vadd.f32 1e-06, %v2305_v45  ;;  %v7950_v57 = vld [vmem:[#allocation5_spill] sm:$0xff] }
 0x621   : > { %4561 = vmatpush3.bf16.xpose.msra.mxu1 %v3057_v17  ;;  %4933 = vrsqrt.f32 %v2317_v62  ;;  %v7947_v17 = vld [vmem:[#allocation3_spill] sm:$0xff]  ;;  %v2304_v46 = vmul.f32 0.0625, %v7949_v48 }
 0x622   : > { %1393 = vrot.lane.b32.xlu1 %v6583_v35, %s5209_s24  ;;  %4935 = vrsqrt.f32 %v2316_v5 }
 0x623   : > { %4937 = vrsqrt.f32 %v2319_v19  ;;  %v2320_v62 = vadd.f32 1e-06, %v2304_v46 }
 0x624   : > { %1443 = vrot.lane.b32.xlu0 %v6576_v51, %s5210_s25  ;;  %4939 = vrsqrt.f32 %v2318_v39 }
 0x625   : > { %4941 = vrsqrt.f32 %v2321_v49  ;;  %v2309_v49 = vmul.f32 0.0625, %v6469_v12 }
 0x626   : > { %1441 = vrot.lane.b32.xlu1 %v6583_v35, %s5210_s25  ;;  %4943 = vrsqrt.f32 %v2320_v62 }
 0x628   : > { %1399 = vrot.lane.b32.xlu0 %v6596_v36, %s5209_s24 }
 0x62a   : > { %1397 = vrot.lane.b32.xlu1 %v6601_v7, %s5209_s24 }
 0x62b   : > { %v4934_v4 = vpop.eup %4933 }
 0x62c   : > { %1447 = vrot.lane.b32.xlu0 %v6596_v36, %s5210_s25  ;;  %v4936_v30 = vpop.eup %4935  ;;  %v2349_v47 = vmul.f32 %v4934_v4, %v7946_v0  ;;  %v7953_v4 = vld [vmem:[#allocation59_spill] sm:$0xff] }
 0x62d   : > { %v2348_v21 = vmul.f32 %v4936_v30, %v7947_v17  ;;  %v4938_v58 = vpop.eup %4937  ;;  %v2306_v39 = vmul.f32 0.0625, %v7953_v4 }
 0x62e   : > { %1445 = vrot.lane.b32.xlu1 %v6601_v7, %s5210_s25  ;;  %v2368_v61 = vmul.f32 %v6458_v20, %v2349_v47  ;;  %v4940_v15 = vpop.eup %4939  ;;  %v2351_v22 = vmul.f32 %v4938_v58, %v7950_v57 }
 0x62f   : > { %v2367_v10 = vmul.f32 %v6458_v20, %v2348_v21  ;;  %v2350_v42 = vmul.f32 %v4940_v15, %v7951_v37  ;;  %v4942_v21 = vpop.eup %4941  ;;  %v2322_v34 = vadd.f32 1e-06, %v2306_v39 }
 0x630   : > { %2896 = vrot.lane.b32.xlu0 %v2561_v60, %s5211_s28  ;;  %v2353_v46 = vmul.f32 %v4942_v21, %v7923_v11 }
 0x631   : > { %v2369_v19 = vmul.f32 %v6458_v20, %v2350_v42 }
 0x632   : > { %2894 = vrot.lane.b32.xlu1 %v2560_v14, %s5211_s28  ;;  %v2372_v62 = vmul.f32 %v6458_v20, %v2353_v46  ;;  %v6670_v46 = vld [vmem:[%s6024_s27 + $0x30] sm:$0xff] }
 0x634   : > { %2944 = vrot.lane.b32.xlu0 %v2561_v60, %s5208_s20 }
 0x636   : > { %2942 = vrot.lane.b32.xlu1 %v2560_v14, %s5208_s20 }
 0x638   : > { %2832 = vrot.lane.b32.xlu0 %v2561_v60, %s5206_s18  ;;  %v2370_v60 = vmul.f32 %v6458_v20, %v2351_v22  ;;  %v2308_v22 = vmul.f32 0.0625, %v6480_v54 }
 0x63a   : > { %2830 = vrot.lane.b32.xlu1 %v2560_v14, %s5206_s18  ;;  %v7952_v14 = vld [vmem:[#allocation52_spill] sm:$0xff]  ;;  %v2324_v12 = vadd.f32 1e-06, %v2308_v22 }
 0x63b   : > { %v2307_v1 = vmul.f32 0.0625, %v7952_v14  ;;  %v2325_v14 = vadd.f32 1e-06, %v2309_v49  ;;  %v6674_v49 = vld [vmem:[%s6038_s13 + $0x38] sm:$0xff] }
 0x63c   : > { %2644 = vrot.lane.b32.xlu0 %v2368_v61, %s5207_s19 }
 0x63d   : > { %v2323_v47 = vadd.f32 1e-06, %v2307_v1 }
 0x63e   : > { %2642 = vrot.lane.b32.xlu1 %v2367_v10, %s5207_s19 }
 0x63f   : > { %4945 = vrsqrt.f32 %v2323_v47  ;;  %v6665_v47 = vld [vmem:[%s6024_s27 + $0x38] sm:$0xff] }
 0x640   : > { %2692 = vrot.lane.b32.xlu0 %v2368_v61, %s5209_s24  ;;  %4947 = vrsqrt.f32 %v2322_v34 }
 0x641   : > { %4949 = vrsqrt.f32 %v2325_v14 }
 0x642   : > { %2690 = vrot.lane.b32.xlu1 %v2367_v10, %s5209_s24  ;;  %4951 = vrsqrt.f32 %v2324_v12 }
 0x643   : > { %v6631_v5 = vpop.xlane.xlu0 %2292 }
 0x644   : > { %2580 = vrot.lane.b32.xlu0 %v2368_v61, %s5204_s16 }
 0x646   : > { %2578 = vrot.lane.b32.xlu1 %v2367_v10, %s5204_s16  ;;  %v4944_v10 = vpop.eup %4943 }
 0x647   : > { %v6639_v50 = vpop.xlane.xlu0 %2295  ;;  %v2352_v15 = vmul.f32 %v4944_v10, %v7924_v23  ;;  %v2310_v23 = vmul.f32 0.0625, %v6476_v32 }
 0x648   : > { %2648 = vrot.lane.b32.xlu0 %v2370_v60, %s5207_s19 }
 0x649   : > { %v4946_v54 = vpop.eup %4945  ;;  %v2326_v32 = vadd.f32 1e-06, %v2310_v23  ;;  %v6703_v23 = vld [vmem:[%s6024_s27 + $0x48] sm:$0xff] }
 0x64a   : > { %v6644_v30 = vpop.xlane.xlu1 %2289  ;;  %2646 = vrot.lane.b32.xlu1 %v2369_v19, %s5207_s19  ;;  %v4948_v10 = vpop.eup %4947  ;;  %v2355_v14 = vmul.f32 %v4946_v54, %v5643_v55 }
 0x64b   : > { %v6647_v61 = vpop.xlane.xlu0 %2298 }
 0x64c   : > { %2696 = vrot.lane.b32.xlu0 %v2370_v60, %s5209_s24 }
 0x64e   : > { %v2879_v45 = vpop.permute.xlu1 %2878  ;;  %2694 = vrot.lane.b32.xlu1 %v2369_v19, %s5209_s24 }
 0x64f   : > { %v2881_v48 = vpop.permute.xlu0 %2880 }
 0x650   : > { %2584 = vrot.lane.b32.xlu0 %v2370_v60, %s5204_s16  ;;  %v2371_v60 = vmul.f32 %v6458_v20, %v2352_v15 }
 0x652   : > { %v2927_v58 = vpop.permute.xlu1 %2926  ;;  %2582 = vrot.lane.b32.xlu1 %v2369_v19, %s5204_s16 }
 0x653   : > { %v2817_v42 = vpop.permute.xlu0 %2816  ;;  %v2968_v39 = vsel %vm1465_vm2, %v2879_v45, %v2927_v58  ;;  %v6678_v58 = vld [vmem:[%s6038_s13 + $0x30] sm:$0xff] }
 0x654   : > { %2652 = vrot.lane.b32.xlu0 %v2372_v62, %s5207_s19  ;;  %v2857_v45 = vmul.f32 %v6674_v49, %v2817_v42  ;;  %v2354_v42 = vmul.f32 %v4948_v10, %v5636_v13 }
 0x656   : > { %v2929_v1 = vpop.permute.xlu1 %2928  ;;  %2650 = vrot.lane.b32.xlu1 %v2371_v60, %s5207_s19 }
 0x657   : > { %v2969_v19 = vsel %vm1465_vm2, %v2881_v48, %v2929_v1  ;;  %v2885_v4 = vpop.permute.xlu0 %2884  ;;  %v2984_v48 = vmul.f32 %v6670_v46, %v2968_v39  ;;  %v2311_v1 = vmul.f32 0.0625, %v6483_v25  ;;  %v2374_v39 = vmul.f32 %v6458_v20, %v2355_v14  ;;  %v6697_v14 = vld [vmem:[%s6038_s13 + $0x48] sm:$0xff] }
 0x658   : > { %2700 = vrot.lane.b32.xlu0 %v2372_v62, %s5209_s24  ;;  %v2985_v21 = vmul.f32 %v6665_v47, %v2969_v19 }
 0x659   : > { %v2327_v54 = vadd.f32 1e-06, %v2311_v1 }
 0x65a   : > { %v2815_v34 = vpop.permute.xlu1 %2814  ;;  %2698 = vrot.lane.b32.xlu1 %v2371_v60, %s5209_s24  ;;  %v3001_v12 = vadd.f32 %v2985_v21, %v2857_v45 }
 0x65b   : > { %v2856_v15 = vmul.f32 %v6678_v58, %v2815_v34  ;;  %v2933_v22 = vpop.permute.xlu0 %2932  ;;  %4953 = vrsqrt.f32 %v2327_v54 }
 0x65c   : > { %2588 = vrot.lane.b32.xlu0 %v2372_v62, %s5204_s16  ;;  %v2373_v62 = vmul.f32 %v6458_v20, %v2354_v42  ;;  %4955 = vrsqrt.f32 %v2326_v32 }
 0x65d   : > { %v3000_v19 = vadd.f32 %v2984_v48, %v2856_v15  ;;  %v2971_v48 = vsel %vm1465_vm2, %v2885_v4, %v2933_v22  ;;  %v6707_v22 = vld [vmem:[%s6024_s27 + $0x40] sm:$0xff] }
 0x65e   : > { %v2883_v11 = vpop.permute.xlu1 %2882  ;;  %2586 = vrot.lane.b32.xlu1 %v2371_v60, %s5204_s16  ;;  %v4950_v60 = vpop.eup %4949  ;;  %v2987_v4 = vmul.f32 %v6703_v23, %v2971_v48 }
 0x65f   : > { %v3021_v57 = vpack.c.bf16 %v3001_v12, %v3000_v19  ;;  %v2821_v34 = vpop.permute.xlu0 %2820  ;;  %v4952_v15 = vpop.eup %4951  ;;  %v2357_v12 = vmul.f32 %v4950_v60, %v5666_v24  ;;  %v6711_v19 = vld [vmem:[%s6038_s13 + $0x40] sm:$0xff] }
 0x660   : > { %2656 = vrot.lane.b32.xlu0 %v2374_v39, %s5207_s19 }
 0x661   : > { %4631 = vmatprep.subr.msk.bf16.mxu1 %vm1001_vm1, %v3021_v57  ;;  %v3060_v25 = vsel %vm1001_vm1, %v3021_v57, 0  ;;  %v2859_v57 = vmul.f32 %v6697_v14, %v2821_v34  ;;  %v2356_v34 = vmul.f32 %v4952_v15, %v5657_v40  ;;  %v2376_v48 = vmul.f32 %v6458_v20, %v2357_v12 }
 0x662   : > { %v2931_v21 = vpop.permute.xlu1 %2930  ;;  %2654 = vrot.lane.b32.xlu1 %v2373_v62, %s5207_s19  ;;  %4563 = vmatpush3.bf16.xpose.msra.mxu1 %v3060_v25  ;;  %v2313_v25 = vmul.f32 0.0625, %v6631_v5 }
 0x663   : > { %v1380_v10 = vpop.permute.xlu0 %1379  ;;  %v2970_v45 = vsel %vm1465_vm2, %v2883_v11, %v2931_v21  ;;  %v3003_v21 = vadd.f32 %v2987_v4, %v2859_v57 }
 0x664   : > { %2704 = vrot.lane.b32.xlu0 %v2374_v39, %s5209_s24  ;;  %v2986_v11 = vmul.f32 %v6707_v22, %v2970_v45  ;;  %v2312_v45 = vmul.f32 0.0625, %v6644_v30  ;;  %v2329_v15 = vadd.f32 1e-06, %v2313_v25 }
 0x665   : > { %v4954_v30 = vpop.eup %4953 }
 0x666   : > { %v2819_v1 = vpop.permute.xlu1 %2818  ;;  %2702 = vrot.lane.b32.xlu1 %v2373_v62, %s5209_s24  ;;  %v2328_v12 = vadd.f32 1e-06, %v2312_v45  ;;  %4957 = vrsqrt.f32 %v2329_v15  ;;  %v2315_v45 = vmul.f32 0.0625, %v6647_v61  ;;  %v1343_v61 = vmul.f32 %v6678_v58, %v6455_v3 }
 0x667   : > { %v2858_v42 = vmul.f32 %v6711_v19, %v2819_v1  ;;  %v1428_v54 = vpop.permute.xlu0 %1427 }
 0x668   : > { %2592 = vrot.lane.b32.xlu0 %v2374_v39, %s5204_s16  ;;  %v1471_v55 = vsel %vm1465_vm2, %v1380_v10, %v1428_v54  ;;  %v2375_v39 = vmul.f32 %v6458_v20, %v2356_v34  ;;  %4959 = vrsqrt.f32 %v2328_v12 }
 0x669   : > { %v3002_v60 = vadd.f32 %v2986_v11, %v2858_v42  ;;  %v1487_v57 = vmul.f32 %v6559_v31, %v1471_v55  ;;  %v1342_v11 = vmul.f32 %v6554_v63, %v6432_v29  ;;  %v1341_v42 = vmul.f32 %v6567_v9, %v6437_v41  ;;  %v4956_v55 = vpop.eup %4955 }
 0x66a   : > { %v1378_v32 = vpop.permute.xlu1 %1377  ;;  %2590 = vrot.lane.b32.xlu1 %v2373_v62, %s5204_s16  ;;  %v2358_v41 = vmul.f32 %v4956_v55, %v5675_v38 }
 0x66b   : > { %v3022_v24 = vpack.c.bf16 %v3003_v21, %v3002_v60  ;;  %v1384_v1 = vpop.permute.xlu0 %1383  ;;  %v2359_v21 = vmul.f32 %v4954_v30, %v5681_v6 }
 0x66c   : > { %2660 = vrot.lane.b32.xlu0 %v2376_v48, %s5207_s19 }
 0x66d   : > { %4632 = vmatprep.subr.msk.bf16.mxu1 %vm1001_vm1, %v3022_v24  ;;  %v3063_v5 = vsel %vm1001_vm1, %v3022_v24, 0  ;;  %v1503_v24 = vadd.f32 %v1487_v57, %v1342_v11  ;;  %v2378_v57 = vmul.f32 %v6458_v20, %v2359_v21 }
 0x66e   : > { %v1426_v62 = vpop.permute.xlu1 %1425  ;;  %2658 = vrot.lane.b32.xlu1 %v2375_v39, %s5207_s19  ;;  %4565 = vmatpush3.bf16.xpose.msra.mxu1 %v3063_v5 }
 0x66f   : > { %v1470_v10 = vsel %vm1465_vm2, %v1378_v32, %v1426_v62  ;;  %v1432_v4 = vpop.permute.xlu0 %1431  ;;  %v2314_v62 = vmul.f32 0.0625, %v6639_v50 }
 0x670   : > { %v1486_v54 = vmul.f32 %v6563_v27, %v1470_v10  ;;  %2708 = vrot.lane.b32.xlu0 %v2376_v48, %s5209_s24  ;;  %v1473_v60 = vsel %vm1465_vm2, %v1384_v1, %v1432_v4  ;;  %v2331_v10 = vadd.f32 1e-06, %v2315_v45  ;;  %v4958_v50 = vpop.eup %4957 }
 0x671   : > { %v1489_v15 = vmul.f32 %v6665_v47, %v1473_v60 }
 0x672   : > { %v1502_v34 = vadd.f32 %v1486_v54, %v1341_v42  ;;  %v1382_v25 = vpop.permute.xlu1 %1381  ;;  %2706 = vrot.lane.b32.xlu1 %v2375_v39, %s5209_s24  ;;  %v2330_v54 = vadd.f32 1e-06, %v2314_v62  ;;  %v4960_v3 = vpop.eup %4959  ;;  %4961 = vrsqrt.f32 %v2331_v10  ;;  %v6769_v62 = vld [vmem:[%s6024_s27 + $0x58] sm:$0xff] }
 0x673   : > { %v2889_v29 = vpop.permute.xlu0 %2888 }
 0x674   : > { %v1740_v32 = vpack.c.bf16 %v1503_v24, %v1502_v34  ;;  %2596 = vrot.lane.b32.xlu0 %v2376_v48, %s5204_s16  ;;  %v1344_v48 = vmul.f32 %v6674_v49, %v6450_v53  ;;  %v2361_v34 = vmul.f32 %v4958_v50, %v5703_v16  ;;  %4963 = vrsqrt.f32 %v2330_v54 }
 0x676   : > { %v1430_v5 = vpop.permute.xlu1 %1429  ;;  %2594 = vrot.lane.b32.xlu1 %v2375_v39, %s5204_s16  ;;  %4512 = vmatprep.mubr.msk.bf16.mxu1 %vm1001_vm1, %v1740_v32  ;;  %v2377_v39 = vmul.f32 %v6458_v20, %v2358_v41  ;;  %v1505_v4 = vadd.f32 %v1489_v15, %v1344_v48  ;;  %v2360_v32 = vmul.f32 %v4960_v3, %v5695_v56  ;;  %v6763_v41 = vld [vmem:[%s6038_s13 + $0x58] sm:$0xff] }
 0x677   : > { %v1472_v1 = vsel %vm1465_vm2, %v1382_v25, %v1430_v5  ;;  %v2937_v30 = vpop.permute.xlu0 %2936  ;;  %v2380_v5 = vmul.f32 %v6458_v20, %v2361_v34 }
 0x678   : > { %v1488_v12 = vmul.f32 %v6670_v46, %v1472_v1  ;;  %2664 = vrot.lane.b32.xlu0 %v2378_v57, %s5207_s19  ;;  %v2973_v21 = vsel %vm1465_vm2, %v2889_v29, %v2937_v30  ;;  %v6773_v29 = vld [vmem:[%s6024_s27 + $0x50] sm:$0xff] }
 0x679   : > { %v2989_v1 = vmul.f32 %v6769_v62, %v2973_v21 }
 0x67a   : > { %v1504_v11 = vadd.f32 %v1488_v12, %v1343_v61  ;;  %v2887_v42 = vpop.permute.xlu1 %2886  ;;  %2662 = vrot.lane.b32.xlu1 %v2377_v39, %s5207_s19  ;;  %v2379_v12 = vmul.f32 %v6458_v20, %v2360_v32  ;;  %v1345_v32 = vmul.f32 %v6711_v19, %v6495_v26 }
 0x67b   : > { %v2825_v55 = vpop.permute.xlu0 %2824 }
 0x67c   : > { %v1741_v53 = vpack.c.bf16 %v1505_v4, %v1504_v11  ;;  %2712 = vrot.lane.b32.xlu0 %v2378_v57, %s5209_s24  ;;  %v2861_v45 = vmul.f32 %v6763_v41, %v2825_v55  ;;  %v4962_v11 = vpop.eup %4961 }
 0x67d   : > { %v2363_v34 = vmul.f32 %v4962_v11, %v7940_v33 }
 0x67e   : > { %v2935_v24 = vpop.permute.xlu1 %2934  ;;  %2710 = vrot.lane.b32.xlu1 %v2377_v39, %s5209_s24  ;;  %4513 = vmatmul.mubr.msk.bf16.gmra.mrb[36].mxu1 %vm1001_vm1, %v1741_v53  ;;  %v4964_v55 = vpop.eup %4963 }
 0x67f   : > { %v1388_v25 = vpop.permute.xlu0 %1387  ;;  %v2972_v60 = vsel %vm1465_vm2, %v2887_v42, %v2935_v24 }
 0x680   : > { %2600 = vrot.lane.b32.xlu0 %v2378_v57, %s5204_s16  ;;  %v2988_v30 = vmul.f32 %v6773_v29, %v2972_v60  ;;  %v6777_v57 = vld [vmem:[%s6038_s13 + $0x50] sm:$0xff] }
 0x682   : > { %v2823_v15 = vpop.permute.xlu1 %2822  ;;  %2598 = vrot.lane.b32.xlu1 %v2377_v39, %s5204_s16  ;;  %v3005_v39 = vadd.f32 %v2989_v1, %v2861_v45 }
 0x683   : > { %v2860_v48 = vmul.f32 %v6777_v57, %v2823_v15  ;;  %v1436_v61 = vpop.permute.xlu0 %1435  ;;  %v2362_v15 = vmul.f32 %v4964_v55, %v7942_v43 }
 0x684   : > { %2668 = vrot.lane.b32.xlu0 %v2380_v5, %s5207_s19  ;;  %v1475_v50 = vsel %vm1465_vm2, %v1388_v25, %v1436_v61  ;;  %v1346_v25 = vmul.f32 %v6697_v14, %v6490_v18  ;;  %v2382_v61 = vmul.f32 %v6458_v20, %v2363_v34 }
 0x685   : > { %v3004_v10 = vadd.f32 %v2988_v30, %v2860_v48  ;;  %v1491_v3 = vmul.f32 %v6703_v23, %v1475_v50  ;;  %v2381_v26 = vmul.f32 %v6458_v20, %v2362_v15  ;;  %v1347_v50 = vmul.f32 %v6777_v57, %v6519_v2 }
 0x686   : > { %v1386_v4 = vpop.permute.xlu1 %1385  ;;  %2666 = vrot.lane.b32.xlu1 %v2379_v12, %s5207_s19 }
 0x687   : > { %v3023_v42 = vpack.c.bf16 %v3005_v39, %v3004_v10  ;;  %v1392_v54 = vpop.permute.xlu0 %1391  ;;  %v1507_v1 = vadd.f32 %v1491_v3, %v1346_v25 }
 0x688   : > { %2716 = vrot.lane.b32.xlu0 %v2380_v5, %s5209_s24 }
 0x689   : > { %4633 = vmatprep.subr.msk.bf16.mxu1 %vm1001_vm1, %v3023_v42  ;;  %v3066_v53 = vsel %vm1001_vm1, %v3023_v42, 0  ;;  %v1348_v42 = vmul.f32 %v6763_v41, %v6509_v44 }
 0x68a   : > { %v1434_v24 = vpop.permute.xlu1 %1433  ;;  %2714 = vrot.lane.b32.xlu1 %v2379_v12, %s5209_s24  ;;  %4567 = vmatpush3.bf16.xpose.msra.mxu1 %v3066_v53 }
 0x68b   : > { %v1474_v21 = vsel %vm1465_vm2, %v1386_v4, %v1434_v24  ;;  %v1440_v60 = vpop.permute.xlu0 %1439 }
 0x68c   : > { %v1490_v45 = vmul.f32 %v6707_v22, %v1474_v21  ;;  %2604 = vrot.lane.b32.xlu0 %v2380_v5, %s5204_s16  ;;  %v1477_v39 = vsel %vm1465_vm2, %v1392_v54, %v1440_v60  ;;  %v6820_v60 = vld [vmem:[%s6038_s13 + $0x68] sm:$0xff] }
 0x68d   : > { %v1493_v4 = vmul.f32 %v6769_v62, %v1477_v39 }
 0x68e   : > { %v1506_v30 = vadd.f32 %v1490_v45, %v1345_v32  ;;  %v1390_v48 = vpop.permute.xlu1 %1389  ;;  %2602 = vrot.lane.b32.xlu1 %v2379_v12, %s5204_s16  ;;  %v6824_v45 = vld [vmem:[%s6024_s27 + $0x68] sm:$0xff] }
 0x68f   : > { %v2893_v10 = vpop.permute.xlu0 %2892  ;;  %v1509_v20 = vadd.f32 %v1493_v4, %v1348_v42 }
 0x690   : > { %v1742_v18 = vpack.c.bf16 %v1507_v1, %v1506_v30  ;;  %2672 = vrot.lane.b32.xlu0 %v2382_v61, %s5207_s19  ;;  %v6828_v1 = vld [vmem:[%s6024_s27 + $0x60] sm:$0xff] }
 0x692   : > { %v1438_v5 = vpop.permute.xlu1 %1437  ;;  %2670 = vrot.lane.b32.xlu1 %v2381_v26, %s5207_s19  ;;  %4516 = vmatprep.mubr.msk.bf16.mxu1 %vm1001_vm1, %v1742_v18 }
 0x693   : > { %v1476_v11 = vsel %vm1465_vm2, %v1390_v48, %v1438_v5  ;;  %v2941_v12 = vpop.permute.xlu0 %2940  ;;  %v6832_v48 = vld [vmem:[%s6038_s13 + $0x60] sm:$0xff] }
 0x694   : > { %v1492_v54 = vmul.f32 %v6773_v29, %v1476_v11  ;;  %2720 = vrot.lane.b32.xlu0 %v2382_v61, %s5209_s24  ;;  %v2975_v34 = vsel %vm1465_vm2, %v2893_v10, %v2941_v12 }
 0x695   : > { %v2991_v15 = vmul.f32 %v6824_v45, %v2975_v34 }
 0x696   : > { %v1508_v55 = vadd.f32 %v1492_v54, %v1347_v50  ;;  %v2891_v53 = vpop.permute.xlu1 %2890  ;;  %2718 = vrot.lane.b32.xlu1 %v2381_v26, %s5209_s24 }
 0x697   : > { %v2829_v3 = vpop.permute.xlu0 %2828 }
 0x698   : > { %v1743_v24 = vpack.c.bf16 %v1509_v20, %v1508_v55  ;;  %2608 = vrot.lane.b32.xlu0 %v2382_v61, %s5204_s16  ;;  %v2863_v25 = vmul.f32 %v6820_v60, %v2829_v3 }
 0x69a   : > { %v2939_v44 = vpop.permute.xlu1 %2938  ;;  %2606 = vrot.lane.b32.xlu1 %v2381_v26, %s5204_s16  ;;  %4517 = vmatmul.mubr.msk.bf16.gmra.mrb[40].mxu1 %vm1001_vm1, %v1743_v24  ;;  %v3007_v10 = vadd.f32 %v2991_v15, %v2863_v25  ;;  %s5213_s16 = smov 64  }
 0x69b   : > { %v1396_v2 = vpop.permute.xlu0 %1395  ;;  %v2974_v21 = vsel %vm1465_vm2, %v2891_v53, %v2939_v44  ;;  %v1350_v44 = vmul.f32 %v6820_v60, %v6576_v51 }
 0x69c   : > { %v2990_v30 = vmul.f32 %v6828_v1, %v2974_v21 }
 0x69e   : > { %v2827_v32 = vpop.permute.xlu1 %2826 }
 0x69f   : > { %v2862_v61 = vmul.f32 %v6832_v48, %v2827_v32  ;;  %v1444_v39 = vpop.permute.xlu0 %1443 }
 0x6a0   : > { %v1479_v5 = vsel %vm1465_vm2, %v1396_v2, %v1444_v39  ;;  %v1349_v2 = vmul.f32 %v6832_v48, %v6583_v35  ;;  %v6847_v39 = vld [vmem:[%s6024_s27 + $0x78] sm:$0xff] }
 0x6a1   : > { %v3006_v18 = vadd.f32 %v2990_v30, %v2862_v61  ;;  %v1495_v20 = vmul.f32 %v6824_v45, %v1479_v5  ;;  %v6858_v5 = vld [vmem:[%s6038_s13 + $0x70] sm:$0xff] }
 0x6a2   : > { %v1394_v26 = vpop.permute.xlu1 %1393 }
 0x6a3   : > { %v3024_v4 = vpack.c.bf16 %v3007_v10, %v3006_v18  ;;  %v4510_v11 = vpop.f32.mrb[32].mxu1  ;;  %v1400_v12 = vpop.permute.xlu0 %1399  ;;  %v1511_v21 = vadd.f32 %v1495_v20, %v1350_v44 }
 0x6a4   : > { %v1836_v42 = vpop.f32.mrb[33].mxu1 }
 0x6a5   : > { %v4511_v50 = vpop.f32.mrb[34].mxu1  ;;  %4634 = vmatprep.subr.msk.bf16.mxu1 %vm1001_vm1, %v3024_v4  ;;  %v3069_v54 = vsel %vm1001_vm1, %v3024_v4, 0 }
 0x6a6   : > { %v1442_v55 = vpop.permute.xlu1 %1441  ;;  %v1839_v53 = vpop.f32.mrb[35].mxu1  ;;  %4569 = vmatpush3.bf16.xpose.msra.mxu1 %v3069_v54  ;;  %v6863_v54 = vld [vmem:[%s6024_s27 + $0x70] sm:$0xff] }
 0x6a7   : > { %v1478_v3 = vsel %vm1465_vm2, %v1394_v26, %v1442_v55  ;;  %v1448_v24 = vpop.permute.xlu0 %1447  ;;  %v6853_v26 = vld [vmem:[%s6038_s13 + $0x78] sm:$0xff] }
 0x6a8   : > { %v1494_v34 = vmul.f32 %v6828_v1, %v1478_v3  ;;  %v1481_v15 = vsel %vm1465_vm2, %v1400_v12, %v1448_v24  ;;  %v1352_v4 = vmul.f32 %v6853_v26, %v6596_v36  ;;  %v1351_v12 = vmul.f32 %v6858_v5, %v6601_v7 }
 0x6a9   : > { %v1497_v10 = vmul.f32 %v6847_v39, %v1481_v15 }
 0x6aa   : > { %v1510_v25 = vadd.f32 %v1494_v34, %v1349_v2  ;;  %v1398_v32 = vpop.permute.xlu1 %1397  ;;  %v6866_v34 = vmul.f32 0.25, %v1839_v53 }
 0x6ab   : > { %v2897_v30 = vpop.permute.xlu0 %2896  ;;  %v1513_v55 = vadd.f32 %v1497_v10, %v1352_v4  ;;  %v6879_v4 = vmul.f32 0.25, %v1836_v42 }
 0x6ac   : > { %v1744_v61 = vpack.c.bf16 %v1511_v21, %v1510_v25 }
 0x6ae   : > { %v1446_v18 = vpop.permute.xlu1 %1445  ;;  %4520 = vmatprep.mubr.msk.bf16.mxu1 %vm1001_vm1, %v1744_v61 }
 0x6af   : > { %v1480_v51 = vsel %vm1465_vm2, %v1398_v32, %v1446_v18  ;;  %v2945_v35 = vpop.permute.xlu0 %2944  ;;  %v6872_v32 = vmul.f32 0.25, %v4510_v11 }
 0x6b0   : > { %v1496_v20 = vmul.f32 %v6863_v54, %v1480_v51  ;;  %v2977_v25 = vsel %vm1465_vm2, %v2897_v30, %v2945_v35  ;;  %v6881_v30 = vmul.f32 0.25, %v4511_v50 }
 0x6b1   : > { %v2993_v10 = vmul.f32 %v6847_v39, %v2977_v25 }
 0x6b2   : > { %v1512_v3 = vadd.f32 %v1496_v20, %v1351_v12  ;;  %v2895_v24 = vpop.permute.xlu1 %2894 }
 0x6b3   : > { %v2833_v44 = vpop.permute.xlu0 %2832 }
 0x6b4   : > { %v1745_v2 = vpack.c.bf16 %v1513_v55, %v1512_v3  ;;  %v2865_v15 = vmul.f32 %v6853_v26, %v2833_v44 }
 0x6b6   : > { %v2943_v21 = vpop.permute.xlu1 %2942  ;;  %4521 = vmatmul.mubr.msk.bf16.gmra.mrb[44].mxu1 %vm1001_vm1, %v1745_v2  ;;  %v3009_v35 = vadd.f32 %v2993_v10, %v2865_v15  ;;  %v5173_v2 = vld [vmem:[%s6038_s13 + $0x8] sm:$0xff] }
 0x6b7   : > { %1917 = vmax.xlane.f32.xlu0 %v6866_v34  ;;  %v2645_v36 = vpop.permute.xlu0 %2644  ;;  %v2976_v7 = vsel %vm1465_vm2, %v2895_v24, %v2943_v21 }
 0x6b8   : > { %v2992_v53 = vmul.f32 %v6863_v54, %v2976_v7  ;;  %v5174_v7 = vld [vmem:[%s6024_s27 + $0x8] sm:$0xff] }
 0x6ba   : > { %v2831_v61 = vpop.permute.xlu1 %2830 }
 0x6bb   : > { %v2864_v18 = vmul.f32 %v6858_v5, %v2831_v61  ;;  %1919 = vmax.xlane.f32.xlu0 %v6872_v32  ;;  %v2693_v51 = vpop.permute.xlu0 %2692  ;;  %v5175_v61 = vld [vmem:[%s6024_s27] sm:$0xff] }
 0x6bc   : > { %v2739_v24 = vsel %vm1465_vm2, %v2645_v36, %v2693_v51 }
 0x6bd   : > { %v3008_v11 = vadd.f32 %v2992_v53, %v2864_v18  ;;  %v2755_v15 = vmul.f32 %v5174_v7, %v2739_v24  ;;  %v5176_v53 = vld [vmem:[%s6038_s13] sm:$0xff] }
 0x6be   : > { %v2643_v12 = vpop.permute.xlu1 %2642  ;;  %1915 = vmax.xlane.f32.xlu1 %v6879_v4 }
 0x6bf   : > { %v3025_v20 = vpack.c.bf16 %v3009_v35, %v3008_v11  ;;  %1921 = vmax.xlane.f32.xlu0 %v6881_v30  ;;  %v2581_v55 = vpop.permute.xlu0 %2580 }
 0x6c0   : > { %v2627_v21 = vmul.f32 %v5173_v2, %v2581_v55 }
 0x6c1   : > { %4635 = vmatprep.subr.msk.bf16.mxu1 %vm1001_vm1, %v3025_v20  ;;  %v3072_v42 = vsel %vm1001_vm1, %v3025_v20, 0 }
 0x6c2   : > { %v2691_v3 = vpop.permute.xlu1 %2690  ;;  %4571 = vmatpush3.bf16.xpose.msra.mxu1 %v3072_v42  ;;  %v2771_v11 = vadd.f32 %v2755_v15, %v2627_v21 }
 0x6c3   : > { %v2649_v50 = vpop.permute.xlu0 %2648  ;;  %v2738_v44 = vsel %vm1465_vm2, %v2643_v12, %v2691_v3 }
 0x6c4   : > { %v2754_v10 = vmul.f32 %v5175_v61, %v2738_v44 }
 0x6c6   : > { %v2579_v25 = vpop.permute.xlu1 %2578 }
 0x6c7   : > { %v2626_v18 = vmul.f32 %v5176_v53, %v2579_v25  ;;  %v2697_v35 = vpop.permute.xlu0 %2696 }
 0x6c8   : > { %v2741_v12 = vsel %vm1465_vm2, %v2649_v50, %v2697_v35 }
 0x6c9   : > { %v2770_v33 = vadd.f32 %v2754_v10, %v2626_v18  ;;  %v2757_v44 = vmul.f32 %v6513_v52, %v2741_v12 }
 0x6ca   : > { %v2647_v20 = vpop.permute.xlu1 %2646 }
 0x6cb   : > { %v3010_v43 = vpack.c.bf16 %v2771_v11, %v2770_v33  ;;  %v2585_v42 = vpop.permute.xlu0 %2584 }
 0x6cc   : > { %v2629_v3 = vmul.f32 %v6527_v8, %v2585_v42 }
 0x6cd   : > { %4572 = vmatprep.mubr.msk.bf16.mxu1 %vm1001_vm1, %v3010_v43 }
 0x6ce   : > { %v2695_v36 = vpop.permute.xlu1 %2694  ;;  %v2773_v33 = vadd.f32 %v2757_v44, %v2629_v3 }
 0x6cf   : > { %v2653_v51 = vpop.permute.xlu0 %2652  ;;  %v2740_v55 = vsel %vm1465_vm2, %v2647_v20, %v2695_v36 }
 0x6d0   : > { %v2756_v2 = vmul.f32 %v6523_v59, %v2740_v55 }
 0x6d2   : > { %v2583_v24 = vpop.permute.xlu1 %2582 }
 0x6d3   : > { %v2628_v21 = vmul.f32 %v6531_v28, %v2583_v24  ;;  %v2701_v25 = vpop.permute.xlu0 %2700 }
 0x6d4   : > { %v2743_v53 = vsel %vm1465_vm2, %v2653_v51, %v2701_v25 }
 0x6d5   : > { %v2772_v7 = vadd.f32 %v2756_v2, %v2628_v21  ;;  %v2759_v59 = vmul.f32 %v6559_v31, %v2743_v53 }
 0x6d6   : > { %v2651_v15 = vpop.permute.xlu1 %2650 }
 0x6d7   : > { %v3011_v43 = vpack.c.bf16 %v2773_v33, %v2772_v7  ;;  %v2589_v61 = vpop.permute.xlu0 %2588 }
 0x6d8   : > { %v2631_v52 = vmul.f32 %v6554_v63, %v2589_v61 }
 0x6d9   : > { %4573 = vmatmul.mubr.msk.bf16.vlgmr.msra.gmra.mrb[48].mxu1 %vm1001_vm1, %v3011_v43 }
 0x6da   : > { %v2699_v50 = vpop.permute.xlu1 %2698  ;;  %v2775_v20 = vadd.f32 %v2759_v59, %v2631_v52 }
 0x6db   : > { %v2657_v10 = vpop.permute.xlu0 %2656  ;;  %v2742_v8 = vsel %vm1465_vm2, %v2651_v15, %v2699_v50 }
 0x6dc   : > { %v2758_v28 = vmul.f32 %v6563_v27, %v2742_v8 }
 0x6de   : > { %v2587_v18 = vpop.permute.xlu1 %2586 }
 0x6df   : > { %v2630_v35 = vmul.f32 %v6567_v9, %v2587_v18  ;;  %v2705_v11 = vpop.permute.xlu0 %2704 }
 0x6e0   : > { %v2745_v24 = vsel %vm1465_vm2, %v2657_v10, %v2705_v11 }
 0x6e1   : > { %v2774_v42 = vadd.f32 %v2758_v28, %v2630_v35  ;;  %v2761_v27 = vmul.f32 %v6665_v47, %v2745_v24 }
 0x6e2   : > { %v2655_v36 = vpop.permute.xlu1 %2654 }
 0x6e3   : > { %v3012_v12 = vpack.c.bf16 %v2775_v20, %v2774_v42  ;;  %v2593_v55 = vpop.permute.xlu0 %2592 }
 0x6e4   : > { %v2633_v31 = vmul.f32 %v6674_v49, %v2593_v55 }
 0x6e5   : > { %4576 = vmatprep.mubr.msk.bf16.mxu1 %vm1001_vm1, %v3012_v12 }
 0x6e6   : > { %v2703_v51 = vpop.permute.xlu1 %2702  ;;  %v2777_v25 = vadd.f32 %v2761_v27, %v2633_v31 }
 0x6e7   : > { %v2661_v3 = vpop.permute.xlu0 %2660  ;;  %v2744_v63 = vsel %vm1465_vm2, %v2655_v36, %v2703_v51 }
 0x6e8   : > { %v2760_v9 = vmul.f32 %v6670_v46, %v2744_v63 }
 0x6ea   : > { %v2591_v44 = vpop.permute.xlu1 %2590 }
 0x6eb   : > { %v2632_v2 = vmul.f32 %v6678_v58, %v2591_v44  ;;  %v2709_v21 = vpop.permute.xlu0 %2708 }
 0x6ec   : > { %v2747_v10 = vsel %vm1465_vm2, %v2661_v3, %v2709_v21 }
 0x6ed   : > { %v2776_v33 = vadd.f32 %v2760_v9, %v2632_v2  ;;  %v2763_v46 = vmul.f32 %v6703_v23, %v2747_v10 }
 0x6ee   : > { %v2659_v7 = vpop.permute.xlu1 %2658 }
 0x6ef   : > { %v3013_v15 = vpack.c.bf16 %v2777_v25, %v2776_v33  ;;  %v2597_v43 = vpop.permute.xlu0 %2596 }
 0x6f0   : > { %v2635_v47 = vmul.f32 %v6697_v14, %v2597_v43 }
 0x6f1   : > { %4577 = vmatmul.mubr.msk.bf16.gmra.mrb[52].mxu1 %vm1001_vm1, %v3013_v15 }
 0x6f2   : > { %v2707_v61 = vpop.permute.xlu1 %2706  ;;  %v2779_v18 = vadd.f32 %v2763_v46, %v2635_v47 }
 0x6f3   : > { %v2665_v50 = vpop.permute.xlu0 %2664  ;;  %v2746_v49 = vsel %vm1465_vm2, %v2659_v7, %v2707_v61 }
 0x6f4   : > { %v2762_v58 = vmul.f32 %v6707_v22, %v2746_v49 }
 0x6f6   : > { %v2595_v53 = vpop.permute.xlu1 %2594 }
 0x6f7   : > { %v2634_v8 = vmul.f32 %v6711_v19, %v2595_v53  ;;  %v2713_v52 = vpop.permute.xlu0 %2712 }
 0x6f8   : > { %v2749_v36 = vsel %vm1465_vm2, %v2665_v50, %v2713_v52 }
 0x6f9   : > { %v2778_v59 = vadd.f32 %v2762_v58, %v2634_v8  ;;  %v2765_v22 = vmul.f32 %v6769_v62, %v2749_v36 }
 0x6fa   : > { %v2663_v28 = vpop.permute.xlu1 %2662 }
 0x6fb   : > { %v3014_v35 = vpack.c.bf16 %v2779_v18, %v2778_v59  ;;  %v2601_v11 = vpop.permute.xlu0 %2600 }
 0x6fc   : > { %v2637_v23 = vmul.f32 %v6763_v41, %v2601_v11 }
 0x6fd   : > { %4580 = vmatprep.mubr.msk.bf16.mxu1 %vm1001_vm1, %v3014_v35 }
 0x6fe   : > { %v2711_v20 = vpop.permute.xlu1 %2710  ;;  %v2781_v3 = vadd.f32 %v2765_v22, %v2637_v23 }
 0x6ff   : > { %v2669_v42 = vpop.permute.xlu0 %2668  ;;  %v2748_v14 = vsel %vm1465_vm2, %v2663_v28, %v2711_v20 }
 0x700   : > { %v2764_v19 = vmul.f32 %v6773_v29, %v2748_v14 }
 0x702   : > { %v2599_v12 = vpop.permute.xlu1 %2598 }
 0x703   : > { %v2636_v55 = vmul.f32 %v6777_v57, %v2599_v12  ;;  %v2717_v51 = vpop.permute.xlu0 %2716 }
 0x704   : > { %v2751_v2 = vsel %vm1465_vm2, %v2669_v42, %v2717_v51 }
 0x705   : > { %v2780_v24 = vadd.f32 %v2764_v19, %v2636_v55  ;;  %v2767_v29 = vmul.f32 %v6824_v45, %v2751_v2 }
 0x706   : > { %v2667_v63 = vpop.permute.xlu1 %2666 }
 0x707   : > { %v3015_v31 = vpack.c.bf16 %v2781_v3, %v2780_v24  ;;  %v2605_v44 = vpop.permute.xlu0 %2604 }
 0x708   : > { %v2639_v62 = vmul.f32 %v6820_v60, %v2605_v44 }
 0x709   : > { %4581 = vmatmul.mubr.msk.bf16.gmra.mrb[56].mxu1 %vm1001_vm1, %v3015_v31 }
 0x70a   : > { %v2715_v27 = vpop.permute.xlu1 %2714  ;;  %v2783_v7 = vadd.f32 %v2767_v29, %v2639_v62 }
 0x70b   : > { %v2673_v9 = vpop.permute.xlu0 %2672  ;;  %v2750_v41 = vsel %vm1465_vm2, %v2667_v63, %v2715_v27 }
 0x70c   : > { %v2766_v57 = vmul.f32 %v6828_v1, %v2750_v41 }
 0x70e   : > { %v2603_v21 = vpop.permute.xlu1 %2602 }
 0x70f   : > { %v2638_v25 = vmul.f32 %v6832_v48, %v2603_v21  ;;  %v2721_v33 = vpop.permute.xlu0 %2720 }
 0x710   : > { %v2753_v49 = vsel %vm1465_vm2, %v2673_v9, %v2721_v33 }
 0x711   : > { %v2782_v15 = vadd.f32 %v2766_v57, %v2638_v25  ;;  %v2769_v1 = vmul.f32 %v6847_v39, %v2753_v49 }
 0x712   : > { %v2671_v43 = vpop.permute.xlu1 %2670 }
 0x713   : > { %v3016_v61 = vpack.c.bf16 %v2783_v7, %v2782_v15  ;;  %v2609_v50 = vpop.permute.xlu0 %2608 }
 0x714   : > { %v2641_v47 = vmul.f32 %v6853_v26, %v2609_v50 }
 0x715   : > { %4584 = vmatprep.mubr.msk.bf16.mxu1 %vm1001_vm1, %v3016_v61 }
 0x716   : > { %v2719_v10 = vpop.permute.xlu1 %2718  ;;  %v2785_v46 = vadd.f32 %v2769_v1, %v2641_v47 }
 0x717   : > { %v2752_v60 = vsel %vm1465_vm2, %v2671_v43, %v2719_v10 }
 0x718   : > { %v2768_v48 = vmul.f32 %v6863_v54, %v2752_v60 }
 0x71a   : > { %v2607_v45 = vpop.permute.xlu1 %2606 }
 0x71b   : > { %v2640_v53 = vmul.f32 %v6858_v5, %v2607_v45 }
 0x71d   : > { %v2784_v58 = vadd.f32 %v2768_v48, %v2640_v53 }
 0x71f   : > { %v3017_v8 = vpack.c.bf16 %v2785_v46, %v2784_v58 }
 0x721   : > { %4585 = vmatmul.mubr.msk.bf16.gmra.mrb[60].mxu1 %vm1001_vm1, %v3017_v8 }
 0x744   : > { %v1918_v46 = vpop.xlane.xlu0 %1917 }
 0x74b   : > { %v1916_v58 = vpop.xlane.xlu1 %1915 }
 0x74c   : > { %v1947_v8 = vsub.f32 %v6879_v4, %v1916_v58 }
 0x751   : > { %v4514_v52 = vpop.f32.mrb[36].mxu1 }
 0x752   : > { %v1852_v18 = vpop.f32.mrb[37].mxu1  ;;  %v6948_v39 = vmul.f32 0.25, %v4514_v52  ;;  %v1920_v52 = vpop.xlane.xlu0 %1919 }
 0x753   : > { %v6943_v59 = vmul.f32 0.25, %v1852_v18  ;;  %v4515_v28 = vpop.f32.mrb[38].mxu1  ;;  %v1948_v18 = vsub.f32 %v6866_v34, %v1918_v46 }
 0x754   : > { %v1855_v35 = vpop.f32.mrb[39].mxu1  ;;  %v6951_v26 = vmul.f32 0.25, %v4515_v28  ;;  %v1963_v28 = vmul.f32 1.442695, %v1947_v8 }
 0x755   : > { %v6945_v11 = vmul.f32 0.25, %v1855_v35  ;;  %1923 = vmax.xlane.f32.xlu1 %v6943_v59 }
 0x756   : > { %4965 = vpow2.f32 %v1963_v28 }
 0x757   : > { %1925 = vmax.xlane.f32.xlu0 %v6945_v11 }
 0x759   : > { %1927 = vmax.xlane.f32.xlu1 %v6948_v39 }
 0x75b   : > { %1929 = vmax.xlane.f32.xlu0 %v6951_v26 }
 0x76d   : > { %v4518_v5 = vpop.f32.mrb[40].mxu1 }
 0x76e   : > { %v1868_v54 = vpop.f32.mrb[41].mxu1  ;;  %v6960_v23 = vmul.f32 0.25, %v4518_v5 }
 0x76f   : > { %v6955_v20 = vmul.f32 0.25, %v1868_v54  ;;  %v4519_v42 = vpop.f32.mrb[42].mxu1 }
 0x770   : > { %v1871_v36 = vpop.f32.mrb[43].mxu1  ;;  %v6963_v12 = vmul.f32 0.25, %v4519_v42 }
 0x771   : > { %v6957_v14 = vmul.f32 0.25, %v1871_v36  ;;  %1931 = vmax.xlane.f32.xlu1 %v6955_v20  ;;  %v1965_v36 = vmul.f32 1.442695, %v1948_v18 }
 0x773   : > { %1933 = vmax.xlane.f32.xlu0 %v6957_v14  ;;  %4967 = vpow2.f32 %v1965_v36 }
 0x775   : > { %1935 = vmax.xlane.f32.xlu1 %v6960_v23 }
 0x777   : > { %1937 = vmax.xlane.f32.xlu0 %v6963_v12 }
 0x789   : > { %v4522_v22 = vpop.f32.mrb[44].mxu1 }
 0x78a   : > { %v1884_v19 = vpop.f32.mrb[45].mxu1  ;;  %v6972_v63 = vmul.f32 0.25, %v4522_v22  ;;  %v1949_v22 = vsub.f32 %v6872_v32, %v1920_v52 }
 0x78b   : > { %v6967_v55 = vmul.f32 0.25, %v1884_v19  ;;  %v4523_v51 = vpop.f32.mrb[46].mxu1 }
 0x78c   : > { %v1887_v3 = vpop.f32.mrb[47].mxu1  ;;  %v6975_v31 = vmul.f32 0.25, %v4523_v51  ;;  %v1922_v51 = vpop.xlane.xlu0 %1921  ;;  %v1967_v34 = vmul.f32 1.442695, %v1949_v22 }
 0x78d   : > { %v6969_v24 = vmul.f32 0.25, %v1887_v3  ;;  %1939 = vmax.xlane.f32.xlu1 %v6967_v55 }
 0x78e   : > { %4969 = vpow2.f32 %v1967_v34 }
 0x78f   : > { %1941 = vmax.xlane.f32.xlu0 %v6969_v24 }
 0x791   : > { %1943 = vmax.xlane.f32.xlu1 %v6972_v63 }
 0x793   : > { %1945 = vmax.xlane.f32.xlu0 %v6975_v31 }
 0x7ac   : > { %v4574_v44 = vpop.f32.mrb[48].mxu1 }
 0x7ad   : > { %v3108_v27 = vpop.f32.mrb[49].mxu1  ;;  %v6984_v21 = vmul.f32 0.25, %v4574_v44  ;;  %v1950_v44 = vsub.f32 %v6881_v30, %v1922_v51  ;;  %v7042_v30 = vpack.c.bf16 %v7946_v0, %v7947_v17  ;;  %v7959_v17 = vld [vmem:[#allocation7_spill] sm:$0xff]  ;;  %v7962_v51 = vld [vmem:[#allocation20_spill] sm:$0xff] }
 0x7ae   : > { %v6979_v9 = vmul.f32 0.25, %v3108_v27  ;;  %v4575_v2 = vpop.f32.mrb[50].mxu1  ;;  %v7085_v34 = vpack.c.bf16 %v7962_v51, %v5657_v40  ;;  %v7143_v40 = vpack.c.bf16 %v5703_v16, %v5695_v56 }
 0x7af   : > { %v3111_v41 = vpop.f32.mrb[51].mxu1  ;;  %v6987_v29 = vmul.f32 0.25, %v4575_v2  ;;  %v1969_v32 = vmul.f32 1.442695, %v1950_v44  ;;  %v7031_v2 = vpop.eup %4965 }
 0x7b0   : > { %v6981_v62 = vmul.f32 0.25, %v3111_v41  ;;  %3187 = vmax.xlane.f32.xlu1 %v6979_v9  ;;  %v7034_v41 = vpop.eup %4967 }
 0x7b1   : > { %4971 = vpow2.f32 %v1969_v32 }
 0x7b2   : > { %3189 = vmax.xlane.f32.xlu0 %v6981_v62 }
 0x7b4   : > { %3191 = vmax.xlane.f32.xlu1 %v6984_v21 }
 0x7b6   : > { %3193 = vmax.xlane.f32.xlu0 %v6987_v29 }
 0x7c4   : > { %v4578_v57 = vpop.f32.mrb[52].mxu1 }
 0x7c5   : > { %v3124_v25 = vpop.f32.mrb[53].mxu1  ;;  %v6996_v61 = vmul.f32 0.25, %v4578_v57  ;;  %v7037_v57 = vpop.eup %4969 }
 0x7c6   : > { %v6991_v33 = vmul.f32 0.25, %v3124_v25  ;;  %v4579_v7 = vpop.f32.mrb[54].mxu1  ;;  %v7044_v25 = vpop.eup %4971 }
 0x7c7   : > { %v3127_v15 = vpop.f32.mrb[55].mxu1  ;;  %v6999_v50 = vmul.f32 0.25, %v4579_v7  ;;  %v7958_v7 = vld [vmem:[#allocation5_spill] sm:$0xff] }
 0x7c8   : > { %v6993_v43 = vmul.f32 0.25, %v3127_v15  ;;  %3195 = vmax.xlane.f32.xlu1 %v6991_v33  ;;  %v7051_v15 = vpack.c.bf16 %v7958_v7, %v7951_v37 }
 0x7ca   : > { %3197 = vmax.xlane.f32.xlu0 %v6993_v43 }
 0x7cc   : > { %3199 = vmax.xlane.f32.xlu1 %v6996_v61 }
 0x7ce   : > { %3201 = vmax.xlane.f32.xlu0 %v6999_v50 }
 0x7dc   : > { %v4582_v10 = vpop.f32.mrb[56].mxu1 }
 0x7dd   : > { %v3140_v49 = vpop.f32.mrb[57].mxu1  ;;  %v7008_v48 = vmul.f32 0.25, %v4582_v10 }
 0x7de   : > { %v7003_v60 = vmul.f32 0.25, %v3140_v49  ;;  %v4583_v47 = vpop.f32.mrb[58].mxu1 }
 0x7df   : > { %v3143_v45 = vpop.f32.mrb[59].mxu1  ;;  %v7011_v53 = vmul.f32 0.25, %v4583_v47  ;;  %v7960_v47 = vld [vmem:[#allocation9_spill] sm:$0xff] }
 0x7e0   : > { %v7005_v1 = vmul.f32 0.25, %v3143_v45  ;;  %3203 = vmax.xlane.f32.xlu1 %v7003_v60  ;;  %v7058_v45 = vpack.c.bf16 %v7960_v47, %v7959_v17  ;;  %v7151_v17 = vpack.c.bf16 %v5681_v6, %v5675_v38 }
 0x7e2   : > { %3205 = vmax.xlane.f32.xlu0 %v7005_v1  ;;  %v1924_v10 = vpop.xlane.xlu1 %1923 }
 0x7e3   : > { %v1951_v0 = vsub.f32 %v6943_v59, %v1924_v10 }
 0x7e4   : > { %3207 = vmax.xlane.f32.xlu1 %v7008_v48  ;;  %v1926_v49 = vpop.xlane.xlu0 %1925 }
 0x7e5   : > { %v1971_v58 = vmul.f32 1.442695, %v1951_v0  ;;  %v1952_v59 = vsub.f32 %v6945_v11, %v1926_v49  ;;  %v7961_v11 = vld [vmem:[#allocation14_spill] sm:$0xff] }
 0x7e6   : > { %3209 = vmax.xlane.f32.xlu0 %v7011_v53  ;;  %v1928_v46 = vpop.xlane.xlu1 %1927  ;;  %v7079_v36 = vpack.c.bf16 %v7961_v11, %v5636_v13 }
 0x7e7   : > { %v1953_v8 = vsub.f32 %v6948_v39, %v1928_v46  ;;  %4973 = vpow2.f32 %v1971_v58 }
 0x7e8   : > { %v1930_v37 = vpop.xlane.xlu0 %1929 }
 0x7e9   : > { %v1975_v52 = vmul.f32 1.442695, %v1953_v8  ;;  %v1954_v18 = vsub.f32 %v6951_v26, %v1930_v37 }
 0x7eb   : > { %4975 = vpow2.f32 %v1975_v52  ;;  %v1977_v28 = vmul.f32 1.442695, %v1954_v18 }
 0x7ed   : > { %4977 = vpow2.f32 %v1977_v28 }
 0x7f4   : > { %v4586_v35 = vpop.f32.mrb[60].mxu1 }
 0x7f5   : > { %v3156_v5 = vpop.f32.mrb[61].mxu1  ;;  %v7023_v4 = vmul.f32 0.25, %v4586_v35  ;;  %v7065_v35 = vpop.eup %4973 }
 0x7f6   : > { %v7017_v54 = vmul.f32 0.25, %v3156_v5  ;;  %v4587_v42 = vpop.f32.mrb[62].mxu1  ;;  %v1973_v5 = vmul.f32 1.442695, %v1952_v59 }
 0x7f7   : > { %v3159_v19 = vpop.f32.mrb[63].mxu1  ;;  %7956 = vst [vmem:[#allocation55_spill] sm:$0xff] %v7023_v4  ;;  %v7027_v27 = vmul.f32 0.25, %v4587_v42  ;;  %v7068_v42 = vpop.eup %4975 }
 0x7f8   : > { %7954 = vst [vmem:[#allocation60_spill] sm:$0xff] %v7017_v54  ;;  %v7020_v3 = vmul.f32 0.25, %v3159_v19  ;;  %3211 = vmax.xlane.f32.xlu1 %v7017_v54  ;;  %4979 = vpow2.f32 %v1973_v5  ;;  %v7071_v39 = vpop.eup %4977 }
 0x7f9   : > { %7957 = vst [vmem:[#allocation54_spill] sm:$0xff] %v7027_v27 }
 0x7fa   : > { %7955 = vst [vmem:[#allocation61_spill] sm:$0xff] %v7020_v3  ;;  %3213 = vmax.xlane.f32.xlu0 %v7020_v3 }
 0x7fc   : > { %3215 = vmax.xlane.f32.xlu1 %v7023_v4 }
 0x7fe   : > { %3217 = vmax.xlane.f32.xlu0 %v7027_v27  ;;  %v1932_v22 = vpop.xlane.xlu1 %1931 }
 0x7ff   : > { %v1955_v49 = vsub.f32 %v6955_v20, %v1932_v22 }
 0x800   : > { %v1934_v19 = vpop.xlane.xlu0 %1933 }
 0x801   : > { %v1979_v46 = vmul.f32 1.442695, %v1955_v49  ;;  %v1956_v37 = vsub.f32 %v6957_v14, %v1934_v19 }
 0x802   : > { %1995 = vadd.xlane.f32.xlu0 %v7031_v2  ;;  %v7074_v26 = vpop.eup %4979  ;;  %v1936_v44 = vpop.xlane.xlu1 %1935 }
 0x803   : > { %v1957_v58 = vsub.f32 %v6960_v23, %v1936_v44  ;;  %4981 = vpow2.f32 %v1979_v46  ;;  %v1981_v5 = vmul.f32 1.442695, %v1956_v37 }
 0x804   : > { %v1938_v32 = vpop.xlane.xlu0 %1937 }
 0x805   : > { %v1983_v18 = vmul.f32 1.442695, %v1957_v58  ;;  %v1958_v28 = vsub.f32 %v6963_v12, %v1938_v32 }
 0x806   : > { %1997 = vadd.xlane.f32.xlu0 %v7034_v41 }
 0x807   : > { %4983 = vpow2.f32 %v1983_v18  ;;  %v1985_v20 = vmul.f32 1.442695, %v1958_v28 }
 0x808   : > { %4985 = vpow2.f32 %v1981_v5 }
 0x809   : > { %4987 = vpow2.f32 %v1985_v20 }
 0x80a   : > { %1999 = vadd.xlane.f32.xlu0 %v7037_v57 }
 0x80d   : > { %2083 = vrot.lane.b32.xlu1 %v7042_v30, %s5213_s16  ;;  %v7107_v14 = vpop.eup %4981 }
 0x80e   : > { %2001 = vadd.xlane.f32.xlu0 %v7044_v25 }
 0x811   : > { %2085 = vrot.lane.b32.xlu1 %v7051_v15, %s5213_s16  ;;  %v7114_v44 = vpop.eup %4983 }
 0x812   : > { %v7117_v32 = vpop.eup %4985 }
 0x813   : > { %v7122_v46 = vpop.eup %4987 }
 0x81a   : > { %v7089_v10 = vpop.xlane.xlu1 %1939 }
 0x81b   : > { %v1959_v6 = vsub.f32 %v6967_v55, %v7089_v10 }
 0x81c   : > { %v1942_v0 = vpop.xlane.xlu0 %1941 }
 0x81d   : > { %v1987_v54 = vmul.f32 1.442695, %v1959_v6 }
 0x81e   : > { %v7093_v8 = vpop.xlane.xlu1 %1943 }
 0x820   : > { %v7096_v52 = vpop.xlane.xlu0 %1945 }
 0x824   : > { %2087 = vrot.lane.b32.xlu0 %v7058_v45, %s5213_s16 }
 0x835   : > { %2003 = vadd.xlane.f32.xlu1 %v7065_v35 }
 0x839   : > { %2007 = vadd.xlane.f32.xlu1 %v7068_v42 }
 0x83d   : > { %2009 = vadd.xlane.f32.xlu1 %v7071_v39  ;;  %v7099_v59 = vpop.xlane.xlu1 %3187 }
 0x83f   : > { %v7101_v51 = vpop.xlane.xlu0 %3189 }
 0x841   : > { %v7103_v22 = vpop.xlane.xlu1 %3191 }
 0x843   : > { %2005 = vadd.xlane.f32.xlu0 %v7074_v26  ;;  %v7105_v23 = vpop.xlane.xlu0 %3193 }
 0x84e   : > { %2089 = vrot.lane.b32.xlu1 %v7079_v36, %s5213_s16 }
 0x855   : > { %v7109_v19 = vpop.xlane.xlu1 %3195 }
 0x857   : > { %v7112_v12 = vpop.xlane.xlu0 %3197 }
 0x859   : > { %2091 = vrot.lane.b32.xlu0 %v7085_v34, %s5213_s16  ;;  %v7119_v49 = vpop.xlane.xlu1 %3199 }
 0x85b   : > { %v7124_v58 = vpop.xlane.xlu0 %3201 }
 0x86d   : > { %v7127_v37 = vpop.xlane.xlu1 %3203 }
 0x86f   : > { %v7129_v18 = vpop.xlane.xlu0 %3205 }
 0x871   : > { %v7131_v28 = vpop.xlane.xlu1 %3207 }
 0x872   : > { %2011 = vadd.xlane.f32.xlu1 %v7107_v14 }
 0x873   : > { %v7133_v5 = vpop.xlane.xlu0 %3209 }
 0x876   : > { %2015 = vadd.xlane.f32.xlu1 %v7114_v44 }
 0x878   : > { %2013 = vadd.xlane.f32.xlu0 %v7117_v32 }
 0x87a   : > { %2017 = vadd.xlane.f32.xlu1 %v7122_v46 }
 0x885   : > { %v7135_v20 = vpop.xlane.xlu1 %3211 }
 0x887   : > { %v7137_v13 = vpop.xlane.xlu0 %3213 }
 0x888   : > { %7963 = vst [vmem:[#allocation53_spill] sm:$0xff] %v7137_v13 }
 0x889   : > { %v7139_v47 = vpop.xlane.xlu1 %3215 }
 0x88a   : > { %7964 = vst [vmem:[#allocation64_spill] sm:$0xff] %v7139_v47 }
 0x88b   : > { %2095 = vrot.lane.b32.xlu1 %v7143_v40, %s5213_s16  ;;  %v7147_v11 = vpop.xlane.xlu0 %3217 }
 0x88c   : > { %7965 = vst [vmem:[#allocation56_spill] sm:$0xff] %v7147_v11  ;;  %v1960_v11 = vsub.f32 %v6969_v24, %v1942_v0 }
 0x88d   : > { %v2084_v7 = vpop.permute.xlu1 %2083 }
 0x88e   : > { %4524 = vmatprep.subr.bf16.mxu0 %v2084_v7  ;;  %2093 = vrot.lane.b32.xlu0 %v7151_v17, %s5213_s16  ;;  %v1989_v13 = vmul.f32 1.442695, %v1960_v11 }
 0x88f   : > { %4525 = vmatpush3.bf16.msra.mxu0 %v2084_v7  ;;  %v1996_v27 = vpop.xlane.xlu0 %1995  ;;  %v1961_v7 = vsub.f32 %v6972_v63, %v7093_v8 }
 0x890   : > { %4989 = vrcp.f32 %v1996_v27 }
 0x891   : > { %v2086_v4 = vpop.permute.xlu1 %2085  ;;  %v1991_v55 = vmul.f32 1.442695, %v1961_v7 }
 0x892   : > { %4526 = vmatprep.subr.bf16.mxu0 %v2086_v4 }
 0x893   : > { %4527 = vmatpush3.bf16.msra.mxu0 %v2086_v4  ;;  %v1998_v16 = vpop.xlane.xlu0 %1997 }
 0x894   : > { %4991 = vrcp.f32 %v1998_v16 }
 0x897   : > { %v2000_v56 = vpop.xlane.xlu0 %1999 }
 0x898   : > { %4993 = vrcp.f32 %v2000_v56  ;;  %v1962_v56 = vsub.f32 %v6975_v31, %v7096_v52 }
 0x89a   : > { %v4990_v38 = vpop.eup %4989  ;;  %v1993_v11 = vmul.f32 1.442695, %v1962_v56  ;;  %v3219_v56 = vsub.f32 %v6979_v9, %v7099_v59  ;;  %v3222_v9 = vsub.f32 %v6987_v29, %v7105_v23 }
 0x89b   : > { %v2002_v47 = vpop.xlane.xlu0 %2001  ;;  %v2043_v4 = vmul.f32 %v4990_v38, %v7031_v2 }
 0x89c   : > { %4995 = vrcp.f32 %v2002_v47 }
 0x89d   : > { %4997 = vpow2.f32 %v1989_v13 }
 0x89e   : > { %v4992_v3 = vpop.eup %4991  ;;  %4999 = vpow2.f32 %v1987_v54 }
 0x89f   : > { %v2088_v27 = vpop.permute.xlu0 %2087  ;;  %v2044_v16 = vmul.f32 %v4992_v3, %v7034_v41  ;;  %5001 = vpow2.f32 %v1991_v55  ;;  %v7966_v41 = vld [vmem:[#allocation32_spill] sm:$0xff] }
 0x8a0   : > { %4528 = vmatprep.subr.bf16.mxu0 %v2088_v27  ;;  %5003 = vpow2.f32 %v1993_v11  ;;  %v3221_v11 = vsub.f32 %v6984_v21, %v7103_v22 }
 0x8a1   : > { %4529 = vmatpush3.bf16.msra.mxu0 %v2088_v27  ;;  %v2059_v24 = vpack.c.bf16 %v2044_v16, %v2043_v4 }
 0x8a2   : > { %v4994_v47 = vpop.eup %4993 }
 0x8a3   : > { %4540 = vmatprep.mubr.bf16.mxu0 %v2059_v24  ;;  %v7165_v63 = vmul.f32 %v4994_v47, %v7037_v57  ;;  %v7967_v57 = vld [vmem:[#allocation34_spill] sm:$0xff] }
 0x8a6   : > { %v4996_v10 = vpop.eup %4995 }
 0x8a7   : > { %v7168_v38 = vmul.f32 %v4996_v10, %v7044_v25  ;;  %v7172_v31 = vpop.eup %4997  ;;  %v7188_v25 = vpack.c.bf16 %v7967_v57, %v7966_v41  ;;  %v3235_v10 = vmul.f32 1.442695, %v3219_v56 }
 0x8a8   : > { %v7175_v13 = vpop.eup %4999 }
 0x8a9   : > { %v2060_v6 = vpack.c.bf16 %v7168_v38, %v7165_v63  ;;  %v7178_v54 = vpop.eup %5001 }
 0x8aa   : > { %v7181_v3 = vpop.eup %5003 }
 0x8ad   : > { %2021 = vadd.xlane.f32.xlu0 %v7172_v31 }
 0x8af   : > { %2019 = vadd.xlane.f32.xlu1 %v7175_v13 }
 0x8b1   : > { %2023 = vadd.xlane.f32.xlu0 %v7178_v54 }
 0x8b3   : > { %2025 = vadd.xlane.f32.xlu1 %v7181_v3 }
 0x8c2   : > { %v2004_v2 = vpop.xlane.xlu1 %2003 }
 0x8c4   : > { %3339 = vrot.lane.b32.xlu1 %v7042_v30, %s5201_s29  ;;  %v3220_v30 = vsub.f32 %v6981_v62, %v7101_v51 }
 0x8c6   : > { %v2008_v0 = vpop.xlane.xlu1 %2007  ;;  %v3237_v47 = vmul.f32 1.442695, %v3220_v30 }
 0x8c7   : > { %2097 = vrot.lane.b32.xlu0 %v7188_v25, %s5213_s16  ;;  %5005 = vrcp.f32 %v2008_v0  ;;  %v3241_v0 = vmul.f32 1.442695, %v3222_v9 }
 0x8ca   : > { %v2010_v8 = vpop.xlane.xlu1 %2009 }
 0x8cb   : > { %5007 = vrcp.f32 %v2010_v8 }
 0x8cc   : > { %5009 = vrcp.f32 %v2004_v2  ;;  %v3239_v2 = vmul.f32 1.442695, %v3221_v11  ;;  %v3226_v11 = vsub.f32 %v6999_v50, %v7124_v58 }
 0x8ce   : > { %v2090_v52 = vpop.permute.xlu1 %2089 }
 0x8cf   : > { %4530 = vmatprep.subr.bf16.mxu0 %v2090_v52 }
 0x8d0   : > { %4531 = vmatpush3.bf16.msra.mxu0 %v2090_v52  ;;  %v2006_v7 = vpop.xlane.xlu0 %2005 }
 0x8d1   : > { %5011 = vrcp.f32 %v2006_v7  ;;  %v5006_v27 = vpop.eup %5005 }
 0x8d2   : > { %v7197_v24 = vmul.f32 %v5006_v27, %v7068_v42  ;;  %5013 = vpow2.f32 %v3237_v47 }
 0x8d3   : > { %5015 = vpow2.f32 %v3235_v10 }
 0x8d4   : > { %v2092_v4 = vpop.permute.xlu0 %2091  ;;  %5017 = vpow2.f32 %v3239_v2 }
 0x8d5   : > { %v5008_v16 = vpop.eup %5007  ;;  %4532 = vmatprep.subr.bf16.mxu0 %v2092_v4  ;;  %5019 = vpow2.f32 %v3241_v0 }
 0x8d6   : > { %4533 = vmatpush3.bf16.msra.mxu0 %v2092_v4  ;;  %v7200_v55 = vmul.f32 %v5008_v16, %v7071_v39  ;;  %v5010_v51 = vpop.eup %5009 }
 0x8d7   : > { %v7209_v42 = vmul.f32 %v5010_v51, %v7065_v35 }
 0x8d8   : > { %v2062_v62 = vpack.c.bf16 %v7200_v55, %v7197_v24 }
 0x8db   : > { %v5012_v59 = vpop.eup %5011 }
 0x8dc   : > { %v7212_v39 = vmul.f32 %v5012_v59, %v7074_v26  ;;  %v7216_v22 = vpop.eup %5013 }
 0x8dd   : > { %v7219_v29 = vpop.eup %5015 }
 0x8de   : > { %v2061_v21 = vpack.c.bf16 %v7212_v39, %v7209_v42  ;;  %v7222_v35 = vpop.eup %5017 }
 0x8df   : > { %v7225_v26 = vpop.eup %5019 }
 0x8e6   : > { %3269 = vadd.xlane.f32.xlu0 %v7216_v22 }
 0x8e8   : > { %3267 = vadd.xlane.f32.xlu1 %v7219_v29 }
 0x8ea   : > { %3271 = vadd.xlane.f32.xlu0 %v7222_v35 }
 0x8ec   : > { %3273 = vadd.xlane.f32.xlu1 %v7225_v26 }
 0x8fd   : > { %3343 = vrot.lane.b32.xlu1 %v7058_v45, %s5201_s29  ;;  %v3223_v45 = vsub.f32 %v6991_v33, %v7109_v19  ;;  %v3224_v19 = vsub.f32 %v6993_v43, %v7112_v12 }
 0x8ff   : > { %v2012_v23 = vpop.xlane.xlu1 %2011  ;;  %v3243_v4 = vmul.f32 1.442695, %v3223_v45  ;;  %v7974_v45 = vld [vmem:[#allocation64_spill] sm:$0xff] }
 0x900   : > { %3341 = vrot.lane.b32.xlu0 %v7051_v15, %s5201_s29 }
 0x901   : > { %3345 = vrot.lane.b32.xlu1 %v7079_v36, %s5201_s29  ;;  %v3225_v36 = vsub.f32 %v6996_v61, %v7119_v49  ;;  %v3249_v61 = vmul.f32 1.442695, %v3226_v11  ;;  %v3245_v49 = vmul.f32 1.442695, %v3224_v19 }
 0x903   : > { %v2016_v8 = vpop.xlane.xlu1 %2015  ;;  %v3247_v47 = vmul.f32 1.442695, %v3225_v36  ;;  %v7976_v36 = vld [vmem:[#allocation56_spill] sm:$0xff] }
 0x904   : > { %5021 = vrcp.f32 %v2016_v8  ;;  %v3229_v8 = vsub.f32 %v7008_v48, %v7131_v28  ;;  %v7968_v48 = vld [vmem:[#allocation2_spill] sm:$0xff] }
 0x905   : > { %3347 = vrot.lane.b32.xlu1 %v7085_v34, %s5201_s29  ;;  %v2014_v52 = vpop.xlane.xlu0 %2013  ;;  %v7969_v28 = vld [vmem:[#allocation6_spill] sm:$0xff] }
 0x906   : > { %v7292_v42 = vadd.f32 %v7969_v28, %v7968_v48 }
 0x907   : > { %v2018_v7 = vpop.xlane.xlu1 %2017 }
 0x908   : > { %5023 = vrcp.f32 %v2018_v7 }
 0x909   : > { %v2094_v27 = vpop.permute.xlu0 %2093  ;;  %5025 = vpow2.f32 %v3243_v4 }
 0x90a   : > { %4534 = vmatprep.subr.bf16.mxu0 %v2094_v27  ;;  %5027 = vpow2.f32 %v3247_v47 }
 0x90b   : > { %v2096_v30 = vpop.permute.xlu1 %2095  ;;  %4535 = vmatpush3.bf16.msra.mxu0 %v2094_v27  ;;  %5029 = vpow2.f32 %v3249_v61  ;;  %v3543_v27 = vmul.f32 %v7292_v42, %v7292_v42  ;;  %v7978_v61 = vld [vmem:[#allocation5_spill] sm:$0xff] }
 0x90c   : > { %4536 = vmatprep.subr.bf16.mxu0 %v2096_v30  ;;  %5031 = vpow2.f32 %v3245_v49  ;;  %v7979_v49 = vld [vmem:[#allocation38_spill] sm:$0xff] }
 0x90d   : > { %5033 = vrcp.f32 %v2014_v52 }
 0x90e   : > { %v5022_v15 = vpop.eup %5021  ;;  %5035 = vrcp.f32 %v2012_v23 }
 0x90f   : > { %4537 = vmatpush3.bf16.msra.mxu0 %v2096_v30  ;;  %v7241_v34 = vmul.f32 %v5022_v15, %v7114_v44 }
 0x912   : > { %v5024_v16 = vpop.eup %5023 }
 0x913   : > { %v7244_v56 = vmul.f32 %v5024_v16, %v7122_v46  ;;  %v7252_v44 = vpop.eup %5025  ;;  %v7977_v16 = vld [vmem:[#allocation54_spill] sm:$0xff] }
 0x914   : > { %v7255_v46 = vpop.eup %5027  ;;  %v3234_v47 = vsub.f32 %v7977_v16, %v7976_v36 }
 0x915   : > { %v2064_v33 = vpack.c.bf16 %v7244_v56, %v7241_v34  ;;  %v7258_v50 = vpop.eup %5029  ;;  %v3563_v34 = vmul.f32 %v3543_v27, %v7292_v42 }
 0x916   : > { %v7261_v58 = vpop.eup %5031 }
 0x917   : > { %v5034_v2 = vpop.eup %5033 }
 0x91f   : > { %3275 = vadd.xlane.f32.xlu0 %v7252_v44 }
 0x923   : > { %3279 = vadd.xlane.f32.xlu0 %v7255_v46 }
 0x927   : > { %3281 = vadd.xlane.f32.xlu0 %v7258_v50 }
 0x929   : > { %3277 = vadd.xlane.f32.xlu1 %v7261_v58 }
 0x93a   : > { %3351 = vrot.lane.b32.xlu1 %v7143_v40, %s5201_s29  ;;  %v2022_v43 = vpop.xlane.xlu0 %2021  ;;  %v5036_v40 = vpop.eup %5035 }
 0x93b   : > { %v2051_v0 = vmul.f32 %v5036_v40, %v7107_v14  ;;  %v3230_v14 = vsub.f32 %v7011_v53, %v7133_v5  ;;  %v7973_v53 = vld [vmem:[#allocation8_spill] sm:$0xff]  ;;  %v7980_v40 = vld [vmem:[#allocation7_spill] sm:$0xff] }
 0x93c   : > { %v2020_v12 = vpop.xlane.xlu1 %2019  ;;  %v7301_v5 = vadd.f32 %v7973_v53, %v7968_v48 }
 0x93d   : > { %3349 = vrot.lane.b32.xlu0 %v7151_v17, %s5201_s29  ;;  %5037 = vrcp.f32 %v2020_v12  ;;  %v3228_v17 = vsub.f32 %v7005_v1, %v7129_v18  ;;  %v3257_v55 = vmul.f32 1.442695, %v3230_v14 }
 0x93e   : > { %3353 = vrot.lane.b32.xlu1 %v7188_v25, %s5201_s29  ;;  %v2024_v51 = vpop.xlane.xlu0 %2023  ;;  %5039 = vrcp.f32 %v2022_v43  ;;  %v2052_v25 = vmul.f32 %v5034_v2, %v7117_v32  ;;  %v3255_v32 = vmul.f32 1.442695, %v3229_v8  ;;  %v3544_v19 = vmul.f32 %v7301_v5, %v7301_v5 }
 0x93f   : > { %v3253_v23 = vmul.f32 1.442695, %v3228_v17  ;;  %v3562_v43 = vmul.f32 %v7979_v49, %v7978_v61  ;;  %v3595_v2 = vmul.f32 0.044715, %v3563_v34  ;;  %v7981_v17 = vld [vmem:[#allocation39_spill] sm:$0xff] }
 0x940   : > { %v2026_v10 = vpop.xlane.xlu1 %2025  ;;  %v2063_v63 = vpack.c.bf16 %v2052_v25, %v2051_v0  ;;  %v3564_v25 = vmul.f32 %v7981_v17, %v7980_v40 }
 0x941   : > { %5041 = vrcp.f32 %v2026_v10 }
 0x942   : > { %v2098_v9 = vpop.permute.xlu0 %2097  ;;  %5043 = vrcp.f32 %v2024_v51  ;;  %v3265_v51 = vmul.f32 1.442695, %v3234_v47 }
 0x943   : > { %4538 = vmatprep.subr.bf16.mxu0 %v2098_v9  ;;  %5045 = vpow2.f32 %v3253_v23 }
 0x944   : > { %v3340_v59 = vpop.permute.xlu1 %3339  ;;  %4539 = vmatpush3.bf16.msra.mxu0 %v2098_v9  ;;  %5047 = vpow2.f32 %v3255_v32  ;;  %v3594_v9 = vmul.f32 0.044715, %v3562_v43 }
 0x945   : > { %4588 = vmatprep.subr.bf16.mxu0 %v3340_v59 }
 0x946   : > { %v3626_v23 = vadd.f32 %v3594_v9, %v7978_v61 }
 0x947   : > { %4541 = vmatmul.mubr.bf16.vlgmr.msra.gmra.mrb[0].mxu0 %v2060_v6  ;;  %v5038_v38 = vpop.eup %5037  ;;  %v3227_v6 = vsub.f32 %v7003_v60, %v7127_v37  ;;  %v7970_v60 = vld [vmem:[#allocation60_spill] sm:$0xff] }
 0x948   : > { %4544 = vmatprep.mubr.bf16.mxu0 %v2061_v21  ;;  %4589 = vmatpush3.bf16.msra.mxu0 %v3340_v59  ;;  %v5040_v1 = vpop.eup %5039  ;;  %v2055_v18 = vmul.f32 %v5038_v38, %v7175_v13  ;;  %v3231_v37 = vsub.f32 %v7970_v60, %v7135_v20  ;;  %v7972_v21 = vld [vmem:[#allocation61_spill] sm:$0xff]  ;;  %v7975_v20 = vld [vmem:[#allocation55_spill] sm:$0xff]  ;;  %v3596_v38 = vmul.f32 0.044715, %v3564_v25  ;;  %v3658_v32 = vmul.f32 0.7978846, %v3626_v23 }
 0x949   : > { %v3251_v39 = vmul.f32 1.442695, %v3227_v6  ;;  %v2056_v24 = vmul.f32 %v5040_v1, %v7172_v31  ;;  %v3233_v15 = vsub.f32 %v7975_v20, %v7974_v45 }
 0x94a   : > { %v3259_v30 = vmul.f32 1.442695, %v3231_v37  ;;  %v3628_v48 = vadd.f32 %v3596_v38, %v7980_v40 }
 0x94b   : > { %v5042_v7 = vpop.eup %5041  ;;  %v2065_v13 = vpack.c.bf16 %v2056_v24, %v2055_v18  ;;  %5049 = vpow2.f32 %v3251_v39  ;;  %v3263_v56 = vmul.f32 1.442695, %v3233_v15 }
 0x94c   : > { %v5044_v31 = vpop.eup %5043  ;;  %5051 = vpow2.f32 %v3257_v55  ;;  %v2058_v11 = vmul.f32 %v5042_v7, %v7181_v3  ;;  %v3565_v3 = vmul.f32 %v3544_v19, %v7301_v5  ;;  %v3660_v37 = vmul.f32 0.7978846, %v3628_v48 }
 0x94d   : > { %v7317_v12 = vpop.eup %5045  ;;  %5053 = vpow2.f32 %v3259_v30 }
 0x94e   : > { %v7323_v59 = vpop.eup %5047 }
 0x94f   : > { %4545 = vmatmul.mubr.bf16.gmra.mrb[4].mxu0 %v2062_v62  ;;  %v7971_v62 = vld [vmem:[#allocation53_spill] sm:$0xff] }
 0x950   : > { %4548 = vmatprep.mubr.bf16.mxu0 %v2063_v63  ;;  %v3232_v52 = vsub.f32 %v7972_v21, %v7971_v62  ;;  %v3627_v63 = vadd.f32 %v3595_v2, %v7292_v42 }
 0x952   : > { %v3261_v4 = vmul.f32 1.442695, %v3232_v52  ;;  %v3659_v18 = vmul.f32 0.7978846, %v3627_v63 }
 0x954   : > { %5055 = vpow2.f32 %v3261_v4 }
 0x955   : > { %5057 = vpow2.f32 %v3263_v56  ;;  %v7328_v0 = vpop.eup %5049 }
 0x956   : > { %5059 = vpow2.f32 %v3265_v51  ;;  %v7332_v8 = vpop.eup %5051  ;;  %v7982_v51 = vld [vmem:[#allocation16_spill] sm:$0xff] }
 0x957   : > { %4549 = vmatmul.mubr.bf16.gmra.mrb[8].mxu0 %v2064_v33  ;;  %v2057_v33 = vmul.f32 %v5044_v31, %v7178_v54  ;;  %v3597_v54 = vmul.f32 0.044715, %v3565_v3  ;;  %v7336_v6 = vpop.eup %5053  ;;  %5061 = vtanh.f32 %v3658_v32 }
 0x958   : > { %4552 = vmatprep.mubr.bf16.mxu0 %v2065_v13  ;;  %5063 = vtanh.f32 %v3659_v18 }
 0x959   : > { %v2066_v10 = vpack.c.bf16 %v2058_v11, %v2057_v33  ;;  %v3629_v1 = vadd.f32 %v3597_v54, %v7301_v5 }
 0x95b   : > { %v3661_v39 = vmul.f32 0.7978846, %v3629_v1 }
 0x95c   : > { %3285 = vadd.xlane.f32.xlu0 %v7317_v12 }
 0x95d   : > { %5065 = vtanh.f32 %v3661_v39 }
 0x95e   : > { %v7340_v14 = vpop.eup %5055  ;;  %5067 = vtanh.f32 %v3660_v37 }
 0x95f   : > { %4553 = vmatmul.mubr.bf16.gmra.mrb[12].mxu0 %v2066_v10  ;;  %v7344_v28 = vpop.eup %5057  ;;  %v7983_v10 = vld [vmem:[#allocation17_spill] sm:$0xff] }
 0x960   : > { %3287 = vadd.xlane.f32.xlu0 %v7323_v59  ;;  %v7347_v60 = vpop.eup %5059  ;;  %v7984_v3 = vpack.i.bf16 %v7982_v51, %v7983_v10 }
 0x961   : > { %v5062_v55 = vpop.eup %5061 }
 0x962   : > { %3283 = vadd.xlane.f32.xlu1 %v7328_v0  ;;  %v5064_v62 = vpop.eup %5063  ;;  %v3722_v13 = vadd.f32 1.0, %v5062_v55 }
 0x963   : > { %v3723_v53 = vadd.f32 1.0, %v5064_v62  ;;  %v7985_v62 = vmov 0  }
 0x964   : > { %3289 = vadd.xlane.f32.xlu0 %v7332_v8  ;;  %v3754_v31 = vmul.f32 0.5, %v3722_v13 }
 0x965   : > { %v3755_v20 = vmul.f32 0.5, %v3723_v53 }
 0x966   : > { %3291 = vadd.xlane.f32.xlu1 %v7336_v6  ;;  %v3786_v49 = vmul.f32 %v3754_v31, %v7978_v61 }
 0x967   : > { %v5066_v7 = vpop.eup %5065  ;;  %v3787_v11 = vmul.f32 %v3755_v20, %v7292_v42 }
 0x968   : > { %3293 = vadd.xlane.f32.xlu0 %v7340_v14  ;;  %v5068_v27 = vpop.eup %5067  ;;  %v3725_v15 = vadd.f32 1.0, %v5066_v7 }
 0x969   : > { %v3724_v4 = vadd.f32 1.0, %v5068_v27  ;;  %v4682_v42 = vpack.i.bf16 %v3787_v11, %v3786_v49 }
 0x96a   : > { %3295 = vadd.xlane.f32.xlu1 %v7344_v28  ;;  %v3757_v19 = vmul.f32 0.5, %v3725_v15 }
 0x96b   : > { %v3756_v43 = vmul.f32 0.5, %v3724_v4 }
 0x96c   : > { %3297 = vadd.xlane.f32.xlu0 %v7347_v60  ;;  %v3789_v2 = vmul.f32 %v3757_v19, %v7301_v5 }
 0x96d   : > { %v3788_v17 = vmul.f32 %v3756_v43, %v7980_v40 }
 0x973   : > { %v3270_v24 = vpop.xlane.xlu0 %3269 }
 0x974   : > { %5069 = vrcp.f32 %v3270_v24 }
 0x975   : > { %v3268_v21 = vpop.xlane.xlu1 %3267 }
 0x976   : > { %5071 = vrcp.f32 %v3268_v21 }
 0x977   : > { %v3272_v52 = vpop.xlane.xlu0 %3271 }
 0x979   : > { %v3274_v30 = vpop.xlane.xlu1 %3273 }
 0x97a   : > { %5073 = vrcp.f32 %v3274_v30 }
 0x97b   : > { %v3342_v45 = vpop.permute.xlu0 %3341  ;;  %5075 = vrcp.f32 %v3272_v52 }
 0x97c   : > { %4590 = vmatprep.subr.bf16.mxu0 %v3342_v45 }
 0x97d   : > { %v3344_v36 = vpop.permute.xlu1 %3343  ;;  %4591 = vmatpush3.bf16.msra.mxu0 %v3342_v45 }
 0x97e   : > { %v5070_v16 = vpop.eup %5069  ;;  %4592 = vmatprep.subr.bf16.mxu0 %v3344_v36 }
 0x97f   : > { %v3316_v33 = vmul.f32 %v5070_v16, %v7216_v22 }
 0x980   : > { %v5072_v47 = vpop.eup %5071 }
 0x981   : > { %v3346_v34 = vpop.permute.xlu1 %3345  ;;  %4593 = vmatpush3.bf16.msra.mxu0 %v3344_v36  ;;  %v3315_v56 = vmul.f32 %v5072_v47, %v7219_v29  ;;  %v4692_v29 = vpack.i.bf16 %v3789_v2, %v3788_v17 }
 0x982   : > { %4663 = vrot.lane.b32.xlu0 %v7984_v3, %s5213_s16  ;;  %4594 = vmatprep.subr.bf16.mxu0 %v3346_v34 }
 0x983   : > { %v3331_v9 = vpack.c.bf16 %v3316_v33, %v3315_v56 }
 0x984   : > { %v5074_v63 = vpop.eup %5073 }
 0x985   : > { %v3348_v61 = vpop.permute.xlu1 %3347  ;;  %4595 = vmatpush3.bf16.msra.mxu0 %v3346_v34  ;;  %4604 = vmatprep.mubr.bf16.mxu0 %v3331_v9  ;;  %v5076_v38 = vpop.eup %5075  ;;  %v3318_v18 = vmul.f32 %v5074_v63, %v7225_v26  ;;  %v4784_v63 = vld [vmem:[%s7756_s10 + $0x8] sm:$0xff]  }
 0x986   : > { %4683 = vrot.lane.b32.xlu0 %v4682_v42, %s5213_s16  ;;  %4596 = vmatprep.subr.bf16.mxu0 %v3348_v61  ;;  %v3317_v39 = vmul.f32 %v5076_v38, %v7222_v35  ;;  %v4785_v38 = vld [vmem:[%s7756_s10 + $0x10] sm:$0xff]  }
 0x988   : > { %v3332_v55 = vpack.c.bf16 %v3318_v18, %v3317_v39 }
 0x989   : > { %4597 = vmatpush3.bf16.msra.mxu0 %v3348_v61 }
 0x98a   : > { %4693 = vrot.lane.b32.xlu0 %v4692_v29, %s5213_s16 }
 0x9ac   : > { %v3276_v22 = vpop.xlane.xlu0 %3275 }
 0x9ad   : > { %5077 = vrcp.f32 %v3276_v22 }
 0x9b0   : > { %v3280_v25 = vpop.xlane.xlu0 %3279 }
 0x9b4   : > { %v3282_v54 = vpop.xlane.xlu0 %3281 }
 0x9b6   : > { %v3278_v5 = vpop.xlane.xlu1 %3277 }
 0x9b7   : > { %5079 = vrcp.f32 %v3278_v5  ;;  %v5078_v32 = vpop.eup %5077 }
 0x9b8   : > { %v3350_v23 = vpop.permute.xlu0 %3349  ;;  %5081 = vrcp.f32 %v3282_v54  ;;  %v3319_v37 = vmul.f32 %v5078_v32, %v7252_v44  ;;  %v7986_v32 = vld [vmem:[#allocation15_spill] sm:$0xff] }
 0x9b9   : > { %4598 = vmatprep.subr.bf16.mxu0 %v3350_v23  ;;  %5083 = vrcp.f32 %v3280_v25  ;;  %v3547_v18 = vmul.f32 %v7986_v32, %v7986_v32 }
 0x9ba   : > { %v3352_v40 = vpop.permute.xlu1 %3351  ;;  %4599 = vmatpush3.bf16.msra.mxu0 %v3350_v23 }
 0x9bb   : > { %4600 = vmatprep.subr.bf16.mxu0 %v3352_v40  ;;  %v3571_v39 = vmul.f32 %v3547_v18, %v7986_v32 }
 0x9be   : > { %v3354_v1 = vpop.permute.xlu1 %3353  ;;  %4601 = vmatpush3.bf16.msra.mxu0 %v3352_v40  ;;  %v4783_v40 = vld [vmem:[%s7756_s10] sm:$0xff]  }
 0x9bf   : > { %4602 = vmatprep.subr.bf16.mxu0 %v3354_v1 }
 0x9c1   : > { %v5080_v48 = vpop.eup %5079 }
 0x9c2   : > { %4603 = vmatpush3.bf16.msra.mxu0 %v3354_v1  ;;  %v3320_v24 = vmul.f32 %v5080_v48, %v7261_v58  ;;  %v5082_v21 = vpop.eup %5081  ;;  %v4786_v1 = vld [vmem:[%s7756_s10 + $0x18] sm:$0xff]   ;;  %v4787_v48 = vld [vmem:[%s7756_s10 + $0x20] sm:$0xff]  }
 0x9c3   : > { %4100 = vmatprep.subr.bf16.mxu0 %v7985_v62  ;;  %v5084_v7 = vpop.eup %5083  ;;  %v3322_v53 = vmul.f32 %v5082_v21, %v7258_v50  ;;  %v7989_v21 = vld [vmem:[#allocation44_spill] sm:$0xff] }
 0x9c4   : > { %v3333_v52 = vpack.c.bf16 %v3320_v24, %v3319_v37  ;;  %v3321_v26 = vmul.f32 %v5084_v7, %v7255_v46  ;;  %v7987_v37 = vld [vmem:[#allocation19_spill] sm:$0xff] }
 0x9c5   : > { %4605 = vmatmul.mubr.bf16.vlgmr.msra.gmra.mrb[16].mxu0 %v3332_v55  ;;  %v3548_v24 = vmul.f32 %v7987_v37, %v7987_v37  ;;  %v7988_v55 = vld [vmem:[#allocation14_spill] sm:$0xff]  ;;  %v4788_v7 = vld [vmem:[%s7756_s10 + $0x28] sm:$0xff]  }
 0x9c6   : > { %4608 = vmatprep.mubr.bf16.mxu0 %v3333_v52  ;;  %v3334_v13 = vpack.c.bf16 %v3322_v53, %v3321_v26  ;;  %4101 = vmatpush1.bf16.msra.mxu0 %v4783_v40  ;;  %v3570_v52 = vmul.f32 %v7989_v21, %v7988_v55  ;;  %v3603_v53 = vmul.f32 0.044715, %v3571_v39 }
 0x9c7   : > { %4102 = vmatprep.subr.bf16.mxu0 %v7985_v62  ;;  %v3573_v26 = vmul.f32 %v3548_v24, %v7987_v37 }
 0x9ca   : > { %4103 = vmatpush1.bf16.msra.mxu0 %v4784_v63 }
 0x9cb   : > { %4104 = vmatprep.subr.bf16.mxu0 %v7985_v62 }
 0x9cd   : > { %4609 = vmatmul.mubr.bf16.gmra.mrb[20].mxu0 %v3334_v13  ;;  %v7990_v13 = vld [vmem:[#allocation11_spill] sm:$0xff] }
 0x9ce   : > { %4105 = vmatpush1.bf16.msra.mxu0 %v4785_v38 }
 0x9cf   : > { %4106 = vmatprep.subr.bf16.mxu0 %v7985_v62 }
 0x9d2   : > { %4107 = vmatpush1.bf16.msra.mxu0 %v4786_v1 }
 0x9d3   : > { %4108 = vmatprep.subr.bf16.mxu0 %v7985_v62 }
 0x9d6   : > { %4109 = vmatpush1.bf16.msra.mxu0 %v4787_v48 }
 0x9d7   : > { %4110 = vmatprep.subr.bf16.mxu0 %v7985_v62 }
 0x9da   : > { %4111 = vmatpush1.bf16.msra.mxu0 %v4788_v7 }
 0x9db   : > { %4112 = vmatprep.subr.bf16.mxu0 %v7985_v62 }
 0x9e9   : > { %v3286_v35 = vpop.xlane.xlu0 %3285 }
 0x9ea   : > { %5085 = vrcp.f32 %v3286_v35  ;;  %v3545_v35 = vmul.f32 %v7990_v13, %v7990_v13 }
 0x9ed   : > { %v3288_v27 = vpop.xlane.xlu0 %3287 }
 0x9ee   : > { %5087 = vrcp.f32 %v3288_v27  ;;  %v3602_v27 = vmul.f32 0.044715, %v3570_v52  ;;  %v4791_v52 = vld [vmem:[%s7756_s10 + $0x40] sm:$0xff]  }
 0x9ef   : > { %v3284_v44 = vpop.xlane.xlu1 %3283 }
 0x9f0   : > { %5089 = vrcp.f32 %v3284_v44  ;;  %v7991_v44 = vld [vmem:[#allocation18_spill] sm:$0xff] }
 0x9f1   : > { %v3290_v58 = vpop.xlane.xlu0 %3289 }
 0x9f2   : > { %5091 = vrcp.f32 %v3290_v58  ;;  %v7992_v58 = vld [vmem:[#allocation42_spill] sm:$0xff] }
 0x9f3   : > { %v3292_v30 = vpop.xlane.xlu1 %3291 }
 0x9f4   : > { %5093 = vrcp.f32 %v3292_v30  ;;  %v5086_v15 = vpop.eup %5085  ;;  %v3572_v30 = vmul.f32 %v7992_v58, %v7991_v44 }
 0x9f5   : > { %v3294_v45 = vpop.xlane.xlu0 %3293  ;;  %v3324_v36 = vmul.f32 %v5086_v15, %v7317_v12  ;;  %v3605_v15 = vmul.f32 0.044715, %v3573_v26 }
 0x9f6   : > { %5095 = vrcp.f32 %v3294_v45  ;;  %v4789_v45 = vld [vmem:[%s7756_s10 + $0x30] sm:$0xff]  }
 0x9f7   : > { %v3296_v20 = vpop.xlane.xlu1 %3295  ;;  %4113 = vmatpush1.bf16.msra.mxu0 %v4789_v45 }
 0x9f8   : > { %5097 = vrcp.f32 %v3296_v20  ;;  %v5088_v50 = vpop.eup %5087  ;;  %v3635_v20 = vadd.f32 %v3603_v53, %v7986_v32  ;;  %4114 = vmatprep.subr.bf16.mxu0 %v7985_v62 }
 0x9f9   : > { %v3298_v31 = vpop.xlane.xlu0 %3297  ;;  %v3325_v11 = vmul.f32 %v5088_v50, %v7323_v59  ;;  %v3567_v50 = vmul.f32 %v3545_v35, %v7990_v13 }
 0x9fa   : > { %v5090_v46 = vpop.eup %5089  ;;  %5099 = vrcp.f32 %v3298_v31  ;;  %v7993_v31 = vld [vmem:[#allocation13_spill] sm:$0xff] }
 0x9fb   : > { %v3323_v4 = vmul.f32 %v5090_v46, %v7328_v0  ;;  %v3546_v46 = vmul.f32 %v7993_v31, %v7993_v31 }
 0x9fc   : > { %v5092_v16 = vpop.eup %5091 }
 0x9fd   : > { %v3335_v47 = vpack.c.bf16 %v3324_v36, %v3323_v4  ;;  %v3326_v19 = vmul.f32 %v5092_v16, %v7332_v8  ;;  %v3634_v4 = vadd.f32 %v3602_v27, %v7988_v55  ;;  %v3604_v36 = vmul.f32 0.044715, %v3572_v30  ;;  %v7994_v16 = vld [vmem:[#allocation9_spill] sm:$0xff] }
 0x9fe   : > { %v5094_v49 = vpop.eup %5093 }
 0x9ff   : > { %4612 = vmatprep.mubr.bf16.mxu0 %v3335_v47  ;;  %v3336_v43 = vpack.c.bf16 %v3326_v19, %v3325_v11  ;;  %v3327_v56 = vmul.f32 %v5094_v49, %v7336_v6  ;;  %v7995_v47 = vld [vmem:[#allocation40_spill] sm:$0xff]  ;;  %v4790_v19 = vld [vmem:[%s7756_s10 + $0x38] sm:$0xff]   ;;  %v3667_v49 = vmul.f32 0.7978846, %v3635_v20  ;;  %v4792_v20 = vld [vmem:[%s7756_s10 + $0x48] sm:$0xff]  }
 0xa00   : > { %v5096_v34 = vpop.eup %5095  ;;  %v3566_v11 = vmul.f32 %v7995_v47, %v7994_v16  ;;  %4115 = vmatpush1.bf16.msra.mxu0 %v4790_v19 }
 0xa01   : > { %4613 = vmatmul.mubr.bf16.gmra.mrb[24].mxu0 %v3336_v43  ;;  %v3328_v33 = vmul.f32 %v5096_v34, %v7340_v14  ;;  %v3637_v43 = vadd.f32 %v3605_v15, %v7987_v37  ;;  %v3599_v34 = vmul.f32 0.044715, %v3567_v50  ;;  %5101 = vtanh.f32 %v3667_v49  ;;  %4116 = vmatprep.subr.bf16.mxu0 %v7985_v62 }
 0xa02   : > { %v5098_v51 = vpop.eup %5097 }
 0xa03   : > { %v3337_v10 = vpack.c.bf16 %v3328_v33, %v3327_v56  ;;  %v3329_v12 = vmul.f32 %v5098_v51, %v7344_v28  ;;  %v3569_v56 = vmul.f32 %v3546_v46, %v7993_v31  ;;  %v3666_v33 = vmul.f32 0.7978846, %v3634_v4 }
 0xa04   : > { %v5100_v0 = vpop.eup %5099  ;;  %v3636_v51 = vadd.f32 %v3604_v36, %v7991_v44  ;;  %v3631_v40 = vadd.f32 %v3599_v34, %v7990_v13  ;;  %4117 = vmatpush1.bf16.msra.mxu0 %v4791_v52 }
 0xa05   : > { %4616 = vmatprep.mubr.bf16.mxu0 %v3337_v10  ;;  %v3330_v3 = vmul.f32 %v5100_v0, %v7347_v60  ;;  %v3598_v10 = vmul.f32 0.044715, %v3566_v11  ;;  %v7996_v0 = vld [vmem:[#allocation12_spill] sm:$0xff]  ;;  %v3601_v63 = vmul.f32 0.044715, %v3569_v56  ;;  %5103 = vtanh.f32 %v3666_v33  ;;  %4118 = vmatprep.subr.bf16.mxu0 %v7985_v62 }
 0xa06   : > { %v3668_v38 = vmul.f32 0.7978846, %v3636_v51  ;;  %v3663_v48 = vmul.f32 0.7978846, %v3631_v40 }
 0xa07   : > { %v3338_v59 = vpack.c.bf16 %v3330_v3, %v3329_v12  ;;  %v7997_v12 = vld [vmem:[#allocation41_spill] sm:$0xff]  ;;  %v3630_v1 = vadd.f32 %v3598_v10, %v7994_v16  ;;  %v3633_v39 = vadd.f32 %v3601_v63, %v7993_v31  ;;  %v7998_v10 = vld [vmem:[#allocation26_spill] sm:$0xff] }
 0xa08   : > { %v3568_v3 = vmul.f32 %v7997_v12, %v7996_v0  ;;  %4119 = vmatpush1.bf16.msra.mxu0 %v4792_v20  ;;  %v7999_v12 = vld [vmem:[#allocation27_spill] sm:$0xff]  ;;  %v8004_v20 = vld [vmem:[#allocation21_spill] sm:$0xff] }
 0xa09   : > { %4617 = vmatmul.mubr.bf16.gmra.mrb[28].mxu0 %v3338_v59  ;;  %v3669_v59 = vmul.f32 0.7978846, %v3637_v43  ;;  %v3662_v24 = vmul.f32 0.7978846, %v3630_v1  ;;  %v3665_v7 = vmul.f32 0.7978846, %v3633_v39 }
 0xa0a   : > { %v3600_v18 = vmul.f32 0.044715, %v3568_v3  ;;  %v8000_v3 = vpack.i.bf16 %v7998_v10, %v7999_v12  ;;  %v8010_v12 = vld [vmem:[#allocation20_spill] sm:$0xff] }
 0xa0b   : > { %5105 = vtanh.f32 %v3669_v59  ;;  %v5102_v53 = vpop.eup %5101 }
 0xa0c   : > { %5107 = vtanh.f32 %v3668_v38  ;;  %v3632_v21 = vadd.f32 %v3600_v18, %v7996_v0  ;;  %v3731_v30 = vadd.f32 1.0, %v5102_v53 }
 0xa0d   : > { %5109 = vtanh.f32 %v3663_v48 }
 0xa0e   : > { %5111 = vtanh.f32 %v3662_v24  ;;  %v3664_v26 = vmul.f32 0.7978846, %v3632_v21  ;;  %v3763_v11 = vmul.f32 0.5, %v3731_v30  ;;  %v8002_v30 = vld [vmem:[#allocation37_spill] sm:$0xff] }
 0xa0f   : > { %v5104_v35 = vpop.eup %5103  ;;  %5113 = vtanh.f32 %v3665_v7 }
 0xa10   : > { %v3730_v4 = vadd.f32 1.0, %v5104_v35  ;;  %5115 = vtanh.f32 %v3664_v26  ;;  %v3795_v51 = vmul.f32 %v3763_v11, %v7986_v32 }
 0xa12   : > { %v3762_v19 = vmul.f32 0.5, %v3730_v4 }
 0xa14   : > { %v3794_v1 = vmul.f32 %v3762_v19, %v7988_v55  ;;  %v8001_v55 = vld [vmem:[#allocation36_spill] sm:$0xff]  ;;  %v8006_v19 = vld [vmem:[#allocation23_spill] sm:$0xff] }
 0xa15   : > { %v5106_v15 = vpop.eup %5105 }
 0xa16   : > { %v5108_v36 = vpop.eup %5107  ;;  %v3733_v62 = vadd.f32 1.0, %v5106_v15  ;;  %v4712_v7 = vpack.i.bf16 %v3795_v51, %v3794_v1  ;;  %v3549_v15 = vmul.f32 %v8004_v20, %v8004_v20  ;;  %v8009_v51 = vld [vmem:[#allocation48_spill] sm:$0xff] }
 0xa17   : > { %v3732_v49 = vadd.f32 1.0, %v5108_v36  ;;  %v5110_v43 = vpop.eup %5109  ;;  %v8005_v36 = vld [vmem:[#allocation25_spill] sm:$0xff] }
 0xa18   : > { %v5112_v56 = vpop.eup %5111  ;;  %v3765_v40 = vmul.f32 0.5, %v3733_v62  ;;  %v3727_v39 = vadd.f32 1.0, %v5110_v43  ;;  %v3575_v11 = vmul.f32 %v3549_v15, %v8004_v20 }
 0xa19   : > { %v3764_v18 = vmul.f32 0.5, %v3732_v49  ;;  %v5114_v48 = vpop.eup %5113  ;;  %v3726_v21 = vadd.f32 1.0, %v5112_v56  ;;  %v3550_v49 = vmul.f32 %v8006_v19, %v8006_v19 }
 0xa1a   : > { %v7377_v8 = vpop.f32.mrb[0].mxu0  ;;  %v5116_v52 = vpop.eup %5115  ;;  %v3797_v32 = vmul.f32 %v3765_v40, %v7987_v37  ;;  %v3759_v26 = vmul.f32 0.5, %v3727_v39  ;;  %v3729_v35 = vadd.f32 1.0, %v5114_v48  ;;  %v8013_v48 = vld [vmem:[#allocation45_spill] sm:$0xff] }
 0xa1b   : > { %v7379_v9 = vpop.f32.mrb[1].mxu0  ;;  %v3796_v53 = vmul.f32 %v3764_v18, %v7991_v44  ;;  %v3577_v40 = vmul.f32 %v3550_v49, %v8006_v19  ;;  %v8012_v18 = vld [vmem:[#allocation28_spill] sm:$0xff] }
 0xa1c   : > { %v7381_v2 = vpop.f32.mrb[2].mxu0  ;;  %v3791_v37 = vmul.f32 %v3759_v26, %v7990_v13  ;;  %v3580_v39 = vmul.f32 %v8013_v48, %v8012_v18  ;;  %v8016_v26 = vld [vmem:[#allocation31_spill] sm:$0xff] }
 0xa1d   : > { %v7383_v42 = vpop.f32.mrb[3].mxu0 }
 0xa1e   : > { %v3612_v15 = vmul.f32 0.044715, %v3580_v39 }
 0xa22   : > { %v7385_v6 = vpop.f32.mrb[4].mxu0 }
 0xa23   : > { %v7387_v14 = vpop.f32.mrb[5].mxu0 }
 0xa24   : > { %v7389_v17 = vpop.f32.mrb[6].mxu0 }
 0xa25   : > { %v7391_v61 = vpop.f32.mrb[7].mxu0 }
 0xa2a   : > { %v7393_v28 = vpop.f32.mrb[8].mxu0 }
 0xa2b   : > { %v7395_v60 = vpop.f32.mrb[9].mxu0 }
 0xa2c   : > { %v7397_v29 = vpop.f32.mrb[10].mxu0 }
 0xa2d   : > { %v7399_v22 = vpop.f32.mrb[11].mxu0 }
 0xa32   : > { %v7401_v25 = vpop.f32.mrb[12].mxu0 }
 0xa33   : > { %v7403_v54 = vpop.f32.mrb[13].mxu0 }
 0xa34   : > { %v7405_v5 = vpop.f32.mrb[14].mxu0 }
 0xa35   : > { %v7407_v23 = vpop.f32.mrb[15].mxu0 }
 0xa98   : > { %v4606_v27 = vpop.f32.mrb[16].mxu0 }
 0xa99   : > { %v3397_v58 = vpop.f32.mrb[17].mxu0 }
 0xa9a   : > { %v4607_v45 = vpop.f32.mrb[18].mxu0 }
 0xa9b   : > { %v4672_v50 = vpack.i.bf16 %v4607_v45, %v4606_v27  ;;  %v3400_v46 = vpop.f32.mrb[19].mxu0  ;;  %v3758_v27 = vmul.f32 0.5, %v3726_v21  ;;  %v8003_v45 = vpack.i.bf16 %v8001_v55, %v8002_v30  ;;  %v8014_v21 = vld [vmem:[#allocation22_spill] sm:$0xff]  ;;  %v8017_v55 = vld [vmem:[#allocation35_spill] sm:$0xff] }
 0xa9c   : > { %v4657_v47 = vpack.i.bf16 %v3400_v46, %v3397_v58  ;;  %v3728_v58 = vadd.f32 1.0, %v5116_v52  ;;  %v3761_v46 = vmul.f32 0.5, %v3729_v35  ;;  %v8015_v52 = vld [vmem:[#allocation43_spill] sm:$0xff]  ;;  %v3553_v35 = vmul.f32 %v8016_v26, %v8016_v26 }
 0xa9d   : > { %v3790_v44 = vmul.f32 %v3758_v27, %v7994_v16  ;;  %v3555_v30 = vmul.f32 %v8017_v55, %v8017_v55 }
 0xa9e   : > { %4658 = vrot.lane.b32.xlu1 %v4657_v47, %s5212_s17  ;;  %v3760_v4 = vmul.f32 0.5, %v3728_v58  ;;  %v3551_v47 = vmul.f32 %v8005_v36, %v8005_v36  ;;  %v3793_v62 = vmul.f32 %v3761_v46, %v7993_v31  ;;  %v3607_v31 = vmul.f32 0.044715, %v3575_v11 }
 0xa9f   : > { %v4697_v43 = vpack.i.bf16 %v3791_v37, %v3790_v44 }
 0xaa0   : > { %v4610_v34 = vpop.f32.mrb[20].mxu0  ;;  %v3792_v13 = vmul.f32 %v3760_v4, %v7996_v0  ;;  %v3579_v16 = vmul.f32 %v3551_v47, %v8005_v36  ;;  %v3583_v4 = vmul.f32 %v3553_v35, %v8016_v26 }
 0xaa1   : > { %v3413_v33 = vpop.f32.mrb[21].mxu0 }
 0xaa2   : > { %4668 = vrot.lane.b32.xlu1 %v8000_v3, %s5213_s16  ;;  %v4611_v59 = vpop.f32.mrb[22].mxu0  ;;  %v8011_v3 = vld [vmem:[#allocation46_spill] sm:$0xff] }
 0xaa3   : > { %v4702_v63 = vpack.i.bf16 %v4611_v59, %v4610_v34  ;;  %v3416_v38 = vpop.f32.mrb[23].mxu0  ;;  %v8007_v34 = vld [vmem:[#allocation29_spill] sm:$0xff]  ;;  %v3574_v59 = vmul.f32 %v8011_v3, %v8010_v12 }
 0xaa4   : > { %v4687_v24 = vpack.i.bf16 %v3416_v38, %v3413_v33  ;;  %v3552_v56 = vmul.f32 %v8007_v34, %v8007_v34  ;;  %v8008_v33 = vld [vmem:[#allocation24_spill] sm:$0xff]  ;;  %v3611_v38 = vmul.f32 0.044715, %v3579_v16  ;;  %v3644_v16 = vadd.f32 %v3612_v15, %v8012_v18 }
 0xaa5   : > { %4703 = vrot.lane.b32.xlu0 %v4702_v63, %s5212_s17  ;;  %v3578_v10 = vmul.f32 %v8009_v51, %v8008_v33  ;;  %v4707_v63 = vpack.i.bf16 %v3793_v62, %v3792_v13  ;;  %v8018_v62 = vld [vmem:[#allocation33_spill] sm:$0xff] }
 0xaa6   : > { %4673 = vrot.lane.b32.xlu1 %v4672_v50, %s5212_s17  ;;  %v4722_v50 = vpack.i.bf16 %v3797_v32, %v3796_v53  ;;  %v3581_v0 = vmul.f32 %v3552_v56, %v8007_v34  ;;  %v3576_v32 = vmul.f32 %v8015_v52, %v8014_v21  ;;  %v3609_v53 = vmul.f32 0.044715, %v3577_v40  ;;  %v8019_v56 = vld [vmem:[#allocation50_spill] sm:$0xff] }
 0xaa7   : > { %v3610_v1 = vmul.f32 0.044715, %v3578_v10  ;;  %v3643_v27 = vadd.f32 %v3611_v38, %v8005_v36  ;;  %v3554_v49 = vmul.f32 %v8018_v62, %v8018_v62  ;;  %v3586_v51 = vmul.f32 %v8019_v56, %v7967_v57 }
 0xaa8   : > { %v3613_v58 = vmul.f32 0.044715, %v3581_v0  ;;  %v3608_v37 = vmul.f32 0.044715, %v3576_v32  ;;  %v3641_v44 = vadd.f32 %v3609_v53, %v8006_v19  ;;  %v3615_v38 = vmul.f32 0.044715, %v3583_v4 }
 0xaa9   : > { %4713 = vrot.lane.b32.xlu0 %v4712_v7, %s5213_s16  ;;  %v3639_v7 = vadd.f32 %v3607_v31, %v8004_v20  ;;  %v3675_v47 = vmul.f32 0.7978846, %v3643_v27  ;;  %v8021_v31 = vld [vmem:[#allocation49_spill] sm:$0xff]  ;;  %v3676_v39 = vmul.f32 0.7978846, %v3644_v16 }
 0xaaa   : > { %4678 = vrot.lane.b32.xlu1 %v8003_v45, %s5213_s16  ;;  %v3642_v45 = vadd.f32 %v3610_v1, %v8008_v33  ;;  %v3645_v11 = vadd.f32 %v3613_v58, %v8007_v34  ;;  %v3640_v3 = vadd.f32 %v3608_v37, %v8014_v21  ;;  %v3585_v1 = vmul.f32 %v3554_v49, %v8018_v62 }
 0xaab   : > { %v3671_v46 = vmul.f32 0.7978846, %v3639_v7  ;;  %v8022_v7 = vld [vmem:[#allocation47_spill] sm:$0xff]  ;;  %v3647_v35 = vadd.f32 %v3615_v38, %v8016_v26 }
 0xaac   : > { %v3674_v13 = vmul.f32 0.7978846, %v3642_v45  ;;  %v3677_v0 = vmul.f32 0.7978846, %v3645_v11  ;;  %v3672_v52 = vmul.f32 0.7978846, %v3640_v3  ;;  %v3584_v53 = vmul.f32 %v8022_v7, %v7966_v41 }
 0xaad   : > { %4723 = vrot.lane.b32.xlu0 %v4722_v50, %s5213_s16  ;;  %5117 = vtanh.f32 %v3671_v46  ;;  %v3617_v27 = vmul.f32 0.044715, %v3585_v1 }
 0xaae   : > { %4688 = vrot.lane.b32.xlu1 %v4687_v24, %s5212_s17  ;;  %v3606_v24 = vmul.f32 0.044715, %v3574_v59  ;;  %v8020_v59 = vld [vmem:[#allocation30_spill] sm:$0xff]  ;;  %5119 = vtanh.f32 %v3675_v47  ;;  %v3616_v15 = vmul.f32 0.044715, %v3584_v53 }
 0xaaf   : > { %v3582_v40 = vmul.f32 %v8021_v31, %v8020_v59  ;;  %5121 = vtanh.f32 %v3674_v13  ;;  %v3649_v37 = vadd.f32 %v3617_v27, %v8018_v62 }
 0xab0   : > { %v3638_v50 = vadd.f32 %v3606_v24, %v8010_v12  ;;  %v3618_v24 = vmul.f32 0.044715, %v3586_v51  ;;  %v3648_v49 = vadd.f32 %v3616_v15, %v7966_v41 }
 0xab1   : > { %v3614_v32 = vmul.f32 0.044715, %v3582_v40  ;;  %v3681_v16 = vmul.f32 0.7978846, %v3649_v37 }
 0xab2   : > { %4698 = vrot.lane.b32.xlu1 %v4697_v43, %s5213_s16  ;;  %v3587_v43 = vmul.f32 %v3555_v30, %v8017_v55  ;;  %v3670_v10 = vmul.f32 0.7978846, %v3638_v50  ;;  %v3650_v30 = vadd.f32 %v3618_v24, %v7967_v57  ;;  %v3679_v50 = vmul.f32 0.7978846, %v3647_v35 }
 0xab3   : > { %v3646_v45 = vadd.f32 %v3614_v32, %v8020_v59  ;;  %v3680_v40 = vmul.f32 0.7978846, %v3648_v49 }
 0xab4   : > { %v3619_v48 = vmul.f32 0.044715, %v3587_v43  ;;  %5123 = vtanh.f32 %v3670_v10  ;;  %v3682_v4 = vmul.f32 0.7978846, %v3650_v30 }
 0xab5   : > { %v3678_v11 = vmul.f32 0.7978846, %v3646_v45 }
 0xab6   : > { %4708 = vrot.lane.b32.xlu1 %v4707_v63, %s5213_s16  ;;  %v3673_v63 = vmul.f32 0.7978846, %v3641_v44  ;;  %v3651_v58 = vadd.f32 %v3619_v48, %v8017_v55 }
 0xab7   : > { %v5118_v44 = vpop.eup %5117 }
 0xab8   : > { %5125 = vtanh.f32 %v3673_v63  ;;  %v3683_v46 = vmul.f32 0.7978846, %v3651_v58  ;;  %v5120_v47 = vpop.eup %5119  ;;  %v3735_v51 = vadd.f32 1.0, %v5118_v44 }
 0xab9   : > { %5127 = vtanh.f32 %v3677_v0  ;;  %v5122_v43 = vpop.eup %5121  ;;  %v3739_v3 = vadd.f32 1.0, %v5120_v47 }
 0xaba   : > { %5129 = vtanh.f32 %v3676_v39  ;;  %v3738_v31 = vadd.f32 1.0, %v5122_v43  ;;  %v3767_v1 = vmul.f32 0.5, %v3735_v51 }
 0xabb   : > { %5131 = vtanh.f32 %v3672_v52  ;;  %v3771_v39 = vmul.f32 0.5, %v3739_v3 }
 0xabc   : > { %5133 = vtanh.f32 %v3679_v50  ;;  %v3770_v24 = vmul.f32 0.5, %v3738_v31  ;;  %v3799_v30 = vmul.f32 %v3767_v1, %v8004_v20 }
 0xabd   : > { %5135 = vtanh.f32 %v3683_v46  ;;  %v3803_v37 = vmul.f32 %v3771_v39, %v8005_v36 }
 0xabe   : > { %v5124_v13 = vpop.eup %5123  ;;  %5137 = vtanh.f32 %v3682_v4  ;;  %v3802_v4 = vmul.f32 %v3770_v24, %v8008_v33 }
 0xabf   : > { %5139 = vtanh.f32 %v3678_v11  ;;  %v3734_v38 = vadd.f32 1.0, %v5124_v13 }
 0xac0   : > { %5141 = vtanh.f32 %v3681_v16  ;;  %v4742_v3 = vpack.i.bf16 %v3803_v37, %v3802_v4 }
 0xac1   : > { %5143 = vtanh.f32 %v3680_v40  ;;  %v3766_v53 = vmul.f32 0.5, %v3734_v38 }
 0xac2   : > { %v5126_v56 = vpop.eup %5125 }
 0xac3   : > { %v5128_v10 = vpop.eup %5127  ;;  %v3737_v32 = vadd.f32 1.0, %v5126_v56  ;;  %v3798_v13 = vmul.f32 %v3766_v53, %v8010_v12 }
 0xac4   : > { %v5130_v63 = vpop.eup %5129  ;;  %v3741_v48 = vadd.f32 1.0, %v5128_v10 }
 0xac5   : > { %v5132_v0 = vpop.eup %5131  ;;  %v3740_v52 = vadd.f32 1.0, %v5130_v63  ;;  %v3769_v49 = vmul.f32 0.5, %v3737_v32  ;;  %v4727_v38 = vpack.i.bf16 %v3799_v30, %v3798_v13 }
 0xac6   : > { %v3736_v35 = vadd.f32 1.0, %v5132_v0  ;;  %v5134_v58 = vpop.eup %5133  ;;  %v3773_v45 = vmul.f32 0.5, %v3741_v48 }
 0xac7   : > { %v5136_v50 = vpop.eup %5135  ;;  %v3772_v47 = vmul.f32 0.5, %v3740_v52  ;;  %v3743_v51 = vadd.f32 1.0, %v5134_v58  ;;  %v3801_v40 = vmul.f32 %v3769_v49, %v8006_v19 }
 0xac8   : > { %v5138_v11 = vpop.eup %5137  ;;  %v3768_v16 = vmul.f32 0.5, %v3736_v35  ;;  %v3805_v20 = vmul.f32 %v3773_v45, %v8007_v34  ;;  %v3747_v10 = vadd.f32 1.0, %v5136_v50 }
 0xac9   : > { %v5140_v56 = vpop.eup %5139  ;;  %v3804_v33 = vmul.f32 %v3772_v47, %v8012_v18  ;;  %v3746_v31 = vadd.f32 1.0, %v5138_v11  ;;  %v3775_v48 = vmul.f32 0.5, %v3743_v51 }
 0xaca   : > { %v5142_v36 = vpop.eup %5141  ;;  %v3800_v12 = vmul.f32 %v3768_v16, %v8014_v21  ;;  %v3742_v0 = vadd.f32 1.0, %v5140_v56  ;;  %v3779_v52 = vmul.f32 0.5, %v3747_v10 }
 0xacb   : > { %v5144_v1 = vpop.eup %5143  ;;  %v3745_v39 = vadd.f32 1.0, %v5142_v36  ;;  %v3778_v53 = vmul.f32 0.5, %v3746_v31  ;;  %v3807_v45 = vmul.f32 %v3775_v48, %v8016_v26  ;;  %v4664_v26 = vpop.permute.xlu0 %4663 }
 0xacc   : > { %v4737_v35 = vpack.i.bf16 %v3801_v40, %v3800_v12  ;;  %v3744_v58 = vadd.f32 1.0, %v5144_v1  ;;  %v3811_v21 = vmul.f32 %v3779_v52, %v8017_v55  ;;  %v4666_v49 = vunpack.i.h.bf16 %v4664_v26 }
 0xacd   : > { %v3810_v30 = vmul.f32 %v3778_v53, %v7967_v57 }
 0xace   : > { %v3776_v37 = vmul.f32 0.5, %v3744_v58 }
 0xad0   : > { %v3808_v47 = vmul.f32 %v3776_v37, %v7966_v41 }
 0xad4   : > { %v4614_v7 = vpop.f32.mrb[24].mxu0 }
 0xad5   : > { %v3429_v27 = vpop.f32.mrb[25].mxu0 }
 0xad6   : > { %v4615_v15 = vpop.f32.mrb[26].mxu0 }
 0xad7   : > { %v4732_v46 = vpack.i.bf16 %v4615_v15, %v4614_v7  ;;  %v3432_v44 = vpop.f32.mrb[27].mxu0  ;;  %v4752_v7 = vpack.i.bf16 %v3805_v20, %v3804_v33  ;;  %v3777_v15 = vmul.f32 0.5, %v3745_v39 }
 0xad8   : > { %v4717_v43 = vpack.i.bf16 %v3432_v44, %v3429_v27  ;;  %v3774_v27 = vmul.f32 0.5, %v3742_v0 }
 0xad9   : > { %4733 = vrot.lane.b32.xlu0 %v4732_v46, %s5212_s17  ;;  %v4772_v46 = vpack.i.bf16 %v3811_v21, %v3810_v30  ;;  %v3809_v44 = vmul.f32 %v3777_v15, %v8018_v62 }
 0xada   : > { %4718 = vrot.lane.b32.xlu1 %v4717_v43, %s5212_s17  ;;  %v3806_v50 = vmul.f32 %v3774_v27, %v8020_v59  ;;  %v4684_v59 = vpop.permute.xlu0 %4683  ;;  %v4665_v43 = vunpack.i.l.bf16 %v4664_v26 }
 0xadb   : > { %v4767_v57 = vpack.i.bf16 %v3809_v44, %v3808_v47  ;;  %v4685_v12 = vunpack.i.l.bf16 %v4684_v59 }
 0xadc   : > { %v4618_v63 = vpop.f32.mrb[28].mxu0  ;;  %v4757_v4 = vpack.i.bf16 %v3807_v45, %v3806_v50  ;;  %v3909_v20 = vsel %vm3908_vm3, %v4665_v43, %v4666_v49 }
 0xadd   : > { %4743 = vrot.lane.b32.xlu0 %v4742_v3, %s5213_s16  ;;  %v3445_v34 = vpop.f32.mrb[29].mxu0 }
 0xade   : > { %4728 = vrot.lane.b32.xlu1 %v4727_v38, %s5213_s16  ;;  %v4619_v24 = vpop.f32.mrb[30].mxu0  ;;  %v4694_v51 = vpop.permute.xlu0 %4693 }
 0xadf   : > { %v4762_v32 = vpack.i.bf16 %v4619_v24, %v4618_v63  ;;  %v3448_v18 = vpop.f32.mrb[31].mxu0  ;;  %v4696_v58 = vunpack.i.h.bf16 %v4694_v51  ;;  %v4695_v21 = vunpack.i.l.bf16 %v4694_v51 }
 0xae0   : > { %v4747_v19 = vpack.i.bf16 %v3448_v18, %v3445_v34 }
 0xae1   : > { %4753 = vrot.lane.b32.xlu0 %v4752_v7, %s5213_s16  ;;  %v3913_v44 = vsel %vm3908_vm3, %v4695_v21, %v4696_v58 }
 0xae2   : > { %4738 = vrot.lane.b32.xlu1 %v4737_v35, %s5213_s16 }
 0xae5   : > { %4763 = vrot.lane.b32.xlu0 %v4762_v32, %s5212_s17 }
 0xae6   : > { %4748 = vrot.lane.b32.xlu1 %v4747_v19, %s5212_s17 }
 0xae9   : > { %4773 = vrot.lane.b32.xlu0 %v4772_v46, %s5213_s16 }
 0xaea   : > { %4758 = vrot.lane.b32.xlu1 %v4757_v4, %s5213_s16 }
 0xaee   : > { %4768 = vrot.lane.b32.xlu1 %v4767_v57, %s5213_s16 }
 0xb10   : > { %v4659_v55 = vpop.permute.xlu1 %4658 }
 0xb11   : > { %v4660_v11 = vunpack.i.l.bf16 %v4659_v55  ;;  %v4661_v13 = vunpack.i.h.bf16 %v4659_v55 }
 0xb13   : > { %v3524_v62 = vsel %vm1001_vm1, %v7379_v9, %v4660_v11  ;;  %v3525_v36 = vsel %vm1001_vm1, %v7383_v42, %v4661_v13  ;;  %v4686_v9 = vunpack.i.h.bf16 %v4684_v59 }
 0xb14   : > { %v4669_v16 = vpop.permute.xlu1 %4668  ;;  %v3957_v33 = vsel %vm516_vm0, %v3524_v62, %v3909_v20 }
 0xb15   : > { %v4671_v41 = vunpack.i.h.bf16 %v4669_v16  ;;  %v4670_v56 = vunpack.i.l.bf16 %v4669_v16  ;;  %v3912_v24 = vsel %vm3908_vm3, %v4685_v12, %v4686_v9 }
 0xb17   : > { %v3910_v10 = vsel %vm3908_vm3, %v4670_v56, %v4671_v41  ;;  %v3974_v3 = vpack.c.bf16 %v4671_v41, %v4666_v49  ;;  %v4704_v0 = vpop.permute.xlu0 %4703 }
 0xb18   : > { %v3958_v31 = vsel %vm516_vm0, %v3525_v36, %v3910_v10  ;;  %v4674_v40 = vpop.permute.xlu1 %4673  ;;  %v4706_v4 = vunpack.i.h.bf16 %v4704_v0  ;;  %v4705_v47 = vunpack.i.l.bf16 %v4704_v0 }
 0xb19   : > { %v3973_v63 = vpack.c.bf16 %v3958_v31, %v3957_v33  ;;  %v4676_v38 = vunpack.i.h.bf16 %v4674_v40  ;;  %4413 = vmatprep.mubr.msk.bf16.mxu0 %vm516_vm0, %v3974_v3  ;;  %v4675_v1 = vunpack.i.l.bf16 %v4674_v40 }
 0xb1a   : > { %v3531_v62 = vsel %vm1001_vm1, %v7389_v17, %v4706_v4 }
 0xb1b   : > { %4133 = vmatmul.mubr.bf16.vlgmr.msra.gmra.mrb[32].mxu0 %v3973_v63  ;;  %v3527_v42 = vsel %vm1001_vm1, %v7381_v2, %v4676_v38  ;;  %v3526_v52 = vsel %vm1001_vm1, %v7377_v8, %v4675_v1  ;;  %v4714_v35 = vpop.permute.xlu0 %4713 }
 0xb1c   : > { %v4679_v34 = vpop.permute.xlu1 %4678  ;;  %v3960_v19 = vsel %vm516_vm0, %v3527_v42, %v3912_v24  ;;  %v4716_v45 = vunpack.i.h.bf16 %v4714_v35  ;;  %v4715_v8 = vunpack.i.l.bf16 %v4714_v35 }
 0xb1d   : > { %v4681_v48 = vunpack.i.h.bf16 %v4679_v34  ;;  %v4680_v39 = vunpack.i.l.bf16 %v4679_v34 }
 0xb1e   : > { %v3916_v43 = vsel %vm3908_vm3, %v4715_v8, %v4716_v45 }
 0xb1f   : > { %v3911_v32 = vsel %vm3908_vm3, %v4680_v39, %v4681_v48  ;;  %v3976_v18 = vpack.c.bf16 %v4686_v9, %v4681_v48  ;;  %v3964_v51 = vsel %vm516_vm0, %v3531_v62, %v3916_v43  ;;  %v4724_v10 = vpop.permute.xlu0 %4723 }
 0xb20   : > { %v4689_v7 = vpop.permute.xlu1 %4688  ;;  %v3959_v53 = vsel %vm516_vm0, %v3526_v52, %v3911_v32  ;;  %v4726_v17 = vunpack.i.h.bf16 %v4724_v10  ;;  %v4725_v40 = vunpack.i.l.bf16 %v4724_v10 }
 0xb21   : > { %v4690_v27 = vunpack.i.l.bf16 %v4689_v7  ;;  %4414 = vmatprep.mubr.msk.bf16.mxu0 %vm516_vm0, %v3976_v18  ;;  %v3975_v2 = vpack.c.bf16 %v3960_v19, %v3959_v53  ;;  %v4691_v30 = vunpack.i.h.bf16 %v4689_v7 }
 0xb22   : > { %v3917_v42 = vsel %vm3908_vm3, %v4725_v40, %v4726_v17 }
 0xb23   : > { %4141 = vmatmul.mubr.bf16.gmra.mrb[36].mxu0 %v3975_v2  ;;  %v3528_v50 = vsel %vm1001_vm1, %v7387_v14, %v4690_v27  ;;  %v3529_v57 = vsel %vm1001_vm1, %v7391_v61, %v4691_v30  ;;  %v3530_v61 = vsel %vm1001_vm1, %v7385_v6, %v4705_v47 }
 0xb24   : > { %v4699_v15 = vpop.permute.xlu1 %4698  ;;  %v3961_v11 = vsel %vm516_vm0, %v3528_v50, %v3913_v44 }
 0xb25   : > { %v4701_v37 = vunpack.i.h.bf16 %v4699_v15  ;;  %v4700_v46 = vunpack.i.l.bf16 %v4699_v15 }
 0xb27   : > { %v3914_v26 = vsel %vm3908_vm3, %v4700_v46, %v4701_v37  ;;  %v3978_v55 = vpack.c.bf16 %v4701_v37, %v4696_v58 }
 0xb28   : > { %v4709_v59 = vpop.permute.xlu1 %4708  ;;  %v3962_v49 = vsel %vm516_vm0, %v3529_v57, %v3914_v26 }
 0xb29   : > { %v4711_v14 = vunpack.i.h.bf16 %v4709_v59  ;;  %v4710_v13 = vunpack.i.l.bf16 %v4709_v59  ;;  %4415 = vmatprep.mubr.msk.bf16.mxu0 %vm516_vm0, %v3978_v55  ;;  %v3977_v16 = vpack.c.bf16 %v3962_v49, %v3961_v11 }
 0xb2b   : > { %v3915_v41 = vsel %vm3908_vm3, %v4710_v13, %v4711_v14  ;;  %v3980_v56 = vpack.c.bf16 %v4716_v45, %v4711_v14  ;;  %4149 = vmatmul.mubr.bf16.gmra.mrb[40].mxu0 %v3977_v16 }
 0xb2c   : > { %v3963_v20 = vsel %vm516_vm0, %v3530_v61, %v3915_v41 }
 0xb2d   : > { %4416 = vmatprep.mubr.msk.bf16.mxu0 %vm516_vm0, %v3980_v56  ;;  %v3979_v36 = vpack.c.bf16 %v3964_v51, %v3963_v20 }
 0xb33   : > { %4157 = vmatmul.mubr.bf16.gmra.mrb[44].mxu0 %v3979_v36 }
 0xb4b   : > { %v4734_v3 = vpop.permute.xlu0 %4733 }
 0xb4c   : > { %v4719_v33 = vpop.permute.xlu1 %4718  ;;  %v4736_v48 = vunpack.i.h.bf16 %v4734_v3  ;;  %v4735_v39 = vunpack.i.l.bf16 %v4734_v3 }
 0xb4d   : > { %v4720_v31 = vunpack.i.l.bf16 %v4719_v33  ;;  %v4721_v63 = vunpack.i.h.bf16 %v4719_v33 }
 0xb4e   : > { %v3535_v58 = vsel %vm1001_vm1, %v7397_v29, %v4736_v48 }
 0xb4f   : > { %v4744_v6 = vpop.permute.xlu0 %4743  ;;  %v3532_v38 = vsel %vm1001_vm1, %v7395_v60, %v4720_v31  ;;  %v3533_v24 = vsel %vm1001_vm1, %v7399_v22, %v4721_v63  ;;  %v3534_v22 = vsel %vm1001_vm1, %v7393_v28, %v4735_v39  ;;  %v5178_v39 = vld [vmem:[%s5296_s26 + $0x8] sm:$0xff] }
 0xb50   : > { %v4729_v9 = vpop.permute.xlu1 %4728  ;;  %v4746_v12 = vunpack.i.h.bf16 %v4744_v6  ;;  %v4745_v0 = vunpack.i.l.bf16 %v4744_v6  ;;  %v3965_v53 = vsel %vm516_vm0, %v3532_v38, %v3917_v42 }
 0xb51   : > { %v4731_v1 = vunpack.i.h.bf16 %v4729_v9  ;;  %v4730_v34 = vunpack.i.l.bf16 %v4729_v9 }
 0xb52   : > { %v3920_v19 = vsel %vm3908_vm3, %v4745_v0, %v4746_v12 }
 0xb53   : > { %v3918_v52 = vsel %vm3908_vm3, %v4730_v34, %v4731_v1  ;;  %v3982_v32 = vpack.c.bf16 %v4731_v1, %v4726_v17  ;;  %v4754_v18 = vpop.permute.xlu0 %4753  ;;  %v3968_v50 = vsel %vm516_vm0, %v3535_v58, %v3920_v19  ;;  %v5177_v34 = vld [vmem:[%s5296_s26] sm:$0xff]  ;;  %v5180_v58 = vld [vmem:[%s5296_s26 + $0x18] sm:$0xff] }
 0xb54   : > { %v4739_v7 = vpop.permute.xlu1 %4738  ;;  %v3966_v60 = vsel %vm516_vm0, %v3533_v24, %v3918_v52  ;;  %v4756_v44 = vunpack.i.h.bf16 %v4754_v18  ;;  %v4755_v4 = vunpack.i.l.bf16 %v4754_v18 }
 0xb55   : > { %v4741_v35 = vunpack.i.h.bf16 %v4739_v7  ;;  %v4740_v27 = vunpack.i.l.bf16 %v4739_v7  ;;  %4417 = vmatprep.mubr.msk.bf16.mxu0 %vm516_vm0, %v3982_v32  ;;  %v3981_v2 = vpack.c.bf16 %v3966_v60, %v3965_v53 }
 0xb56   : > { %v3921_v49 = vsel %vm3908_vm3, %v4755_v4, %v4756_v44 }
 0xb57   : > { %v3919_v21 = vsel %vm3908_vm3, %v4740_v27, %v4741_v35  ;;  %v3984_v30 = vpack.c.bf16 %v4746_v12, %v4741_v35  ;;  %v4764_v45 = vpop.permute.xlu0 %4763  ;;  %4165 = vmatmul.mubr.bf16.gmra.mrb[48].mxu0 %v3981_v2  ;;  %v5179_v35 = vld [vmem:[%s5296_s26 + $0x10] sm:$0xff] }
 0xb58   : > { %v4749_v15 = vpop.permute.xlu1 %4748  ;;  %v3967_v8 = vsel %vm516_vm0, %v3534_v22, %v3919_v21  ;;  %v4766_v43 = vunpack.i.h.bf16 %v4764_v45  ;;  %v4765_v14 = vunpack.i.l.bf16 %v4764_v45 }
 0xb59   : > { %v4750_v37 = vunpack.i.l.bf16 %v4749_v15  ;;  %4418 = vmatprep.mubr.msk.bf16.mxu0 %vm516_vm0, %v3984_v30  ;;  %v3983_v46 = vpack.c.bf16 %v3968_v50, %v3967_v8  ;;  %v4751_v29 = vunpack.i.h.bf16 %v4749_v15 }
 0xb5a   : > { %v3538_v10 = vsel %vm1001_vm1, %v7401_v25, %v4765_v14  ;;  %v7653_v25 = vld [vmem:[%s7757_s11] ss:$0 sm:$0xff] }
 0xb5b   : > { %v4774_v47 = vpop.permute.xlu0 %4773  ;;  %v3536_v28 = vsel %vm1001_vm1, %v7403_v54, %v4750_v37  ;;  %v3537_v13 = vsel %vm1001_vm1, %v7407_v23, %v4751_v29  ;;  %v3539_v23 = vsel %vm1001_vm1, %v7405_v5, %v4766_v43  ;;  %v7655_v5 = vld [vmem:[%s480_s15] ss:$0 sm:$0xff]  ;;  %v5182_v29 = vld [vmem:[%s5296_s26 + $0x28] sm:$0xff]  ;;  %v5183_v43 = vld [vmem:[%s5296_s26 + $0x30] sm:$0xff] }
 0xb5c   : > { %v4759_v57 = vpop.permute.xlu1 %4758  ;;  %v4776_v26 = vunpack.i.h.bf16 %v4774_v47  ;;  %v4775_v55 = vunpack.i.l.bf16 %v4774_v47  ;;  %v3969_v41 = vsel %vm516_vm0, %v3536_v28, %v3921_v49 }
 0xb5d   : > { %v4761_v59 = vunpack.i.h.bf16 %v4759_v57  ;;  %v4760_v11 = vunpack.i.l.bf16 %v4759_v57 }
 0xb5e   : > { %v3924_v56 = vsel %vm3908_vm3, %v4775_v55, %v4776_v26 }
 0xb5f   : > { %v3922_v16 = vsel %vm3908_vm3, %v4760_v11, %v4761_v59  ;;  %v3986_v62 = vpack.c.bf16 %v4761_v59, %v4756_v44  ;;  %4173 = vmatmul.mubr.bf16.gmra.mrb[52].mxu0 %v3983_v46  ;;  %v3972_v31 = vsel %vm516_vm0, %v3539_v23, %v3924_v56  ;;  %v5181_v46 = vld [vmem:[%s5296_s26 + $0x20] sm:$0xff] }
 0xb60   : > { %v4769_v61 = vpop.permute.xlu1 %4768  ;;  %v3970_v54 = vsel %vm516_vm0, %v3537_v13, %v3922_v16  ;;  %v5184_v16 = vld [vmem:[%s5296_s26 + $0x38] sm:$0xff]  ;;  %v5185_v23 = vld [vmem:[%s5296_s26 + $0x40] sm:$0xff] }
 0xb61   : > { %v4771_v20 = vunpack.i.h.bf16 %v4769_v61  ;;  %v4770_v51 = vunpack.i.l.bf16 %v4769_v61  ;;  %4419 = vmatprep.mubr.msk.bf16.mxu0 %vm516_vm0, %v3986_v62  ;;  %v3985_v36 = vpack.c.bf16 %v3970_v54, %v3969_v41 }
 0xb63   : > { %v3923_v3 = vsel %vm3908_vm3, %v4770_v51, %v4771_v20  ;;  %v3988_v40 = vpack.c.bf16 %v4776_v26, %v4771_v20 }
 0xb64   : > { %v3971_v33 = vsel %vm516_vm0, %v3538_v10, %v3923_v3 }
 0xb65   : > { %v3987_v17 = vpack.c.bf16 %v3972_v31, %v3971_v33  ;;  %v5186_v33 = vld [vmem:[%s5296_s26 + $0x48] sm:$0xff] }
 0xb67   : > { %4181 = vmatmul.mubr.bf16.gmra.mrb[56].mxu0 %v3985_v36 }
 0xb68   : > { %4420 = vmatprep.mubr.msk.bf16.mxu0 %vm516_vm0, %v3988_v40 }
 0xb6f   : > { %4189 = vmatmul.mubr.bf16.gmra.mrb[60].mxu0 %v3987_v17 }
 0xbee   : > { %v4134_v63 = vpop.f32.mrb[32].mxu0 }
 0xbef   : > { %v4135_v6 = vadd.f32 %v7653_v25, %v4134_v63  ;;  %v4136_v38 = vpop.f32.mrb[33].mxu0 }
 0xbf0   : > { %v4137_v9 = vpop.f32.mrb[34].mxu0 }
 0xbf1   : > { %v4203_v12 = vmul.f32 %v7655_v5, %v4135_v6  ;;  %v4138_v0 = vadd.f32 %v7653_v25, %v4137_v9  ;;  %v4139_v1 = vpop.f32.mrb[35].mxu0 }
 0xbf3   : > { %v4219_v42 = vadd.f32 %v5177_v34, %v4203_v12  ;;  %v4204_v48 = vmul.f32 %v7655_v5, %v4138_v0  ;;  %v5187_v0 = vld [vmem:[%s5296_s26 + $0x50] sm:$0xff] }
 0xbf5   : > { %4235 = vst.msk [vmem:[%s7664_s22] sm:$0xff] %vm516_vm0, %v4219_v42  ;;  %v4220_v24 = vadd.f32 %v5178_v39, %v4204_v48  ;;  %v5188_v42 = vld [vmem:[%s5296_s26 + $0x58] sm:$0xff] }
 0xbf6   : > { %v4142_v52 = vpop.f32.mrb[36].mxu0 }
 0xbf7   : > { %4236 = vst.msk [vmem:[%s7664_s22 + $0x8] sm:$0xff] %vm516_vm0, %v4220_v24  ;;  %v4143_v32 = vadd.f32 %v7653_v25, %v4142_v52  ;;  %v4144_v18 = vpop.f32.mrb[37].mxu0 }
 0xbf8   : > { %v4145_v7 = vpop.f32.mrb[38].mxu0 }
 0xbf9   : > { %v4205_v53 = vmul.f32 %v7655_v5, %v4143_v32  ;;  %v4146_v60 = vadd.f32 %v7653_v25, %v4145_v7  ;;  %v4147_v19 = vpop.f32.mrb[39].mxu0 }
 0xbfb   : > { %v4221_v27 = vadd.f32 %v5179_v35, %v4205_v53  ;;  %v4206_v2 = vmul.f32 %v7655_v5, %v4146_v60  ;;  %v5189_v60 = vld [vmem:[%s5296_s26 + $0x60] sm:$0xff] }
 0xbfd   : > { %4237 = vst.msk [vmem:[%s7664_s22 + $0x10] sm:$0xff] %vm516_vm0, %v4221_v27  ;;  %v4222_v22 = vadd.f32 %v5180_v58, %v4206_v2  ;;  %v5190_v27 = vld [vmem:[%s5296_s26 + $0x68] sm:$0xff] }
 0xbfe   : > { %v4150_v21 = vpop.f32.mrb[40].mxu0 }
 0xbff   : > { %4238 = vst.msk [vmem:[%s7664_s22 + $0x18] sm:$0xff] %vm516_vm0, %v4222_v22  ;;  %v4151_v30 = vadd.f32 %v7653_v25, %v4150_v21  ;;  %v4152_v45 = vpop.f32.mrb[41].mxu0 }
 0xc00   : > { %v4153_v15 = vpop.f32.mrb[42].mxu0 }
 0xc01   : > { %v4207_v8 = vmul.f32 %v7655_v5, %v4151_v30  ;;  %v4154_v50 = vadd.f32 %v7653_v25, %v4153_v15  ;;  %v4155_v37 = vpop.f32.mrb[43].mxu0 }
 0xc03   : > { %v4223_v44 = vadd.f32 %v5181_v46, %v4207_v8  ;;  %v4208_v4 = vmul.f32 %v7655_v5, %v4154_v50  ;;  %v5191_v50 = vld [vmem:[%s5296_s26 + $0x70] sm:$0xff] }
 0xc05   : > { %4239 = vst.msk [vmem:[%s7664_s22 + $0x20] sm:$0xff] %vm516_vm0, %v4223_v44  ;;  %v4224_v47 = vadd.f32 %v5182_v29, %v4208_v4  ;;  %v5192_v44 = vld [vmem:[%s5296_s26 + $0x78] sm:$0xff] }
 0xc06   : > { %v4158_v28 = vpop.f32.mrb[44].mxu0 }
 0xc07   : > { %4240 = vst.msk [vmem:[%s7664_s22 + $0x28] sm:$0xff] %vm516_vm0, %v4224_v47  ;;  %v4159_v57 = vadd.f32 %v7653_v25, %v4158_v28  ;;  %v4160_v26 = vpop.f32.mrb[45].mxu0 }
 0xc08   : > { %v4161_v55 = vpop.f32.mrb[46].mxu0 }
 0xc09   : > { %v4209_v59 = vmul.f32 %v7655_v5, %v4159_v57  ;;  %v4162_v11 = vadd.f32 %v7653_v25, %v4161_v55  ;;  %v4163_v49 = vpop.f32.mrb[47].mxu0 }
 0xc0b   : > { %v4225_v14 = vadd.f32 %v5183_v43, %v4209_v59  ;;  %v4210_v13 = vmul.f32 %v7655_v5, %v4162_v11 }
 0xc0d   : > { %4241 = vst.msk [vmem:[%s7664_s22 + $0x30] sm:$0xff] %vm516_vm0, %v4225_v14  ;;  %v4226_v62 = vadd.f32 %v5184_v16, %v4210_v13 }
 0xc0f   : > { %4242 = vst.msk [vmem:[%s7664_s22 + $0x38] sm:$0xff] %vm516_vm0, %v4226_v62 }
 0xc2a   : > { %v4166_v61 = vpop.f32.mrb[48].mxu0 }
 0xc2b   : > { %v4167_v41 = vadd.f32 %v7653_v25, %v4166_v61  ;;  %v4168_v54 = vpop.f32.mrb[49].mxu0 }
 0xc2c   : > { %v4169_v56 = vpop.f32.mrb[50].mxu0 }
 0xc2d   : > { %v4211_v20 = vmul.f32 %v7655_v5, %v4167_v41  ;;  %v4170_v51 = vadd.f32 %v7653_v25, %v4169_v56  ;;  %v4171_v36 = vpop.f32.mrb[51].mxu0 }
 0xc2f   : > { %v4227_v10 = vadd.f32 %v5185_v23, %v4211_v20  ;;  %v4212_v3 = vmul.f32 %v7655_v5, %v4170_v51 }
 0xc31   : > { %4243 = vst.msk [vmem:[%s7664_s22 + $0x40] sm:$0xff] %vm516_vm0, %v4227_v10  ;;  %v4228_v31 = vadd.f32 %v5186_v33, %v4212_v3 }
 0xc32   : > { %v4174_v17 = vpop.f32.mrb[52].mxu0 }
 0xc33   : > { %4244 = vst.msk [vmem:[%s7664_s22 + $0x48] sm:$0xff] %vm516_vm0, %v4228_v31  ;;  %v4175_v40 = vadd.f32 %v7653_v25, %v4174_v17  ;;  %v4176_v63 = vpop.f32.mrb[53].mxu0 }
 0xc34   : > { %v4177_v6 = vpop.f32.mrb[54].mxu0 }
 0xc35   : > { %v4213_v38 = vmul.f32 %v7655_v5, %v4175_v40  ;;  %v4178_v9 = vadd.f32 %v7653_v25, %v4177_v6  ;;  %v4179_v12 = vpop.f32.mrb[55].mxu0 }
 0xc37   : > { %v4229_v1 = vadd.f32 %v5187_v0, %v4213_v38  ;;  %v4214_v34 = vmul.f32 %v7655_v5, %v4178_v9 }
 0xc39   : > { %4245 = vst.msk [vmem:[%s7664_s22 + $0x50] sm:$0xff] %vm516_vm0, %v4229_v1  ;;  %v4230_v48 = vadd.f32 %v5188_v42, %v4214_v34 }
 0xc3a   : > { %v4182_v39 = vpop.f32.mrb[56].mxu0 }
 0xc3b   : > { %4246 = vst.msk [vmem:[%s7664_s22 + $0x58] sm:$0xff] %vm516_vm0, %v4230_v48  ;;  %v4183_v24 = vadd.f32 %v7653_v25, %v4182_v39  ;;  %v4184_v52 = vpop.f32.mrb[57].mxu0 }
 0xc3c   : > { %v4185_v32 = vpop.f32.mrb[58].mxu0 }
 0xc3d   : > { %v4215_v18 = vmul.f32 %v7655_v5, %v4183_v24  ;;  %v4186_v7 = vadd.f32 %v7653_v25, %v4185_v32  ;;  %v4187_v53 = vpop.f32.mrb[59].mxu0 }
 0xc3f   : > { %v4231_v19 = vadd.f32 %v5189_v60, %v4215_v18  ;;  %v4216_v35 = vmul.f32 %v7655_v5, %v4186_v7 }
 0xc41   : > { %4247 = vst.msk [vmem:[%s7664_s22 + $0x60] sm:$0xff] %vm516_vm0, %v4231_v19  ;;  %v4232_v2 = vadd.f32 %v5190_v27, %v4216_v35 }
 0xc42   : > { %v4190_v58 = vpop.f32.mrb[60].mxu0 }
 0xc43   : > { %4248 = vst.msk [vmem:[%s7664_s22 + $0x68] sm:$0xff] %vm516_vm0, %v4232_v2  ;;  %v4191_v22 = vadd.f32 %v7653_v25, %v4190_v58  ;;  %v4192_v21 = vpop.f32.mrb[61].mxu0 }
 0xc44   : > { %v4193_v30 = vpop.f32.mrb[62].mxu0 }
 0xc45   : > { %v4217_v45 = vmul.f32 %v7655_v5, %v4191_v22  ;;  %v4194_v15 = vadd.f32 %v7653_v25, %v4193_v30  ;;  %v4195_v8 = vpop.f32.mrb[63].mxu0 }
 0xc47   : > { %v4233_v37 = vadd.f32 %v5191_v50, %v4217_v45  ;;  %v4218_v46 = vmul.f32 %v7655_v5, %v4194_v15 }
 0xc49   : > { %4249 = vst.msk [vmem:[%s7664_s22 + $0x70] sm:$0xff] %vm516_vm0, %v4233_v37  ;;  %v4234_v4 = vadd.f32 %v5192_v44, %v4218_v46 }
 0xc4b   : > { %4250 = vst.msk [vmem:[%s7664_s22 + $0x78] sm:$0xff] %vm516_vm0, %v4234_v4 }
 0xc4c PF: > { %s22_s21 = sadd.s32 1, %s5199_s21  }
 0xc4d   : > { %p19_p4 = scmp.ge.s32.totalorder %s22_s21, 6  }
 0xc4f   :  { %21 = sbr.rel (!%p19_p4) target bundleno = 1 (0x1), region = 113 }

</bundles_post_ra>
